<compile_context>
chip_gen: v7x
topology: tpu7x:2x2x1
jax: 0.10.0
libtpu: 0.0.40
codegen_flags: <defaults>
</compile_context>

<pallas_src>
import functools

import jax
import jax.numpy as jnp
from jax.experimental import pallas as pl
from jax.experimental.pallas import tpu as pltpu

_LANE = 128
_SUBLANE = 8
_COL_OFF = 8  # sublane-aligned start of the image interior inside pad buffers


def _round_up(v, m):
    return ((v + m - 1) // m) * m


def _rcu_kernel(x_ref, halo_ref, w1_ref, b1_ref, w2_ref, b2_ref, o_ref,
                pad1_ref, shift1_ref, pad2_ref, shift2_ref, *, w_valid):
    """One (image, row-strip) tile per grid step.

    x_ref    : (1, TH, Wp, Cp)     input dtype   -- the output strip's rows of x
    halo_ref : (1, 4, Wp, Cp)      compute dtype -- rows r0-2, r0-1, r0+TH, r0+TH+1
                                                    (zeros where outside the image)
    w*_ref   : (3, 3*Cp, Cp)       compute dtype -- HWIO with (kw, cin) merged
    b*_ref   : (1, Cp)             float32
    o_ref    : (1, TH, Wp, Cp)     output dtype
    pad1_ref : (TH+4, padW, Cp)    scratch -- relu(x) strip with halo + zero cols
    shift1   : (TH+4, Wp, 3*Cp)    scratch -- kw-shifted slabs for conv1
    pad2_ref : (TH+2, padW, Cp)    scratch -- relu(conv1) with zero padding
    shift2   : (TH+2, Wp, 3*Cp)    scratch -- kw-shifted slabs for conv2
    """
    _, TH, Wp, Cp = x_ref.shape
    C3 = 3 * Cp
    OFF = _COL_OFF
    padW = pad1_ref.shape[1]
    cdt = pad1_ref.dtype
    h = pl.program_id(1)
    n_h = pl.num_programs(1)

    def build_shift(pad_ref, shift_ref):
        # kw-shift hoist: three lane-aligned slab stores; the kh taps are then
        # free leading-dim slices of shift_ref.
        for kw in range(3):
            shift_ref[:, :, kw * Cp:(kw + 1) * Cp] = (
                pad_ref[:, OFF - 1 + kw:OFF - 1 + kw + Wp, :])

    def conv3x3(shift_ref, w_ref, b_ref, t_out):
        # Fused sum: bias + three fat MXU dots (K = 3*Cp), f32 accumulation,
        # written once by the caller -- no read-modify-write VMEM accumulator.
        m = t_out * Wp
        return (jnp.dot(shift_ref[0:t_out].reshape(m, C3), w_ref[0],
                        preferred_element_type=jnp.float32)
                + jnp.dot(shift_ref[1:t_out + 1].reshape(m, C3), w_ref[1],
                          preferred_element_type=jnp.float32)
                + jnp.dot(shift_ref[2:t_out + 2].reshape(m, C3), w_ref[2],
                          preferred_element_type=jnp.float32)
                + b_ref[...])

    # ---- stage 1: relu(x) strip with a 2-row halo and zero column padding ----
    # pad1 row j <-> image row (h*TH - 2 + j); halo rows outside the image are
    # already zero (built with jnp.pad in the wrapper).
    pad1_ref[0:2, OFF:OFF + Wp, :] = jnp.maximum(halo_ref[0, 0:2], 0).astype(cdt)
    pad1_ref[2:TH + 2, OFF:OFF + Wp, :] = jnp.maximum(x_ref[0], 0).astype(cdt)
    pad1_ref[TH + 2:TH + 4, OFF:OFF + Wp, :] = (
        jnp.maximum(halo_ref[0, 2:4], 0).astype(cdt))
    # Zero-pad columns actually read by the kw shifts (left of col 0, right of
    # col W-1, plus any lane-padding garbage columns up to the last read col).
    pad1_ref[:, OFF - 1:OFF, :] = jnp.zeros((TH + 4, 1, Cp), cdt)
    pad1_ref[:, OFF + w_valid:OFF + Wp + 1, :] = jnp.zeros(
        (TH + 4, Wp + 1 - w_valid, Cp), cdt)

    # ---- conv1 over TH+2 rows (one extra row above and below the strip) ----
    build_shift(pad1_ref, shift1_ref)
    y1 = conv3x3(shift1_ref, w1_ref, b1_ref, TH + 2)

    # ---- stage 2: relu(conv1) with zero row/column padding for conv2 ----
    # pad2 row j <-> image row (h*TH - 1 + j).
    pad2_ref[:, OFF:OFF + Wp, :] = (
        jnp.maximum(y1, 0).reshape(TH + 2, Wp, Cp).astype(cdt))
    pad2_ref[:, OFF - 1:OFF, :] = jnp.zeros((TH + 2, 1, Cp), cdt)
    pad2_ref[:, OFF + w_valid:OFF + Wp + 1, :] = jnp.zeros(
        (TH + 2, Wp + 1 - w_valid, Cp), cdt)

    # conv1 rows that fall outside the image are conv2's zero padding.
    @pl.when(h == 0)
    def _():
        pad2_ref[0:1, :, :] = jnp.zeros((1, padW, Cp), cdt)

    @pl.when(h == n_h - 1)
    def _():
        pad2_ref[TH + 1:TH + 2, :, :] = jnp.zeros((1, padW, Cp), cdt)

    # ---- conv2 over the TH output rows + residual, written once ----
    build_shift(pad2_ref, shift2_ref)
    y2 = conv3x3(shift2_ref, w2_ref, b2_ref, TH)
    o_ref[0] = (y2.reshape(TH, Wp, Cp)
                + x_ref[0].astype(jnp.float32)).astype(o_ref.dtype)


def _vmem_budget_bytes():
    """~75% of the physical per-core VMEM (64 MiB on v7x, 128 MiB on v5e/v6e)."""
    phys = 64 * 1024 * 1024
    try:
        info = pltpu.get_tpu_info()
        phys = int(getattr(info, "vmem_capacity_bytes", phys))
    except Exception:
        pass
    return (phys * 3) // 4


def _estimate_vmem(th, Wp, Cp, padW, cdt_size, io_size):
    tiles = th * Wp * Cp * io_size * 2 * 2                 # x + out, double buffered
    halo = 4 * Wp * Cp * cdt_size * 2
    weights = 2 * (9 * Cp * Cp) * cdt_size * 2              # both convs, double buffered
    pads = ((th + 4) + (th + 2)) * padW * Cp * cdt_size
    shifts = ((th + 4) + (th + 2)) * Wp * 3 * Cp * cdt_size
    temps = 2 * (th + 2) * Wp * Cp * 4                      # f32 conv results in flight
    return tiles + halo + weights + pads + shifts + temps


def _pick_tile_h(H, Wp, Cp, padW, cdt_size, io_size, budget, tile_h):
    cap = H
    if tile_h is not None:
        cap = min(cap, max(1, int(tile_h)))
    elif H >= 32:
        cap = min(cap, max(8, H // 2))   # keep >=2 H-tiles for pipelining / megacore
    best = 1
    for th in range(1, cap + 1):
        if H % th != 0:
            continue
        if _estimate_vmem(th, Wp, Cp, padW, cdt_size, io_size) <= 0.65 * budget:
            best = th
    return best


def residual_conv_unit_nhwc(x, w1, b1, w2, b2, *,
                            compute_dtype=jnp.bfloat16, tile_h=None):
    """x: (N, H, W, C); w*: (3, 3, Cin, Cout) HWIO; b*: any shape with C elems.

    compute_dtype=jnp.bfloat16 (default) feeds the MXU at native rate with f32
    accumulation; compute_dtype=jnp.float32 matches PyTorch numerics exactly.
    """
    N, H, W, C = x.shape
    cdt = jnp.dtype(compute_dtype)
    Cp = _round_up(C, _LANE)
    Wp = _round_up(W, _SUBLANE)
    padW = _COL_OFF + Wp + 8

    b1 = jnp.asarray(b1).reshape(-1).astype(jnp.float32)
    b2 = jnp.asarray(b2).reshape(-1).astype(jnp.float32)
    w1 = jnp.asarray(w1)
    w2 = jnp.asarray(w2)

    # Lane-dense channels / sublane-dense width (zero padded; padded channels
    # stay exactly zero end-to-end and are sliced off afterwards).
    if Cp != C or Wp != W:
        x = jnp.pad(x, ((0, 0), (0, 0), (0, Wp - W), (0, Cp - C)))
    if Cp != C:
        w1 = jnp.pad(w1, ((0, 0), (0, 0), (0, Cp - C), (0, Cp - C)))
        w2 = jnp.pad(w2, ((0, 0), (0, 0), (0, Cp - C), (0, Cp - C)))
        b1 = jnp.pad(b1, (0, Cp - C))
        b2 = jnp.pad(b2, (0, Cp - C))

    # HWIO -> (kh, kw*Cin, Cout): matches the kw-slab order built in the kernel.
    w1r = w1.reshape(3, 3 * Cp, Cp).astype(cdt)
    w2r = w2.reshape(3, 3 * Cp, Cp).astype(cdt)
    b1r = b1.reshape(1, Cp)
    b2r = b2.reshape(1, Cp)

    budget = _vmem_budget_bytes()
    TH = _pick_tile_h(H, Wp, Cp, padW, cdt.itemsize, x.dtype.itemsize,
                      budget, tile_h)
    n_h = H // TH

    # Per-tile halo rows (image rows r0-2, r0-1, r0+TH, r0+TH+1); rows outside
    # the image are zero thanks to jnp.pad, so the kernel needs no row masking
    # on the conv *inputs*.
    xp = jnp.pad(x, ((0, 0), (2, 2), (0, 0), (0, 0)))
    base = jnp.arange(n_h, dtype=jnp.int32) * TH
    offs = jnp.asarray([0, 1, TH + 2, TH + 3], dtype=jnp.int32)
    idx = base[:, None] + offs[None, :]                      # (n_h, 4)
    halo = jnp.take(xp, idx, axis=1).reshape(N, n_h * 4, Wp, Cp).astype(cdt)

    kernel = functools.partial(_rcu_kernel, w_valid=W)

    out = pl.pallas_call(
        kernel,
        out_shape=jax.ShapeDtypeStruct((N, H, Wp, Cp), x.dtype),
        grid_spec=pltpu.PrefetchScalarGridSpec(
            num_scalar_prefetch=0,
            grid=(N, n_h),
            in_specs=[
                pl.BlockSpec((1, TH, Wp, Cp), lambda n, h: (n, h, 0, 0)),
                pl.BlockSpec((1, 4, Wp, Cp), lambda n, h: (n, h, 0, 0)),
                pl.BlockSpec((3, 3 * Cp, Cp), lambda n, h: (0, 0, 0)),
                pl.BlockSpec((1, Cp), lambda n, h: (0, 0)),
                pl.BlockSpec((3, 3 * Cp, Cp), lambda n, h: (0, 0, 0)),
                pl.BlockSpec((1, Cp), lambda n, h: (0, 0)),
            ],
            out_specs=pl.BlockSpec((1, TH, Wp, Cp), lambda n, h: (n, h, 0, 0)),
            scratch_shapes=[
                pltpu.VMEM((TH + 4, padW, Cp), cdt),      # pad1: relu(x) + halo
                pltpu.VMEM((TH + 4, Wp, 3 * Cp), cdt),    # shift1
                pltpu.VMEM((TH + 2, padW, Cp), cdt),      # pad2: relu(conv1)
                pltpu.VMEM((TH + 2, Wp, 3 * Cp), cdt),    # shift2
            ],
        ),
        compiler_params=pltpu.CompilerParams(
            dimension_semantics=("parallel", "parallel"),  # images x row-strips
            vmem_limit_bytes=int(budget),
        ),
    )(x, halo, w1r, b1r, w2r, b2r)

    if Cp != C or Wp != W:
        out = out[:, :, :W, :C]
    return out


def residual_conv_unit_nchw(x_nchw, w1, b1, w2, b2, *,
                            compute_dtype=jnp.bfloat16, tile_h=None):
    """PyTorch-facing wrapper: x_nchw (N, C, H, W) -> (N, C, H, W)."""
    x_nhwc = jnp.transpose(x_nchw, (0, 2, 3, 1))
    out_nhwc = residual_conv_unit_nhwc(x_nhwc, w1, b1, w2, b2,
                                       compute_dtype=compute_dtype,
                                       tile_h=tile_h)
    return jnp.transpose(out_nhwc, (0, 3, 1, 2))


def _ref_forward_nhwc(x, w1, b1, w2, b2):
    """Pure-JAX reference (lax.conv) for correctness checking."""
    def conv(h, w, b):
        y = jax.lax.conv_general_dilated(
            h, w, window_strides=(1, 1), padding="SAME",
            dimension_numbers=("NHWC", "HWIO", "NHWC"))
        return y + b.reshape(1, 1, 1, -1)
    h = jax.nn.relu(x)
    h = conv(h, w1, b1)
    h = jax.nn.relu(h)
    h = conv(h, w2, b2)
    return h + x


if __name__ == "__main__":
    # Small shapes consistent with the module: features = C = 4.
    N, C, H, W = 2, 4, 16, 16

    key = jax.random.PRNGKey(0)
    k_x, k_w1, k_b1, k_w2, k_b2 = jax.random.split(key, 5)

    fan_in = C * 3 * 3
    scale = 1.0 / jnp.sqrt(fan_in)
    x_nchw = jax.random.normal(k_x, (N, C, H, W), jnp.float32)
    w1 = jax.random.uniform(k_w1, (3, 3, C, C), jnp.float32, -scale, scale)
    b1 = jax.random.uniform(k_b1, (C,), jnp.float32, -scale, scale)
    w2 = jax.random.uniform(k_w2, (3, 3, C, C), jnp.float32, -scale, scale)
    b2 = jax.random.uniform(k_b2, (C,), jnp.float32, -scale, scale)

    x_nhwc = jnp.transpose(x_nchw, (0, 2, 3, 1))
    ref_nchw = jnp.transpose(_ref_forward_nhwc(x_nhwc, w1, b1, w2, b2),
                             (0, 3, 1, 2))

    # 1) exact-precision path, auto tile (single H strip at this size).
    out = residual_conv_unit_nchw(x_nchw, w1, b1, w2, b2,
                                  compute_dtype=jnp.float32)
    out = jax.block_until_ready(out)
    assert out.shape == (N, C, H, W)
    err = float(jnp.max(jnp.abs(out - ref_nchw)))
    assert err < 1e-4, f"f32 auto-tile err={err}"

    # 2) exact-precision path, forced H tiling (exercises halos + boundary rows).
    out_t = residual_conv_unit_nchw(x_nchw, w1, b1, w2, b2,
                                    compute_dtype=jnp.float32, tile_h=4)
    out_t = jax.block_until_ready(out_t)
    err_t = float(jnp.max(jnp.abs(out_t - ref_nchw)))
    assert err_t < 1e-4, f"f32 tiled err={err_t}"

    # 3) ragged W + H tiling (exercises width padding / column zeroing).
    N2, H2, W2 = 1, 12, 14
    x2 = jax.random.normal(jax.random.PRNGKey(1), (N2, C, H2, W2), jnp.float32)
    ref2 = jnp.transpose(
        _ref_forward_nhwc(jnp.transpose(x2, (0, 2, 3, 1)), w1, b1, w2, b2),
        (0, 3, 1, 2))
    out2 = residual_conv_unit_nchw(x2, w1, b1, w2, b2,
                                   compute_dtype=jnp.float32, tile_h=4)
    out2 = jax.block_until_ready(out2)
    err2 = float(jnp.max(jnp.abs(out2 - ref2)))
    assert err2 < 1e-4, f"ragged err={err2}"

    # 4) default bf16-compute inference path (f32 accumulation), loose check.
    out_bf = residual_conv_unit_nchw(x_nchw, w1, b1, w2, b2, tile_h=8)
    out_bf = jax.block_until_ready(out_bf)
    err_bf = float(jnp.max(jnp.abs(out_bf - ref_nchw)))
    assert err_bf < 0.25, f"bf16 err={err_bf}"

    print("KERNEL_OK")
</pallas_src>

<mosaic_0001>
module attributes {stable_mosaic.version = 11 : i64} {
  func.func @_rcu_kernel(%arg0: i32, %arg1: i32, %arg2: memref<1x16x16x128xf32, #tpu.memory_space<vmem>>, %arg3: memref<1x4x16x128xf32, #tpu.memory_space<vmem>>, %arg4: memref<3x384x128xf32, #tpu.memory_space<vmem>>, %arg5: memref<1x128xf32, #tpu.memory_space<vmem>>, %arg6: memref<3x384x128xf32, #tpu.memory_space<vmem>>, %arg7: memref<1x128xf32, #tpu.memory_space<vmem>>, %arg8: memref<1x16x16x128xf32, #tpu.memory_space<vmem>>, %arg9: memref<20x32x128xf32, #tpu.memory_space<vmem>>, %arg10: memref<20x16x384xf32, #tpu.memory_space<vmem>>, %arg11: memref<18x32x128xf32, #tpu.memory_space<vmem>>, %arg12: memref<18x16x384xf32, #tpu.memory_space<vmem>>) attributes {dimension_semantics = [#tpu.dimension_semantics<parallel>, #tpu.dimension_semantics<parallel>], iteration_bounds = array<i64: 2, 1>, scalar_prefetch = 0 : i64, scratch_operands = 4 : i64, tpu.core_type = #tpu.core_type<tc>, window_params = [{transform_indices = @transform_0, window_bounds = array<i64: 1, 16, 16, 128>}, {transform_indices = @transform_1, window_bounds = array<i64: 1, 4, 16, 128>}, {pipeline_mode = #tpu.pipeline_mode<synchronous>, transform_indices = @transform_2, window_bounds = array<i64: 3, 384, 128>}, {pipeline_mode = #tpu.pipeline_mode<synchronous>, transform_indices = @transform_3, window_bounds = array<i64: 1, 128>}, {pipeline_mode = #tpu.pipeline_mode<synchronous>, transform_indices = @transform_4, window_bounds = array<i64: 3, 384, 128>}, {pipeline_mode = #tpu.pipeline_mode<synchronous>, transform_indices = @transform_5, window_bounds = array<i64: 1, 128>}, {transform_indices = @transform_6, window_bounds = array<i64: 1, 16, 16, 128>}]} {
    %c0 = arith.constant 0 : index
    %c0_0 = arith.constant 0 : index
    %c0_1 = arith.constant 0 : index
    %c0_2 = arith.constant 0 : index
    %0 = vector.load %arg3[%c0, %c0_0, %c0_1, %c0_2] : memref<1x4x16x128xf32, #tpu.memory_space<vmem>>, vector<1x2x16x128xf32>
    %1 = vector.shape_cast %0 : vector<1x2x16x128xf32> to vector<2x16x128xf32>
    %cst = arith.constant 0.000000e+00 : f32
    %2 = vector.broadcast %cst : f32 to vector<2x16x128xf32>
    %3 = arith.maximumf %1, %2 : vector<2x16x128xf32>
    %c0_3 = arith.constant 0 : index
    %c8 = arith.constant 8 : index
    %c0_4 = arith.constant 0 : index
    %4 = vector.load %arg9[%c0_3, %c8, %c0_4] : memref<20x32x128xf32, #tpu.memory_space<vmem>>, vector<2x16x128xf32>
    tpu.vector_store %arg9[%c0_3, %c8, %c0_4], %3 {strides = array<i32>} : memref<20x32x128xf32, #tpu.memory_space<vmem>>, vector<2x16x128xf32>,
    %c0_5 = arith.constant 0 : index
    %c0_6 = arith.constant 0 : index
    %c0_7 = arith.constant 0 : index
    %c0_8 = arith.constant 0 : index
    %5 = vector.load %arg2[%c0_5, %c0_6, %c0_7, %c0_8] : memref<1x16x16x128xf32, #tpu.memory_space<vmem>>, vector<1x16x16x128xf32>
    %6 = vector.shape_cast %5 : vector<1x16x16x128xf32> to vector<16x16x128xf32>
    %cst_9 = arith.constant 0.000000e+00 : f32
    %7 = vector.broadcast %cst_9 : f32 to vector<16x16x128xf32>
    %8 = arith.maximumf %6, %7 : vector<16x16x128xf32>
    %c2 = arith.constant 2 : index
    %c8_10 = arith.constant 8 : index
    %c0_11 = arith.constant 0 : index
    %9 = vector.load %arg9[%c2, %c8_10, %c0_11] : memref<20x32x128xf32, #tpu.memory_space<vmem>>, vector<16x16x128xf32>
    tpu.vector_store %arg9[%c2, %c8_10, %c0_11], %8 {strides = array<i32>} : memref<20x32x128xf32, #tpu.memory_space<vmem>>, vector<16x16x128xf32>,
    %c0_12 = arith.constant 0 : index
    %c2_13 = arith.constant 2 : index
    %c0_14 = arith.constant 0 : index
    %c0_15 = arith.constant 0 : index
    %10 = vector.load %arg3[%c0_12, %c2_13, %c0_14, %c0_15] : memref<1x4x16x128xf32, #tpu.memory_space<vmem>>, vector<1x2x16x128xf32>
    %11 = vector.shape_cast %10 : vector<1x2x16x128xf32> to vector<2x16x128xf32>
    %cst_16 = arith.constant 0.000000e+00 : f32
    %12 = vector.broadcast %cst_16 : f32 to vector<2x16x128xf32>
    %13 = arith.maximumf %11, %12 : vector<2x16x128xf32>
    %c18 = arith.constant 18 : index
    %c8_17 = arith.constant 8 : index
    %c0_18 = arith.constant 0 : index
    %14 = vector.load %arg9[%c18, %c8_17, %c0_18] : memref<20x32x128xf32, #tpu.memory_space<vmem>>, vector<2x16x128xf32>
    tpu.vector_store %arg9[%c18, %c8_17, %c0_18], %13 {strides = array<i32>} : memref<20x32x128xf32, #tpu.memory_space<vmem>>, vector<2x16x128xf32>,
    %cst_19 = arith.constant 0.000000e+00 : f32
    %15 = vector.broadcast %cst_19 : f32 to vector<20x1x128xf32>
    %c0_20 = arith.constant 0 : index
    %c7 = arith.constant 7 : index
    %c0_21 = arith.constant 0 : index
    %16 = vector.load %arg9[%c0_20, %c7, %c0_21] : memref<20x32x128xf32, #tpu.memory_space<vmem>>, vector<20x1x128xf32>
    tpu.vector_store %arg9[%c0_20, %c7, %c0_21], %15 {strides = array<i32>} : memref<20x32x128xf32, #tpu.memory_space<vmem>>, vector<20x1x128xf32>,
    %cst_22 = arith.constant 0.000000e+00 : f32
    %17 = vector.broadcast %cst_22 : f32 to vector<20x1x128xf32>
    %c0_23 = arith.constant 0 : index
    %c24 = arith.constant 24 : index
    %c0_24 = arith.constant 0 : index
    %18 = vector.load %arg9[%c0_23, %c24, %c0_24] : memref<20x32x128xf32, #tpu.memory_space<vmem>>, vector<20x1x128xf32>
    tpu.vector_store %arg9[%c0_23, %c24, %c0_24], %17 {strides = array<i32>} : memref<20x32x128xf32, #tpu.memory_space<vmem>>, vector<20x1x128xf32>,
    %c0_25 = arith.constant 0 : index
    %c7_26 = arith.constant 7 : index
    %c0_27 = arith.constant 0 : index
    %19 = vector.load %arg9[%c0_25, %c7_26, %c0_27] : memref<20x32x128xf32, #tpu.memory_space<vmem>>, vector<20x16x128xf32>
    %c0_28 = arith.constant 0 : index
    %c0_29 = arith.constant 0 : index
    %c0_30 = arith.constant 0 : index
    %20 = vector.load %arg10[%c0_28, %c0_29, %c0_30] : memref<20x16x384xf32, #tpu.memory_space<vmem>>, vector<20x16x128xf32>
    tpu.vector_store %arg10[%c0_28, %c0_29, %c0_30], %19 {strides = array<i32>} : memref<20x16x384xf32, #tpu.memory_space<vmem>>, vector<20x16x128xf32>,
    %c0_31 = arith.constant 0 : index
    %c8_32 = arith.constant 8 : index
    %c0_33 = arith.constant 0 : index
    %21 = vector.load %arg9[%c0_31, %c8_32, %c0_33] : memref<20x32x128xf32, #tpu.memory_space<vmem>>, vector<20x16x128xf32>
    %c0_34 = arith.constant 0 : index
    %c0_35 = arith.constant 0 : index
    %c128 = arith.constant 128 : index
    %22 = vector.load %arg10[%c0_34, %c0_35, %c128] : memref<20x16x384xf32, #tpu.memory_space<vmem>>, vector<20x16x128xf32>
    tpu.vector_store %arg10[%c0_34, %c0_35, %c128], %21 {strides = array<i32>} : memref<20x16x384xf32, #tpu.memory_space<vmem>>, vector<20x16x128xf32>,
    %c0_36 = arith.constant 0 : index
    %c9 = arith.constant 9 : index
    %c0_37 = arith.constant 0 : index
    %23 = vector.load %arg9[%c0_36, %c9, %c0_37] : memref<20x32x128xf32, #tpu.memory_space<vmem>>, vector<20x16x128xf32>
    %c0_38 = arith.constant 0 : index
    %c0_39 = arith.constant 0 : index
    %c256 = arith.constant 256 : index
    %24 = vector.load %arg10[%c0_38, %c0_39, %c256] : memref<20x16x384xf32, #tpu.memory_space<vmem>>, vector<20x16x128xf32>
    tpu.vector_store %arg10[%c0_38, %c0_39, %c256], %23 {strides = array<i32>} : memref<20x16x384xf32, #tpu.memory_space<vmem>>, vector<20x16x128xf32>,
    %c0_40 = arith.constant 0 : index
    %c0_41 = arith.constant 0 : index
    %c0_42 = arith.constant 0 : index
    %25 = vector.load %arg10[%c0_40, %c0_41, %c0_42] : memref<20x16x384xf32, #tpu.memory_space<vmem>>, vector<18x16x384xf32>
    %26 = vector.shape_cast %25 : vector<18x16x384xf32> to vector<288x384xf32>
    %c0_43 = arith.constant 0 : index
    %c0_44 = arith.constant 0 : index
    %c0_45 = arith.constant 0 : index
    %27 = vector.load %arg4[%c0_43, %c0_44, %c0_45] : memref<3x384x128xf32, #tpu.memory_space<vmem>>, vector<1x384x128xf32>
    %28 = vector.shape_cast %27 : vector<1x384x128xf32> to vector<384x128xf32>
    %cst_46 = arith.constant dense<0.000000e+00> : vector<288x128xf32>
    %29 = tpu.matmul %26, %28, %cst_46 {dimension_numbers = #tpu.dot_dimension_numbers<[1], [0], [0], [1], [0, 0, 1, 1], [], []>} : vector<288x384xf32>, vector<384x128xf32>, vector<288x128xf32> -> vector<288x128xf32>
    %c1 = arith.constant 1 : index
    %c0_47 = arith.constant 0 : index
    %c0_48 = arith.constant 0 : index
    %30 = vector.load %arg10[%c1, %c0_47, %c0_48] : memref<20x16x384xf32, #tpu.memory_space<vmem>>, vector<18x16x384xf32>
    %31 = vector.shape_cast %30 : vector<18x16x384xf32> to vector<288x384xf32>
    %c1_49 = arith.constant 1 : index
    %c0_50 = arith.constant 0 : index
    %c0_51 = arith.constant 0 : index
    %32 = vector.load %arg4[%c1_49, %c0_50, %c0_51] : memref<3x384x128xf32, #tpu.memory_space<vmem>>, vector<1x384x128xf32>
    %33 = vector.shape_cast %32 : vector<1x384x128xf32> to vector<384x128xf32>
    %cst_52 = arith.constant dense<0.000000e+00> : vector<288x128xf32>
    %34 = tpu.matmul %31, %33, %cst_52 {dimension_numbers = #tpu.dot_dimension_numbers<[1], [0], [0], [1], [0, 0, 1, 1], [], []>} : vector<288x384xf32>, vector<384x128xf32>, vector<288x128xf32> -> vector<288x128xf32>
    %35 = arith.addf %29, %34 : vector<288x128xf32>
    %c2_53 = arith.constant 2 : index
    %c0_54 = arith.constant 0 : index
    %c0_55 = arith.constant 0 : index
    %36 = vector.load %arg10[%c2_53, %c0_54, %c0_55] : memref<20x16x384xf32, #tpu.memory_space<vmem>>, vector<18x16x384xf32>
    %37 = vector.shape_cast %36 : vector<18x16x384xf32> to vector<288x384xf32>
    %c2_56 = arith.constant 2 : index
    %c0_57 = arith.constant 0 : index
    %c0_58 = arith.constant 0 : index
    %38 = vector.load %arg4[%c2_56, %c0_57, %c0_58] : memref<3x384x128xf32, #tpu.memory_space<vmem>>, vector<1x384x128xf32>
    %39 = vector.shape_cast %38 : vector<1x384x128xf32> to vector<384x128xf32>
    %cst_59 = arith.constant dense<0.000000e+00> : vector<288x128xf32>
    %40 = tpu.matmul %37, %39, %cst_59 {dimension_numbers = #tpu.dot_dimension_numbers<[1], [0], [0], [1], [0, 0, 1, 1], [], []>} : vector<288x384xf32>, vector<384x128xf32>, vector<288x128xf32> -> vector<288x128xf32>
    %41 = arith.addf %35, %40 : vector<288x128xf32>
    %c0_60 = arith.constant 0 : index
    %c0_61 = arith.constant 0 : index
    %42 = vector.load %arg5[%c0_60, %c0_61] : memref<1x128xf32, #tpu.memory_space<vmem>>, vector<1x128xf32>
    %43 = vector.broadcast %42 : vector<1x128xf32> to vector<288x128xf32>
    %44 = arith.addf %41, %43 : vector<288x128xf32>
    %cst_62 = arith.constant 0.000000e+00 : f32
    %45 = vector.broadcast %cst_62 : f32 to vector<288x128xf32>
    %46 = arith.maximumf %44, %45 : vector<288x128xf32>
    %47 = vector.shape_cast %46 : vector<288x128xf32> to vector<18x16x128xf32>
    %c0_63 = arith.constant 0 : index
    %c8_64 = arith.constant 8 : index
    %c0_65 = arith.constant 0 : index
    %48 = vector.load %arg11[%c0_63, %c8_64, %c0_65] : memref<18x32x128xf32, #tpu.memory_space<vmem>>, vector<18x16x128xf32>
    tpu.vector_store %arg11[%c0_63, %c8_64, %c0_65], %47 {strides = array<i32>} : memref<18x32x128xf32, #tpu.memory_space<vmem>>, vector<18x16x128xf32>,
    %cst_66 = arith.constant 0.000000e+00 : f32
    %49 = vector.broadcast %cst_66 : f32 to vector<18x1x128xf32>
    %c0_67 = arith.constant 0 : index
    %c7_68 = arith.constant 7 : index
    %c0_69 = arith.constant 0 : index
    %50 = vector.load %arg11[%c0_67, %c7_68, %c0_69] : memref<18x32x128xf32, #tpu.memory_space<vmem>>, vector<18x1x128xf32>
    tpu.vector_store %arg11[%c0_67, %c7_68, %c0_69], %49 {strides = array<i32>} : memref<18x32x128xf32, #tpu.memory_space<vmem>>, vector<18x1x128xf32>,
    %cst_70 = arith.constant 0.000000e+00 : f32
    %51 = vector.broadcast %cst_70 : f32 to vector<18x1x128xf32>
    %c0_71 = arith.constant 0 : index
    %c24_72 = arith.constant 24 : index
    %c0_73 = arith.constant 0 : index
    %52 = vector.load %arg11[%c0_71, %c24_72, %c0_73] : memref<18x32x128xf32, #tpu.memory_space<vmem>>, vector<18x1x128xf32>
    tpu.vector_store %arg11[%c0_71, %c24_72, %c0_73], %51 {strides = array<i32>} : memref<18x32x128xf32, #tpu.memory_space<vmem>>, vector<18x1x128xf32>,
    %c0_i32 = arith.constant 0 : i32
    %53 = arith.cmpi eq, %arg1, %c0_i32 : i32
    %54 = arith.extui %53 : i1 to i32
    %c0_i32_74 = arith.constant 0 : i32
    %55 = arith.cmpi ne, %54, %c0_i32_74 : i32
    scf.if %55 {
      %cst_126 = arith.constant 0.000000e+00 : f32
      %92 = vector.broadcast %cst_126 : f32 to vector<1x32x128xf32>
      %c0_127 = arith.constant 0 : index
      %c0_128 = arith.constant 0 : index
      %c0_129 = arith.constant 0 : index
      %93 = vector.load %arg11[%c0_127, %c0_128, %c0_129] : memref<18x32x128xf32, #tpu.memory_space<vmem>>, vector<1x32x128xf32>
      tpu.vector_store %arg11[%c0_127, %c0_128, %c0_129], %92 {strides = array<i32>} : memref<18x32x128xf32, #tpu.memory_space<vmem>>, vector<1x32x128xf32>,
    } else {
    }
    %c0_i32_75 = arith.constant 0 : i32
    %56 = arith.cmpi eq, %arg1, %c0_i32_75 : i32
    %57 = arith.extui %56 : i1 to i32
    %c0_i32_76 = arith.constant 0 : i32
    %58 = arith.cmpi ne, %57, %c0_i32_76 : i32
    scf.if %58 {
      %cst_126 = arith.constant 0.000000e+00 : f32
      %92 = vector.broadcast %cst_126 : f32 to vector<1x32x128xf32>
      %c17 = arith.constant 17 : index
      %c0_127 = arith.constant 0 : index
      %c0_128 = arith.constant 0 : index
      %93 = vector.load %arg11[%c17, %c0_127, %c0_128] : memref<18x32x128xf32, #tpu.memory_space<vmem>>, vector<1x32x128xf32>
      tpu.vector_store %arg11[%c17, %c0_127, %c0_128], %92 {strides = array<i32>} : memref<18x32x128xf32, #tpu.memory_space<vmem>>, vector<1x32x128xf32>,
    } else {
    }
    %c0_77 = arith.constant 0 : index
    %c7_78 = arith.constant 7 : index
    %c0_79 = arith.constant 0 : index
    %59 = vector.load %arg11[%c0_77, %c7_78, %c0_79] : memref<18x32x128xf32, #tpu.memory_space<vmem>>, vector<18x16x128xf32>
    %c0_80 = arith.constant 0 : index
    %c0_81 = arith.constant 0 : index
    %c0_82 = arith.constant 0 : index
    %60 = vector.load %arg12[%c0_80, %c0_81, %c0_82] : memref<18x16x384xf32, #tpu.memory_space<vmem>>, vector<18x16x128xf32>
    tpu.vector_store %arg12[%c0_80, %c0_81, %c0_82], %59 {strides = array<i32>} : memref<18x16x384xf32, #tpu.memory_space<vmem>>, vector<18x16x128xf32>,
    %c0_83 = arith.constant 0 : index
    %c8_84 = arith.constant 8 : index
    %c0_85 = arith.constant 0 : index
    %61 = vector.load %arg11[%c0_83, %c8_84, %c0_85] : memref<18x32x128xf32, #tpu.memory_space<vmem>>, vector<18x16x128xf32>
    %c0_86 = arith.constant 0 : index
    %c0_87 = arith.constant 0 : index
    %c128_88 = arith.constant 128 : index
    %62 = vector.load %arg12[%c0_86, %c0_87, %c128_88] : memref<18x16x384xf32, #tpu.memory_space<vmem>>, vector<18x16x128xf32>
    tpu.vector_store %arg12[%c0_86, %c0_87, %c128_88], %61 {strides = array<i32>} : memref<18x16x384xf32, #tpu.memory_space<vmem>>, vector<18x16x128xf32>,
    %c0_89 = arith.constant 0 : index
    %c9_90 = arith.constant 9 : index
    %c0_91 = arith.constant 0 : index
    %63 = vector.load %arg11[%c0_89, %c9_90, %c0_91] : memref<18x32x128xf32, #tpu.memory_space<vmem>>, vector<18x16x128xf32>
    %c0_92 = arith.constant 0 : index
    %c0_93 = arith.constant 0 : index
    %c256_94 = arith.constant 256 : index
    %64 = vector.load %arg12[%c0_92, %c0_93, %c256_94] : memref<18x16x384xf32, #tpu.memory_space<vmem>>, vector<18x16x128xf32>
    tpu.vector_store %arg12[%c0_92, %c0_93, %c256_94], %63 {strides = array<i32>} : memref<18x16x384xf32, #tpu.memory_space<vmem>>, vector<18x16x128xf32>,
    %c0_95 = arith.constant 0 : index
    %c0_96 = arith.constant 0 : index
    %c0_97 = arith.constant 0 : index
    %65 = vector.load %arg12[%c0_95, %c0_96, %c0_97] : memref<18x16x384xf32, #tpu.memory_space<vmem>>, vector<16x16x384xf32>
    %66 = vector.shape_cast %65 : vector<16x16x384xf32> to vector<256x384xf32>
    %c0_98 = arith.constant 0 : index
    %c0_99 = arith.constant 0 : index
    %c0_100 = arith.constant 0 : index
    %67 = vector.load %arg6[%c0_98, %c0_99, %c0_100] : memref<3x384x128xf32, #tpu.memory_space<vmem>>, vector<1x384x128xf32>
    %68 = vector.shape_cast %67 : vector<1x384x128xf32> to vector<384x128xf32>
    %cst_101 = arith.constant dense<0.000000e+00> : vector<256x128xf32>
    %69 = tpu.matmul %66, %68, %cst_101 {dimension_numbers = #tpu.dot_dimension_numbers<[1], [0], [0], [1], [0, 0, 1, 1], [], []>} : vector<256x384xf32>, vector<384x128xf32>, vector<256x128xf32> -> vector<256x128xf32>
    %c1_102 = arith.constant 1 : index
    %c0_103 = arith.constant 0 : index
    %c0_104 = arith.constant 0 : index
    %70 = vector.load %arg12[%c1_102, %c0_103, %c0_104] : memref<18x16x384xf32, #tpu.memory_space<vmem>>, vector<16x16x384xf32>
    %71 = vector.shape_cast %70 : vector<16x16x384xf32> to vector<256x384xf32>
    %c1_105 = arith.constant 1 : index
    %c0_106 = arith.constant 0 : index
    %c0_107 = arith.constant 0 : index
    %72 = vector.load %arg6[%c1_105, %c0_106, %c0_107] : memref<3x384x128xf32, #tpu.memory_space<vmem>>, vector<1x384x128xf32>
    %73 = vector.shape_cast %72 : vector<1x384x128xf32> to vector<384x128xf32>
    %cst_108 = arith.constant dense<0.000000e+00> : vector<256x128xf32>
    %74 = tpu.matmul %71, %73, %cst_108 {dimension_numbers = #tpu.dot_dimension_numbers<[1], [0], [0], [1], [0, 0, 1, 1], [], []>} : vector<256x384xf32>, vector<384x128xf32>, vector<256x128xf32> -> vector<256x128xf32>
    %75 = arith.addf %69, %74 : vector<256x128xf32>
    %c2_109 = arith.constant 2 : index
    %c0_110 = arith.constant 0 : index
    %c0_111 = arith.constant 0 : index
    %76 = vector.load %arg12[%c2_109, %c0_110, %c0_111] : memref<18x16x384xf32, #tpu.memory_space<vmem>>, vector<16x16x384xf32>
    %77 = vector.shape_cast %76 : vector<16x16x384xf32> to vector<256x384xf32>
    %c2_112 = arith.constant 2 : index
    %c0_113 = arith.constant 0 : index
    %c0_114 = arith.constant 0 : index
    %78 = vector.load %arg6[%c2_112, %c0_113, %c0_114] : memref<3x384x128xf32, #tpu.memory_space<vmem>>, vector<1x384x128xf32>
    %79 = vector.shape_cast %78 : vector<1x384x128xf32> to vector<384x128xf32>
    %cst_115 = arith.constant dense<0.000000e+00> : vector<256x128xf32>
    %80 = tpu.matmul %77, %79, %cst_115 {dimension_numbers = #tpu.dot_dimension_numbers<[1], [0], [0], [1], [0, 0, 1, 1], [], []>} : vector<256x384xf32>, vector<384x128xf32>, vector<256x128xf32> -> vector<256x128xf32>
    %81 = arith.addf %75, %80 : vector<256x128xf32>
    %c0_116 = arith.constant 0 : index
    %c0_117 = arith.constant 0 : index
    %82 = vector.load %arg7[%c0_116, %c0_117] : memref<1x128xf32, #tpu.memory_space<vmem>>, vector<1x128xf32>
    %83 = vector.broadcast %82 : vector<1x128xf32> to vector<256x128xf32>
    %84 = arith.addf %81, %83 : vector<256x128xf32>
    %85 = vector.shape_cast %84 : vector<256x128xf32> to vector<16x16x128xf32>
    %c0_118 = arith.constant 0 : index
    %c0_119 = arith.constant 0 : index
    %c0_120 = arith.constant 0 : index
    %c0_121 = arith.constant 0 : index
    %86 = vector.load %arg2[%c0_118, %c0_119, %c0_120, %c0_121] : memref<1x16x16x128xf32, #tpu.memory_space<vmem>>, vector<1x16x16x128xf32>
    %87 = vector.shape_cast %86 : vector<1x16x16x128xf32> to vector<16x16x128xf32>
    %88 = arith.addf %85, %87 : vector<16x16x128xf32>
    %c0_122 = arith.constant 0 : index
    %c0_123 = arith.constant 0 : index
    %c0_124 = arith.constant 0 : index
    %c0_125 = arith.constant 0 : index
    %89 = vector.load %arg8[%c0_122, %c0_123, %c0_124, %c0_125] : memref<1x16x16x128xf32, #tpu.memory_space<vmem>>, vector<1x16x16x128xf32>
    %90 = vector.shape_cast %89 : vector<1x16x16x128xf32> to vector<16x16x128xf32>
    %91 = vector.shape_cast %88 : vector<16x16x128xf32> to vector<1x16x16x128xf32>
    tpu.vector_store %arg8[%c0_122, %c0_123, %c0_124, %c0_125], %91 {strides = array<i32>} : memref<1x16x16x128xf32, #tpu.memory_space<vmem>>, vector<1x16x16x128xf32>,
    return
  }
  func.func @transform_0(%arg0: i32, %arg1: i32) -> (i32, i32, i32, i32) {
    %c0_i32 = arith.constant 0 : i32
    %c0_i32_0 = arith.constant 0 : i32
    %c0_i32_1 = arith.constant 0 : i32
    return %arg0, %arg1, %c0_i32, %c0_i32_0 : i32, i32, i32, i32
  }
  func.func @transform_1(%arg0: i32, %arg1: i32) -> (i32, i32, i32, i32) {
    %c0_i32 = arith.constant 0 : i32
    %c0_i32_0 = arith.constant 0 : i32
    %c0_i32_1 = arith.constant 0 : i32
    return %arg0, %arg1, %c0_i32, %c0_i32_0 : i32, i32, i32, i32
  }
  func.func @transform_2(%arg0: i32, %arg1: i32) -> (i32, i32, i32) {
    %c0_i32 = arith.constant 0 : i32
    %c0_i32_0 = arith.constant 0 : i32
    %c0_i32_1 = arith.constant 0 : i32
    %c0_i32_2 = arith.constant 0 : i32
    return %c0_i32, %c0_i32_0, %c0_i32_1 : i32, i32, i32
  }
  func.func @transform_3(%arg0: i32, %arg1: i32) -> (i32, i32) {
    %c0_i32 = arith.constant 0 : i32
    %c0_i32_0 = arith.constant 0 : i32
    %c0_i32_1 = arith.constant 0 : i32
    return %c0_i32, %c0_i32_0 : i32, i32
  }
  func.func @transform_4(%arg0: i32, %arg1: i32) -> (i32, i32, i32) {
    %c0_i32 = arith.constant 0 : i32
    %c0_i32_0 = arith.constant 0 : i32
    %c0_i32_1 = arith.constant 0 : i32
    %c0_i32_2 = arith.constant 0 : i32
    return %c0_i32, %c0_i32_0, %c0_i32_1 : i32, i32, i32
  }
  func.func @transform_5(%arg0: i32, %arg1: i32) -> (i32, i32) {
    %c0_i32 = arith.constant 0 : i32
    %c0_i32_0 = arith.constant 0 : i32
    %c0_i32_1 = arith.constant 0 : i32
    return %c0_i32, %c0_i32_0 : i32, i32
  }
  func.func @transform_6(%arg0: i32, %arg1: i32) -> (i32, i32, i32, i32) {
    %c0_i32 = arith.constant 0 : i32
    %c0_i32_0 = arith.constant 0 : i32
    %c0_i32_1 = arith.constant 0 : i32
    return %arg0, %arg1, %c0_i32, %c0_i32_0 : i32, i32, i32, i32
  }
}

</mosaic_0001>

<bundles_post_ra>
// kernel: tpu_custom_call.1
= control target key start
LH: loop header
LB: loop body
LE: loop exit
PB: predicated region body
PF: predicated region fallthrough
CT: control target
= control target key end

     0   :  { %s9326_s0 = inlined_call_operand.hbm [shape: f32[2,16,16,128], index: 0, kind: input, shape index: {}]   ;;  %s9327_s1 = inlined_call_operand.hbm [shape: f32[2,4,16,128], index: 1, kind: input, shape index: {}]   ;;  %s9328_s2 = inlined_call_operand.hbm [shape: f32[3,384,128], index: 2, kind: input, shape index: {}]   ;;  %s9329_s3 = inlined_call_operand.vmem [shape: f32[1,128], index: 3, kind: input, shape index: {}]   ;;  %s9330_s4 = inlined_call_operand.hbm [shape: f32[3,384,128], index: 4, kind: input, shape index: {}]   ;;  %s9331_s5 = inlined_call_operand.vmem [shape: f32[1,128], index: 5, kind: input, shape index: {}]   ;;  %s9332_s6 = inlined_call_operand.hbm [shape: f32[2,16,16,128], index: 6, kind: output, shape index: {}]  }
   0x1   :  { %9428 = sst [smem:[#allocation59_spill]] %s9326_s0 }
   0x2   :  { %9429 = sst [smem:[#allocation60_spill]] %s9328_s2 }
   0x3   :  { %9430 = sst [smem:[#allocation61_spill]] %s9330_s4 }
   0x4   :  { %11 = vsyncpa [#allocation7], 0 }
   0x5   :  { %13 = vsyncpa [#allocation7 + $0x1], 0 }
   0x6   :  { %14 = vsyncpa [#allocation10], 0 }
   0x7   :  { %16 = vsyncpa [#allocation10 + $0x1], 0 }
   0x8   :  { %17 = vsyncpa [#allocation13], 0 }
   0x9   :  { %18 = vsyncpa [#allocation8], 0 }
   0xa   :  { %20 = vsyncpa [#allocation8 + $0x1], 0  ;;  %s7005_s21 = smov 0   ;;  %s7007_s22 = smov 0  }
   0xb   :  { %s7009_s23 = smov 0   ;;  %s7011_s24 = smov 0  }
   0xc   :  { %s7013_s25 = smov 0   ;;  %s7015_s26 = smov 0  }
   0xd LB: > { %9431 = sst [smem:[#allocation20_spill]] %s6945_s23  ;;  %s7036_s27 = sadd.s32 4294967295, %s6957_s26   ;;  %s6957_s26 = sphi %s7015_s26, %s26_s26   ;;  %s6953_s25 = sphi %s7013_s25, %s9597_s25   ;;  %s6949_s24 = sphi %s7011_s24, %s9596_s24   ;;  %s6945_s23 = sphi %s7009_s23, %s9592_s23   ;;  %s6941_s22 = sphi %s7007_s22, %s9595_s22   ;;  %s6937_s21 = sphi %s7005_s21, %s9594_s21  }
   0xe   : > { %s5230_s28 = sadd.s32 4294967294, %s6957_s26   ;;  %p60_p0 = scmp.ne.s32.totalorder %s6941_s22, %s6937_s21 }
   0xf   : > { %p9333_p1 = scmp.eq.s32.totalorder %s7036_s27, 0  ;;  %p204_p3 = scmp.eq.s32.totalorder %s5230_s28, 1 }
  0x10   : > { %p5231_p5 = scmp.ge.s32.totalorder %s6957_s26, 1  ;;  %p211_p7 = scmp.lt.s32.totalorder %s6957_s26, 3 }
  0x11   : > { %p7045_p4 = por %p9333_p1, %p60_p0  ;;  %p7050_p6 = por %p204_p3, %p60_p0 }
  0x12   : > { %p7055_p8 = pnand %p5231_p5, %p211_p7  ;;  %s6959_s8 = smov [#allocation11]  }
  0x13   : > { %s9432_s29 = scalar_select %p7045_p4, 1, 0 }
  0x14   : > { %s9433_s30 = scalar_select %p7050_p6, 1, 0 }
  0x15   : > { %s223_s9 = sshll.u32 %s6959_s8, 4  ;;  %p6553_p9 = pneg %p7055_p8  ;;  %s7059_s9 = int_to_ptr.vmem [resolvable:$true] %s223_s9 }
  0x16   : > { %s6960_s11 = smov [#allocation12]   ;;  %s9436_s2 = sld [smem:[#allocation60_spill]] }
  0x17   : > { %p7066_p11 = pnand %p6553_p9, %p9333_p1  ;;  %s239_s12 = sshll.u32 %s6960_s11, 4  ;;  %s7070_s12 = int_to_ptr.vmem [resolvable:$true] %s239_s12 }
  0x19   : > { %p6749_p13 = pneg %p7066_p11 }
  0x1c   : > { %s6747_s15 = scalar_lea.hbm %s9436_s2, 18432 }
  0x1d   : > { %p6748_p12 = scmp.ne.s32.totalorder %s9436_s2, %s6747_s15  ;;  %p6754_p5 = scmp.lt.u32.totalorder %s6747_s15, %s9436_s2 }
  0x1f   : > { %p6750_p0 = pnand %p6749_p13, %p6748_p12 }
  0x21   : > { %p6751_p3 = pneg %p6750_p0 }
  0x23   : > { %p6756_p7 = pnand %p6754_p5, %p6751_p3 }
  0x25   : > { %6759 = shalt.err (!%p6756_p7)
}
  0x26   : > { %s6760_s20 = scalar_lea.vmem %s7059_s9, 18432  ;;  %p6768_p2 = scmp.lt.s32.totalorder %s7059_s9, %s7059_s9 }
  0x27   : > { %p6761_p9 = scmp.ne.s32.totalorder %s7059_s9, %s6760_s20  ;;  %p6769_p12 = scmp.lt.s32.totalorder %s6760_s20, %s6760_s20 }
  0x29   : > { %p6763_p10 = pnand %p6761_p9, %p6749_p13  ;;  %p6770_p0 = por %p6769_p12, %p6768_p2 }
  0x2b   : > { %p6764_p1 = pneg %p6763_p10 }
  0x2d   : > { %p6771_p6 = pnand %p6770_p0, %p6764_p1 }
  0x2f   : > { %6774 = shalt.err (!%p6771_p6)
}
  0x30   : > { %s9334_s28 = smov 128   ;;  %s9336_s8 = smov 8  }
  0x31   : > { %6556 = dma.hbm_to_vmem [thread:$0]  (!%p7066_p11), %s9436_s2, 18432, %s7059_s9, [#allocation10], %s9334_s28, %s9334_s28, %s9336_s8  }
  0x32   : > { %s9437_s4 = sld [smem:[#allocation61_spill]] }
  0x38   : > { %s6775_s16 = scalar_lea.hbm %s9437_s4, 18432 }
  0x39   : > { %p6776_p1 = scmp.ne.s32.totalorder %s9437_s4, %s6775_s16  ;;  %p6782_p10 = scmp.lt.u32.totalorder %s6775_s16, %s9437_s4 }
  0x3b   : > { %p6778_p2 = pnand %p6776_p1, %p6749_p13 }
  0x3d   : > { %p6779_p6 = pneg %p6778_p2 }
  0x3f   : > { %p6784_p3 = pnand %p6782_p10, %p6779_p6 }
  0x41   : > { %6787 = shalt.err (!%p6784_p3)
}
  0x42   : > { %s6788_s9 = scalar_lea.vmem %s7070_s12, 18432  ;;  %p6796_p12 = scmp.lt.s32.totalorder %s7070_s12, %s7070_s12 }
  0x43   : > { %p6789_p5 = scmp.ne.s32.totalorder %s7070_s12, %s6788_s9  ;;  %p6797_p0 = scmp.lt.s32.totalorder %s6788_s9, %s6788_s9 }
  0x45   : > { %p6791_p7 = pnand %p6789_p5, %p6749_p13  ;;  %p6798_p1 = por %p6797_p0, %p6796_p12 }
  0x47   : > { %p6792_p9 = pneg %p6791_p7 }
  0x49   : > { %p6799_p2 = pnand %p6798_p1, %p6792_p9 }
  0x4b   : > { %6802 = shalt.err (!%p6799_p2)
}
  0x4c   : > { %6559 = dma.hbm_to_vmem [thread:$0]  (!%p7066_p11), %s9437_s4, 18432, %s7070_s12, [#allocation13], %s9334_s28, %s9334_s28, %s9336_s8  }
  0x4d   : > { %s38_s10 = sadd.s32 1, %s6953_s25  ;;  %s47_s14 = sadd.s32 1, %s6945_s23 }
  0x4e   : > { %p40_p13 = scmp.ge.s32.totalorder %s38_s10, 2  ;;  %p54_p6 = scmp.ne.s32.totalorder %s6945_s23, %s6941_s22 }
  0x4f   : > { %p55_p10 = scmp.eq.s32.totalorder %s6957_s26, 0  ;;  %p6573_p3 = scmp.lt.s32.totalorder %s6957_s26, 2 }
  0x50   : > { %s9599_s10 = smov (%p40_p13, %s38_s10), 0  ;;  %p9439_p7 = scmp.eq.s32.totalorder %s7036_s27, 1 }
  0x51   : > { %9438 = sst [smem:[#allocation21_spill]] %s9599_s10  ;;  %p56_p5 = por %p55_p10, %p54_p6 }
  0x52   : > { %p7140_p9 = por %p9439_p7, %p54_p6  ;;  %s42_s16 = ssub.s32 %s6953_s25, %s9599_s10 }
  0x53   : > { %s7147_s17 = sand.u32 1, %s6945_s23   ;;  %p45_p11 = scmp.eq.s32.totalorder %s42_s16, 0 }
  0x54   : > { %s9440_s15 = scalar_select %p7140_p9, 1, 0 }
  0x55   : > { %s5235_s12 = sshll.u32 %s7147_s17, 8  ;;  %s5258_s18 = sshll.u32 %s6953_s25, 12 }
  0x56   : > { %s7152_s19 = scalar_select %p45_p11, %s6945_s23, %s47_s14  }
  0x57   : > { %s9442_s0 = sld [smem:[#allocation59_spill]]  ;;  %s260_s13 = scalar_lea.vmem [#allocation6], %s5235_s12 }
  0x58   : > { %9441 = sst [smem:[#allocation22_spill]] %s7152_s19  ;;  %s270_s28 = sshll.u32 %s260_s13, 4  ;;  %s7165_s28 = int_to_ptr.vmem [resolvable:$true] %s270_s28 }
  0x59   : > { %p7161_p12 = pnand %p6573_p3, %p56_p5  ;;  %s257_s16 = scalar_lea.sflag [#allocation7], %s7147_s17 }
  0x5b   : > { %p6805_p1 = pneg %p7161_p12 }
  0x5d   : > { %s7157_s11 = scalar_lea.hbm %s9442_s0, %s5258_s18  ;;  %s6808_s9 = scalar_lea.hbm %s9442_s0, 8192 }
  0x5e   : > { %s6803_s20 = scalar_lea.hbm %s7157_s11, 4096  ;;  %p6809_p6 = scmp.lt.u32.totalorder %s7157_s11, %s9442_s0 }
  0x5f   : > { %p6804_p0 = scmp.ne.s32.totalorder %s7157_s11, %s6803_s20  ;;  %p6810_p10 = scmp.lt.u32.totalorder %s6808_s9, %s6803_s20 }
  0x60   : > { %p6812_p5 = scmp.lt.u32.totalorder %s6803_s20, %s7157_s11 }
  0x61   : > { %p6806_p2 = pnand %p6805_p1, %p6804_p0  ;;  %p6811_p3 = por %p6810_p10, %p6809_p6 }
  0x63   : > { %p6807_p13 = pneg %p6806_p2  ;;  %p6813_p7 = por %p6812_p5, %p6811_p3 }
  0x65   : > { %p6814_p11 = pnand %p6813_p7, %p6807_p13 }
  0x67   : > { %6817 = shalt.err (!%p6814_p11)
}
  0x68   : > { %s6818_s14 = scalar_lea.vmem %s7165_s28, 4096  ;;  %s6963_s12 = smov [#allocation6]  }
  0x69   : > { %p6819_p0 = scmp.ne.s32.totalorder %s7165_s28, %s6818_s14  ;;  %s6823_s18 = sshll.u32 %s6963_s12, 4  ;;  %s6824_s18 = int_to_ptr.vmem [resolvable:$false] %s6823_s18 }
  0x6a   : > { %s6825_s2 = scalar_lea.vmem %s6824_s18, 8192  ;;  %p6826_p4 = scmp.lt.s32.totalorder %s7165_s28, %s6824_s18 }
  0x6b   : > { %p6821_p2 = pnand %p6819_p0, %p6805_p1  ;;  %p6827_p6 = scmp.lt.s32.totalorder %s6825_s2, %s6818_s14 }
  0x6d   : > { %p6822_p9 = pneg %p6821_p2  ;;  %p6828_p10 = por %p6827_p6, %p6826_p4 }
  0x6f   : > { %p6829_p3 = pnand %p6828_p10, %p6822_p9 }
  0x71   : > { %6832 = shalt.err (!%p6829_p3)
}
  0x72   : > { %s9444_s20 = smov 8   ;;  %s9445_s9 = smov 128  }
  0x73   : > { %6563 = dma.hbm_to_vmem [thread:$0]  (!%p7161_p12), %s7157_s11, 4096, %s7165_s28, %s257_s16, %s9445_s9, %s9445_s9, %s9444_s20  }
  0x74   : > { %s5238_s13 = sshll.u32 %s7147_s17, 6  ;;  %s5259_s12 = sshll.u32 %s6953_s25, 10 }
  0x75   : > { %s7204_s2 = scalar_lea.hbm %s9327_s1, %s5259_s12  ;;  %s284_s0 = scalar_lea.vmem [#allocation9], %s5238_s13 }
  0x76   : > { %s294_s4 = sshll.u32 %s284_s0, 4  ;;  %s9446_s10 = sand.u32 1, %s6957_s26   ;;  %s7206_s4 = int_to_ptr.vmem [resolvable:$true] %s294_s4 }
  0x77   : > { %s7210_s19 = scalar_lea.sflag [#allocation10], %s9446_s10  ;;  %s6833_s23 = scalar_lea.hbm %s7204_s2, 1024 }
  0x78   : > { %p6834_p4 = scmp.ne.s32.totalorder %s7204_s2, %s6833_s23  ;;  %s6838_s11 = scalar_lea.hbm %s9327_s1, 2048 }
  0x79   : > { %p6839_p5 = scmp.lt.u32.totalorder %s7204_s2, %s9327_s1  ;;  %p6840_p7 = scmp.lt.u32.totalorder %s6838_s11, %s6833_s23 }
  0x7a   : > { %p6836_p9 = pnand %p6834_p4, %p6805_p1  ;;  %p6842_p0 = scmp.lt.u32.totalorder %s6833_s23, %s7204_s2 }
  0x7b   : > { %p6841_p11 = por %p6840_p7, %p6839_p5 }
  0x7c   : > { %p6837_p13 = pneg %p6836_p9 }
  0x7d   : > { %p6843_p2 = por %p6842_p0, %p6841_p11 }
  0x7f   : > { %p6844_p6 = pnand %p6843_p2, %p6837_p13 }
  0x81   : > { %6847 = shalt.err (!%p6844_p6)
}
  0x82   : > { %s6848_s0 = scalar_lea.vmem %s7206_s4, 1024  ;;  %s6964_s10 = smov [#allocation9]  }
  0x83   : > { %p6849_p10 = scmp.ne.s32.totalorder %s7206_s4, %s6848_s0  ;;  %s6853_s13 = sshll.u32 %s6964_s10, 4  ;;  %s6854_s13 = int_to_ptr.vmem [resolvable:$false] %s6853_s13 }
  0x84   : > { %s6855_s14 = scalar_lea.vmem %s6854_s13, 2048  ;;  %p6856_p9 = scmp.lt.s32.totalorder %s7206_s4, %s6854_s13 }
  0x85   : > { %p6851_p3 = pnand %p6849_p10, %p6805_p1  ;;  %p6857_p5 = scmp.lt.s32.totalorder %s6855_s14, %s6848_s0 }
  0x87   : > { %p6852_p4 = pneg %p6851_p3  ;;  %p6858_p7 = por %p6857_p5, %p6856_p9 }
  0x89   : > { %p6859_p11 = pnand %p6858_p7, %p6852_p4 }
  0x8b   : > { %6862 = shalt.err (!%p6859_p11)
}
  0x8c   : > { %6566 = dma.hbm_to_vmem [thread:$0]  (!%p7161_p12), %s7204_s2, 1024, %s7206_s4, %s7210_s19, %s9445_s9, %s9445_s9, %s9444_s20  }
  0x8d   : > { %306 = sbr.rel (%p7055_p8) target bundleno = 1244 (0x4dc), region = 44 }
  0x94   : > { %s7242_s23 = sand.u32 1, %s6941_s22   ;;  %p9447_p1 = scmp.ne.s32.totalorder %s9432_s29, 0 }
  0x95   : > { %s5242_s18 = sshll.u32 %s7242_s23, 8  ;;  %s309_s28 = scalar_lea.sflag [#allocation7], %s7242_s23 }
  0x96   : > { %s7248_s8 = scalar_lea.vmem [#allocation6], %s5242_s18 }
  0x97   : > { %6916 = dma.done.wait (%p9447_p1), %s309_s28, 4096  }
  0x98   : > { %6918 = vsyncadd (%p9447_p1), %s309_s28, 4294963200  ;;  %s317_s4 = sand.u32 1, %s7036_s27   ;;  %s5243_s7 = sshll.u32 %s7242_s23, 6 }
  0x99   : > { %s318_s19 = scalar_lea.sflag [#allocation10], %s317_s4  ;;  %s7256_s20 = scalar_lea.vmem [#allocation9], %s5243_s7 }
  0x9a   : > { %6920 = dma.done.wait (%p9447_p1), %s318_s19, 1024  }
  0x9b   : > { %6922 = vsyncadd (%p9447_p1), %s318_s19, 4294966272  ;;  %p9448_p8 = scmp.eq.s32.totalorder %s7036_s27, 0 }
  0x9d   : > { %6924 = dma.done.wait (%p9448_p8), [#allocation10], 18432   ;;  %p9449_p12 = pmov %p9448_p8 }
  0x9e   : > { %p9450_p13 = pmov %p9448_p8 }
  0x9f   : > { %6926 = vsyncadd (%p9449_p12), [#allocation10], 4294948864 }
  0xa0   : > { %6928 = dma.done.wait (%p9450_p13), [#allocation13], 18432   ;;  %p9451_p0 = pmov %p9448_p8 }
  0xa1   : > { %v9348_v0 = vmov 0.0|0.0   ;;  %v6966_v1 = vmov 0.0   ;;  %v1035_v2 = vld [vmem:[#allocation11 + $0x180] sm:$0xff]  ;;  %v1036_v3 = vld [vmem:[#allocation11 + $0x188] sm:$0xff]  ;;  %v1037_v7 = vld [vmem:[#allocation11 + $0x190] sm:$0xff]  ;;  %s9141_s17 = scalar_lea.vmem [#allocation14], %s5242_s18 }
  0xa2   : > { %6930 = vsyncadd (%p9451_p0), [#allocation13], 4294948864  ;;  %6059 = vmatprep.subr.bf16.mxu0 %v9348_v0  ;;  %510 = vst [vmem:[#allocation2 + $0x38] sm:$0x1] %v6966_v1  ;;  %v1067_v4 = vld [vmem:[#allocation11 + $0x280] sm:$0xff]  ;;  %v6060_v5 = vpack.c.bf16 %v1036_v3, %v1035_v2  ;;  %v1068_v6 = vld [vmem:[#allocation11 + $0x288] sm:$0xff] }
  0xa3   : > { %489 = vst [vmem:[#allocation2 + $0x7] sm:$0x1] %v6966_v1  ;;  %490 = vst [vmem:[#allocation2 + $0x27] sm:$0x1] %v6966_v1  ;;  %v1038_v8 = vld [vmem:[#allocation11 + $0x198] sm:$0xff]  ;;  %v6107_v9 = vpack.c.bf16 %v1068_v6, %v1067_v4  ;;  %v1069_v10 = vld [vmem:[#allocation11 + $0x290] sm:$0xff] }
  0xa4   : > { %491 = vst [vmem:[#allocation2 + $0x47] sm:$0x1] %v6966_v1  ;;  %492 = vst [vmem:[#allocation2 + $0x67] sm:$0x1] %v6966_v1  ;;  %v1070_v11 = vld [vmem:[#allocation11 + $0x298] sm:$0xff]  ;;  %6061 = vmatpush1.bf16.msra.mxu0 %v6060_v5  ;;  %v6063_v12 = vpack.c.bf16 %v1038_v8, %v1037_v7  ;;  %v1071_v14 = vld [vmem:[#allocation11 + $0x2a0] sm:$0xff] }
  0xa5   : > { %493 = vst [vmem:[#allocation2 + $0x87] sm:$0x1] %v6966_v1  ;;  %494 = vst [vmem:[#allocation2 + $0xa7] sm:$0x1] %v6966_v1  ;;  %v6111_v13 = vpack.c.bf16 %v1070_v11, %v1069_v10  ;;  %v1072_v15 = vld [vmem:[#allocation11 + $0x2a8] sm:$0xff]  ;;  %6108 = vmatprep.subr.bf16.mxu1 %v6107_v9  ;;  %6062 = vmatprep.subr.bf16.mxu0 %v9348_v0  ;;  %v1039_v16 = vld [vmem:[#allocation11 + $0x1a0] sm:$0xff] }
  0xa6   : > { %495 = vst [vmem:[#allocation2 + $0xc7] sm:$0x1] %v6966_v1  ;;  %496 = vst [vmem:[#allocation2 + $0xe7] sm:$0x1] %v6966_v1  ;;  %v1040_v17 = vld [vmem:[#allocation11 + $0x1a8] sm:$0xff]  ;;  %6110 = vmatpush3.bf16.msra.mxu1 %v6107_v9  ;;  %v6115_v18 = vpack.c.bf16 %v1072_v15, %v1071_v14  ;;  %v1073_v20 = vld [vmem:[#allocation11 + $0x2b0] sm:$0xff] }
  0xa7   : > { %497 = vst [vmem:[#allocation2 + $0x107] sm:$0x1] %v6966_v1  ;;  %498 = vst [vmem:[#allocation2 + $0x127] sm:$0x1] %v6966_v1  ;;  %6112 = vmatprep.subr.bf16.mxu1 %v6111_v13  ;;  %v6066_v19 = vpack.c.bf16 %v1040_v17, %v1039_v16  ;;  %v1074_v21 = vld [vmem:[#allocation11 + $0x2b8] sm:$0xff]  ;;  %v1041_v22 = vld [vmem:[#allocation11 + $0x1b0] sm:$0xff] }
  0xa8   : > { %499 = vst [vmem:[#allocation2 + $0x147] sm:$0x1] %v6966_v1  ;;  %500 = vst [vmem:[#allocation2 + $0x167] sm:$0x1] %v6966_v1  ;;  %6064 = vmatpush1.bf16.msra.mxu0 %v6063_v12  ;;  %v1042_v23 = vld [vmem:[#allocation11 + $0x1b8] sm:$0xff]  ;;  %v6119_v24 = vpack.c.bf16 %v1074_v21, %v1073_v20  ;;  %v1043_v25 = vld [vmem:[#allocation11 + $0x1c0] sm:$0xff] }
  0xa9   : > { %501 = vst [vmem:[#allocation2 + $0x187] sm:$0x1] %v6966_v1  ;;  %502 = vst [vmem:[#allocation2 + $0x1a7] sm:$0x1] %v6966_v1  ;;  %6065 = vmatprep.subr.bf16.mxu0 %v9348_v0  ;;  %v368_v26 = vld [vmem:[%s7256_s20 + $0x10] sm:$0xff]  ;;  %v6069_v27 = vpack.c.bf16 %v1042_v23, %v1041_v22  ;;  %v1075_v28 = vld [vmem:[#allocation11 + $0x2c0] sm:$0xff] }
  0xaa   : > { %503 = vst [vmem:[#allocation2 + $0x1c7] sm:$0x1] %v6966_v1  ;;  %504 = vst [vmem:[#allocation2 + $0x1e7] sm:$0x1] %v6966_v1  ;;  %6114 = vmatpush3.bf16.msra.mxu1 %v6111_v13  ;;  %v1076_v29 = vld [vmem:[#allocation11 + $0x2c8] sm:$0xff]  ;;  %v369_v30 = vld [vmem:[%s7256_s20 + $0x18] sm:$0xff] }
  0xab   : > { %505 = vst [vmem:[#allocation2 + $0x207] sm:$0x1] %v6966_v1  ;;  %506 = vst [vmem:[#allocation2 + $0x227] sm:$0x1] %v6966_v1  ;;  %6116 = vmatprep.subr.bf16.mxu1 %v6115_v18  ;;  %v7359_v31 = vmax.f32 %v368_v26, 0.0  ;;  %v1044_v32 = vld [vmem:[#allocation11 + $0x1c8] sm:$0xff]  ;;  %v6123_v40 = vpack.c.bf16 %v1076_v29, %v1075_v28 }
  0xac   : > { %507 = vst [vmem:[#allocation2 + $0x247] sm:$0x1] %v6966_v1  ;;  %508 = vst [vmem:[#allocation2 + $0x267] sm:$0x1] %v6966_v1  ;;  %6067 = vmatpush1.bf16.msra.mxu0 %v6066_v19  ;;  %v7362_v33 = vmax.f32 %v369_v30, 0.0  ;;  %v378_v34 = vld [vmem:[%s7248_s8] sm:$0xff]  ;;  %v6072_v44 = vpack.c.bf16 %v1044_v32, %v1043_v25 }
  0xad   : > { %509 = vst [vmem:[#allocation2 + $0x18] sm:$0x1] %v6966_v1  ;;  %511 = vst [vmem:[#allocation2 + $0x58] sm:$0x1] %v6966_v1  ;;  %6068 = vmatprep.subr.bf16.mxu0 %v9348_v0  ;;  %v379_v35 = vld [vmem:[%s7248_s8 + $0x8] sm:$0xff]  ;;  %v7367_v36 = vmax.f32 %v378_v34, 0.0  ;;  %1147 = vmatprep.mubr.f32.mxu0 %v7359_v31 }
  0xae   : > { %512 = vst [vmem:[#allocation2 + $0x78] sm:$0x1] %v6966_v1  ;;  %513 = vst [vmem:[#allocation2 + $0x98] sm:$0x1] %v6966_v1  ;;  %6118 = vmatpush3.bf16.msra.mxu1 %v6115_v18  ;;  %v7369_v37 = vmax.f32 %v379_v35, 0.0  ;;  %v380_v38 = vld [vmem:[%s7248_s8 + $0x10] sm:$0xff] }
  0xaf   : > { %514 = vst [vmem:[#allocation2 + $0xb8] sm:$0x1] %v6966_v1  ;;  %515 = vst [vmem:[#allocation2 + $0xd8] sm:$0x1] %v6966_v1  ;;  %v381_v39 = vld [vmem:[%s7248_s8 + $0x18] sm:$0xff]  ;;  %6120 = vmatprep.subr.bf16.mxu1 %v6119_v24  ;;  %v1077_v41 = vld [vmem:[#allocation11 + $0x2d0] sm:$0xff] }
  0xb0   : > { %516 = vst [vmem:[#allocation2 + $0xf8] sm:$0x1] %v6966_v1  ;;  %517 = vst [vmem:[#allocation2 + $0x118] sm:$0x1] %v6966_v1  ;;  %v7375_v42 = vmax.f32 %v380_v38, 0.0  ;;  %v7377_v43 = vmax.f32 %v381_v39, 0.0  ;;  %6070 = vmatpush1.bf16.msra.mxu0 %v6069_v27 }
  0xb1   : > { %518 = vst [vmem:[#allocation2 + $0x138] sm:$0x1] %v6966_v1  ;;  %519 = vst [vmem:[#allocation2 + $0x158] sm:$0x1] %v6966_v1  ;;  %v1078_v45 = vld [vmem:[#allocation11 + $0x2d8] sm:$0xff]  ;;  %v382_v46 = vld [vmem:[%s7248_s8 + $0x20] sm:$0xff]  ;;  %6071 = vmatprep.subr.bf16.mxu0 %v9348_v0 }
  0xb2   : > { %520 = vst [vmem:[#allocation2 + $0x178] sm:$0x1] %v6966_v1  ;;  %521 = vst [vmem:[#allocation2 + $0x198] sm:$0x1] %v6966_v1  ;;  %v383_v47 = vld [vmem:[%s7248_s8 + $0x28] sm:$0xff]  ;;  %v1045_v48 = vld [vmem:[#allocation11 + $0x1d0] sm:$0xff]  ;;  %6122 = vmatpush3.bf16.msra.mxu1 %v6119_v24  ;;  %v6127_v54 = vpack.c.bf16 %v1078_v45, %v1077_v41 }
  0xb3   : > { %522 = vst [vmem:[#allocation2 + $0x1b8] sm:$0x1] %v6966_v1  ;;  %523 = vst [vmem:[#allocation2 + $0x1d8] sm:$0x1] %v6966_v1  ;;  %v1046_v49 = vld [vmem:[#allocation11 + $0x1d8] sm:$0xff]  ;;  %v7386_v50 = vmax.f32 %v382_v46, 0.0  ;;  %6124 = vmatprep.subr.bf16.mxu1 %v6123_v40 }
  0xb4   : > { %524 = vst [vmem:[#allocation2 + $0x1f8] sm:$0x1] %v6966_v1  ;;  %525 = vst [vmem:[#allocation2 + $0x218] sm:$0x1] %v6966_v1  ;;  %v7388_v51 = vmax.f32 %v383_v47, 0.0  ;;  %v384_v52 = vld [vmem:[%s7248_s8 + $0x30] sm:$0xff]  ;;  %6073 = vmatpush1.bf16.msra.mxu0 %v6072_v44  ;;  %v6075_v58 = vpack.c.bf16 %v1046_v49, %v1045_v48 }
  0xb5   : > { %526 = vst [vmem:[#allocation2 + $0x238] sm:$0x1] %v6966_v1  ;;  %527 = vst [vmem:[#allocation2 + $0x258] sm:$0x1] %v6966_v1  ;;  %v385_v53 = vld [vmem:[%s7248_s8 + $0x38] sm:$0xff]  ;;  %v1079_v55 = vld [vmem:[#allocation11 + $0x2e0] sm:$0xff]  ;;  %6074 = vmatprep.subr.bf16.mxu0 %v9348_v0 }
  0xb6   : > { %528 = vst [vmem:[#allocation2 + $0x278] sm:$0x1] %v6966_v1  ;;  %2862 = vst [vmem:[#allocation4 + $0x7] sm:$0x1] %v6966_v1  ;;  %v7394_v56 = vmax.f32 %v384_v52, 0.0  ;;  %v7396_v57 = vmax.f32 %v385_v53, 0.0  ;;  %6126 = vmatpush3.bf16.msra.mxu1 %v6123_v40 }
  0xb7   : > { %2863 = vst [vmem:[#allocation4 + $0x27] sm:$0x1] %v6966_v1  ;;  %2864 = vst [vmem:[#allocation4 + $0x47] sm:$0x1] %v6966_v1  ;;  %v1080_v59 = vld [vmem:[#allocation11 + $0x2e8] sm:$0xff]  ;;  %v386_v60 = vld [vmem:[%s7248_s8 + $0x40] sm:$0xff]  ;;  %6128 = vmatprep.subr.bf16.mxu1 %v6127_v54 }
  0xb8   : > { %2865 = vst [vmem:[#allocation4 + $0x67] sm:$0x1] %v6966_v1  ;;  %2866 = vst [vmem:[#allocation4 + $0x87] sm:$0x1] %v6966_v1  ;;  %v387_v61 = vld [vmem:[%s7248_s8 + $0x48] sm:$0xff]  ;;  %v1047_v62 = vld [vmem:[#allocation11 + $0x1e0] sm:$0xff]  ;;  %v6131_v4 = vpack.c.bf16 %v1080_v59, %v1079_v55  ;;  %6076 = vmatpush1.bf16.msra.mxu0 %v6075_v58 }
  0xb9   : > { %2867 = vst [vmem:[#allocation4 + $0xa7] sm:$0x1] %v6966_v1  ;;  %2868 = vst [vmem:[#allocation4 + $0xc7] sm:$0x1] %v6966_v1  ;;  %v1048_v63 = vld [vmem:[#allocation11 + $0x1e8] sm:$0xff]  ;;  %v7405_v2 = vmax.f32 %v387_v61, 0.0  ;;  %6077 = vmatprep.subr.bf16.mxu0 %v9348_v0 }
  0xba   : > { %2869 = vst [vmem:[#allocation4 + $0xe7] sm:$0x1] %v6966_v1  ;;  %2870 = vst [vmem:[#allocation4 + $0x107] sm:$0x1] %v6966_v1  ;;  %v388_v5 = vld [vmem:[%s7248_s8 + $0x50] sm:$0xff]  ;;  %v6078_v6 = vpack.c.bf16 %v1048_v63, %v1047_v62  ;;  %v1082_v8 = vld [vmem:[#allocation11 + $0x2f8] sm:$0xff]  ;;  %6130 = vmatpush3.bf16.msra.mxu1 %v6127_v54 }
  0xbb   : > { %2871 = vst [vmem:[#allocation4 + $0x127] sm:$0x1] %v6966_v1  ;;  %2872 = vst [vmem:[#allocation4 + $0x147] sm:$0x1] %v6966_v1  ;;  %v1081_v7 = vld [vmem:[#allocation11 + $0x2f0] sm:$0xff]  ;;  %v389_v9 = vld [vmem:[%s7248_s8 + $0x58] sm:$0xff]  ;;  %6132 = vmatprep.subr.bf16.mxu1 %v6131_v4 }
  0xbc   : > { %2873 = vst [vmem:[#allocation4 + $0x167] sm:$0x1] %v6966_v1  ;;  %2874 = vst [vmem:[#allocation4 + $0x187] sm:$0x1] %v6966_v1  ;;  %v7411_v10 = vmax.f32 %v388_v5, 0.0  ;;  %v1049_v11 = vld [vmem:[#allocation11 + $0x1f0] sm:$0xff]  ;;  %v6135_v14 = vpack.c.bf16 %v1082_v8, %v1081_v7  ;;  %6079 = vmatpush1.bf16.msra.mxu0 %v6078_v6 }
  0xbd   : > { %2875 = vst [vmem:[#allocation4 + $0x1a7] sm:$0x1] %v6966_v1  ;;  %2876 = vst [vmem:[#allocation4 + $0x1c7] sm:$0x1] %v6966_v1  ;;  %v1050_v12 = vld [vmem:[#allocation11 + $0x1f8] sm:$0xff]  ;;  %v7414_v13 = vmax.f32 %v389_v9, 0.0  ;;  %6080 = vmatprep.subr.bf16.mxu0 %v9348_v0 }
  0xbe   : > { %2877 = vst [vmem:[#allocation4 + $0x1e7] sm:$0x1] %v6966_v1  ;;  %2878 = vst [vmem:[#allocation4 + $0x207] sm:$0x1] %v6966_v1  ;;  %v390_v15 = vld [vmem:[%s7248_s8 + $0x60] sm:$0xff]  ;;  %v391_v16 = vld [vmem:[%s7248_s8 + $0x68] sm:$0xff]  ;;  %v6081_v17 = vpack.c.bf16 %v1050_v12, %v1049_v11  ;;  %6134 = vmatpush3.bf16.msra.mxu1 %v6131_v4 }
  0xbf   : > { %2879 = vst [vmem:[#allocation4 + $0x227] sm:$0x1] %v6966_v1  ;;  %2880 = vst [vmem:[#allocation4 + $0x18] sm:$0x1] %v6966_v1  ;;  %v7420_v18 = vmax.f32 %v390_v15, 0.0  ;;  %v7422_v19 = vmax.f32 %v391_v16, 0.0  ;;  %6136 = vmatprep.subr.bf16.mxu1 %v6135_v14 }
  0xc0   : > { %2881 = vst [vmem:[#allocation4 + $0x38] sm:$0x1] %v6966_v1  ;;  %2882 = vst [vmem:[#allocation4 + $0x58] sm:$0x1] %v6966_v1  ;;  %v1051_v20 = vld [vmem:[#allocation11 + $0x200] sm:$0xff]  ;;  %v1052_v21 = vld [vmem:[#allocation11 + $0x208] sm:$0xff]  ;;  %6082 = vmatpush1.bf16.msra.mxu0 %v6081_v17 }
  0xc1   : > { %2883 = vst [vmem:[#allocation4 + $0x78] sm:$0x1] %v6966_v1  ;;  %2884 = vst [vmem:[#allocation4 + $0x98] sm:$0x1] %v6966_v1  ;;  %v392_v22 = vld [vmem:[%s7248_s8 + $0x70] sm:$0xff]  ;;  %v877_v23 = vld [vmem:[#allocation11] sm:$0xff]  ;;  %v6084_v27 = vpack.c.bf16 %v1052_v21, %v1051_v20  ;;  %6083 = vmatprep.subr.bf16.mxu0 %v9348_v0 }
  0xc2   : > { %2885 = vst [vmem:[#allocation4 + $0xb8] sm:$0x1] %v6966_v1  ;;  %2886 = vst [vmem:[#allocation4 + $0xd8] sm:$0x1] %v6966_v1  ;;  %v878_v24 = vld [vmem:[#allocation11 + $0x8] sm:$0xff]  ;;  %v393_v25 = vld [vmem:[%s7248_s8 + $0x78] sm:$0xff]  ;;  %6138 = vmatpush3.bf16.msra.mxu1 %v6135_v14 }
  0xc3   : > { %2887 = vst [vmem:[#allocation4 + $0xf8] sm:$0x1] %v6966_v1  ;;  %2888 = vst [vmem:[#allocation4 + $0x118] sm:$0x1] %v6966_v1  ;;  %v7429_v26 = vmax.f32 %v392_v22, 0.0  ;;  %v1053_v28 = vld [vmem:[#allocation11 + $0x210] sm:$0xff]  ;;  %v6140_v38 = vpack.c.bf16 %v878_v24, %v877_v23  ;;  %6139 = vmatprep.subr.bf16.mxu1 %v9348_v0 }
  0xc4   : > { %2889 = vst [vmem:[#allocation4 + $0x138] sm:$0x1] %v6966_v1  ;;  %2890 = vst [vmem:[#allocation4 + $0x158] sm:$0x1] %v6966_v1  ;;  %v7431_v29 = vmax.f32 %v393_v25, 0.0  ;;  %v1054_v30 = vld [vmem:[#allocation11 + $0x218] sm:$0xff]  ;;  %6085 = vmatpush1.bf16.msra.mxu0 %v6084_v27 }
  0xc5   : > { %2891 = vst [vmem:[#allocation4 + $0x178] sm:$0x1] %v6966_v1  ;;  %2892 = vst [vmem:[#allocation4 + $0x198] sm:$0x1] %v6966_v1  ;;  %v394_v32 = vld [vmem:[%s7248_s8 + $0x80] sm:$0xff]  ;;  %v395_v34 = vld [vmem:[%s7248_s8 + $0x88] sm:$0xff]  ;;  %v6087_v48 = vpack.c.bf16 %v1054_v30, %v1053_v28  ;;  %6086 = vmatprep.subr.bf16.mxu0 %v9348_v0 }
  0xc6   : > { %2893 = vst [vmem:[#allocation4 + $0x1b8] sm:$0x1] %v6966_v1  ;;  %2894 = vst [vmem:[#allocation4 + $0x1d8] sm:$0x1] %v6966_v1  ;;  %v879_v39 = vld [vmem:[#allocation11 + $0x10] sm:$0xff]  ;;  %v880_v40 = vld [vmem:[#allocation11 + $0x18] sm:$0xff] }
  0xc7   : > { %2895 = vst [vmem:[#allocation4 + $0x1f8] sm:$0x1] %v6966_v1  ;;  %2896 = vst [vmem:[#allocation4 + $0x218] sm:$0x1] %v6966_v1  ;;  %v7438_v41 = vmax.f32 %v394_v32, 0.0  ;;  %v7440_v44 = vmax.f32 %v395_v34, 0.0 }
  0xc8   : > { %2897 = vst [vmem:[#allocation4 + $0x238] sm:$0x1] %v6966_v1  ;;  %2904 = vst [vmem:[#allocation4 + $0x10] sm:$0xff] %v6966_v1  ;;  %v396_v46 = vld [vmem:[%s7248_s8 + $0x90] sm:$0xff]  ;;  %v397_v47 = vld [vmem:[%s7248_s8 + $0x98] sm:$0xff]  ;;  %6088 = vmatpush1.bf16.msra.mxu0 %v6087_v48  ;;  %s5260_s11 = sshll.u32 %s6949_s24, 12 }
  0xc9   : > { %2903 = vst [vmem:[#allocation4 + $0x8] sm:$0xff] %v6966_v1  ;;  %2908 = vst [vmem:[#allocation4 + $0x228] sm:$0xff] %v6966_v1  ;;  %v1055_v49 = vld [vmem:[#allocation11 + $0x220] sm:$0xff]  ;;  %v7447_v52 = vmax.f32 %v396_v46, 0.0  ;;  %v7449_v53 = vmax.f32 %v397_v47, 0.0  ;;  %v1056_v54 = vld [vmem:[#allocation11 + $0x228] sm:$0xff]  ;;  %6089 = vmatprep.subr.bf16.mxu0 %v9348_v0  ;;  %s9274_s10 = scalar_lea.hbm %s9332_s6, %s5260_s11 }
  0xca   : > { %2909 = vst [vmem:[#allocation4 + $0x230] sm:$0xff] %v6966_v1  ;;  %2902 = vst [vmem:[#allocation4] sm:$0xff] %v6966_v1  ;;  %v881_v55 = vld [vmem:[#allocation11 + $0x20] sm:$0xff]  ;;  %v882_v61 = vld [vmem:[#allocation11 + $0x28] sm:$0xff]  ;;  %v6090_v7 = vpack.c.bf16 %v1056_v54, %v1055_v49  ;;  %s5097_s16 = sshll.u32 %s9141_s17, 4  ;;  %s5081_s13 = scalar_lea.sflag [#allocation8], %s7242_s23  ;;  %s9276_s16 = int_to_ptr.vmem [resolvable:$true] %s5097_s16 }
  0xcb   : > { %2905 = vst [vmem:[#allocation4 + $0x18] sm:$0xff] %v6966_v1  ;;  %2907 = vst [vmem:[#allocation4 + $0x220] sm:$0xff] %v6966_v1  ;;  %v398_v58 = vld [vmem:[%s7248_s8 + $0xa0] sm:$0xff]  ;;  %v399_v62 = vld [vmem:[%s7248_s8 + $0xa8] sm:$0xff]  ;;  %v6146_v15 = vpack.c.bf16 %v882_v61, %v881_v55  ;;  %s6863_s14 = scalar_lea.vmem %s9276_s16, 4096  ;;  %p9588_p6 = scmp.ne.s32.totalorder %s9440_s15, 0 }
  0xcc   : > { %2910 = vst [vmem:[#allocation4 + $0x238] sm:$0xff] %v6966_v1  ;;  %376 = vst [vmem:[#allocation2 + $0x28] sm:$0xff] %v7359_v31  ;;  %v7403_v1 = vmax.f32 %v386_v60, 0.0  ;;  %v6143_v60 = vpack.c.bf16 %v880_v40, %v879_v39  ;;  %v7456_v63 = vmax.f32 %v398_v58, 0.0  ;;  %v7459_v4 = vmax.f32 %v399_v62, 0.0  ;;  %v400_v5 = vld [vmem:[%s7248_s8 + $0xb0] sm:$0xff]  ;;  %6091 = vmatpush1.bf16.msra.mxu0 %v6090_v7  ;;  %p6864_p2 = scmp.ne.s32.totalorder %s9276_s16, %s6863_s14 }
  0xcd   : > { %377 = vst [vmem:[#allocation2 + $0x30] sm:$0xff] %v7362_v33  ;;  %443 = vst [vmem:[#allocation2 + $0x48] sm:$0xff] %v7367_v36  ;;  %v401_v6 = vld [vmem:[%s7248_s8 + $0xb8] sm:$0xff]  ;;  %v7464_v8 = vmax.f32 %v400_v5, 0.0  ;;  %v1057_v11 = vld [vmem:[#allocation11 + $0x230] sm:$0xff]  ;;  %6092 = vmatprep.subr.bf16.mxu0 %v9348_v0  ;;  %s6967_s24 = smov [#allocation14]  }
  0xce   : > { %444 = vst [vmem:[#allocation2 + $0x50] sm:$0xff] %v7369_v37  ;;  %445 = vst [vmem:[#allocation2 + $0x68] sm:$0xff] %v7375_v42  ;;  %v7466_v9 = vmax.f32 %v401_v6, 0.0  ;;  %v1058_v12 = vld [vmem:[#allocation11 + $0x238] sm:$0xff]  ;;  %v402_v16 = vld [vmem:[%s7248_s8 + $0xc0] sm:$0xff]  ;;  %p6865_p10 = pnand %p6864_p2, %p9588_p6  ;;  %s6867_s18 = sshll.u32 %s6967_s24, 4  ;;  %s6868_s18 = int_to_ptr.vmem [resolvable:$false] %s6867_s18 }
  0xcf   : > { %446 = vst [vmem:[#allocation2 + $0x70] sm:$0xff] %v7377_v43  ;;  %447 = vst [vmem:[#allocation2 + $0x88] sm:$0xff] %v7386_v50  ;;  %v403_v17 = vld [vmem:[%s7248_s8 + $0xc8] sm:$0xff]  ;;  %v883_v21 = vld [vmem:[#allocation11 + $0x30] sm:$0xff]  ;;  %v7477_v23 = vmax.f32 %v402_v16, 0.0  ;;  %v6093_v25 = vpack.c.bf16 %v1058_v12, %v1057_v11  ;;  %s6869_s28 = scalar_lea.vmem %s6868_s18, 8192  ;;  %p6870_p4 = scmp.lt.s32.totalorder %s9276_s16, %s6868_s18 }
  0xd0   : > { %448 = vst [vmem:[#allocation2 + $0x90] sm:$0xff] %v7388_v51  ;;  %449 = vst [vmem:[#allocation2 + $0xa8] sm:$0xff] %v7394_v56  ;;  %v884_v22 = vld [vmem:[#allocation11 + $0x38] sm:$0xff]  ;;  %v7479_v24 = vmax.f32 %v403_v17, 0.0  ;;  %v404_v27 = vld [vmem:[%s7248_s8 + $0xd0] sm:$0xff]  ;;  %p6866_p3 = pneg %p6865_p10  ;;  %p6871_p9 = scmp.lt.s32.totalorder %s6869_s28, %s6863_s14 }
  0xd1   : > { %450 = vst [vmem:[#allocation2 + $0xb0] sm:$0xff] %v7396_v57  ;;  %451 = vst [vmem:[#allocation2 + $0xc8] sm:$0xff] %v7403_v1  ;;  %v1059_v28 = vld [vmem:[#allocation11 + $0x240] sm:$0xff]  ;;  %v1060_v30 = vld [vmem:[#allocation11 + $0x248] sm:$0xff]  ;;  %v7486_v34 = vmax.f32 %v404_v27, 0.0  ;;  %6094 = vmatpush1.bf16.msra.mxu0 %v6093_v25 }
  0xd2   : > { %452 = vst [vmem:[#allocation2 + $0xd0] sm:$0xff] %v7405_v2  ;;  %453 = vst [vmem:[#allocation2 + $0xe8] sm:$0xff] %v7411_v10  ;;  %v405_v32 = vld [vmem:[%s7248_s8 + $0xd8] sm:$0xff]  ;;  %v885_v39 = vld [vmem:[#allocation11 + $0x40] sm:$0xff]  ;;  %v6096_v49 = vpack.c.bf16 %v1060_v30, %v1059_v28  ;;  %6095 = vmatprep.subr.bf16.mxu0 %v9348_v0  ;;  %p6872_p5 = por %p6871_p9, %p6870_p4 }
  0xd3   : > { %454 = vst [vmem:[#allocation2 + $0xf0] sm:$0xff] %v7414_v13  ;;  %455 = vst [vmem:[#allocation2 + $0x108] sm:$0xff] %v7420_v18  ;;  %v886_v40 = vld [vmem:[#allocation11 + $0x48] sm:$0xff]  ;;  %v406_v47 = vld [vmem:[%s7248_s8 + $0xe0] sm:$0xff] }
  0xd4   : > { %v691_v3 = vld [vmem:[#allocation2 + $0x29] sm:$0xff]  ;;  %456 = vst [vmem:[#allocation2 + $0x110] sm:$0xff] %v7422_v19  ;;  %457 = vst [vmem:[#allocation2 + $0x128] sm:$0xff] %v7429_v26  ;;  %v692_v35 = vld [vmem:[#allocation2 + $0x31] sm:$0xff]  ;;  %v7500_v54 = vmax.f32 %v406_v47, 0.0  ;;  %v6152_v61 = vpack.c.bf16 %v886_v40, %v885_v39  ;;  %p6873_p7 = pnand %p6872_p5, %p6866_p3 }
  0xd5   : > { %5593 = vmatprep.mubr.f32.mxu1 %v691_v3  ;;  %458 = vst [vmem:[#allocation2 + $0x130] sm:$0xff] %v7431_v29  ;;  %v693_v45 = vld [vmem:[#allocation2 + $0x49] sm:$0xff]  ;;  %459 = vst [vmem:[#allocation2 + $0x148] sm:$0xff] %v7438_v41  ;;  %v694_v59 = vld [vmem:[#allocation2 + $0x51] sm:$0xff]  ;;  %6097 = vmatpush1.bf16.msra.mxu0 %v6096_v49 }
  0xd6   : > { %460 = vst [vmem:[#allocation2 + $0x150] sm:$0xff] %v7440_v44  ;;  %5594 = vmatmul.mubr.f32.vlgmr.msra.gmra.mrb[0].mxu1 %v692_v35  ;;  %461 = vst [vmem:[#allocation2 + $0x168] sm:$0xff] %v7447_v52  ;;  %v695_v3 = vld [vmem:[#allocation2 + $0x69] sm:$0xff]  ;;  %v696_v14 = vld [vmem:[#allocation2 + $0x71] sm:$0xff]  ;;  %6098 = vmatprep.subr.bf16.mxu0 %v9348_v0 }
  0xd7   : > { %5596 = vmatprep.mubr.f32.mxu1 %v693_v45  ;;  %6141 = vmatpush1.bf16.msra.mxu1 %v6140_v38  ;;  %462 = vst [vmem:[#allocation2 + $0x170] sm:$0xff] %v7449_v53  ;;  %463 = vst [vmem:[#allocation2 + $0x188] sm:$0xff] %v7456_v63  ;;  %v7474_v20 = vld [vmem:[#allocation2 + $0x89] sm:$0xff]  ;;  %v7489_v35 = vld [vmem:[#allocation2 + $0x91] sm:$0xff]  ;;  %v6149_v38 = vpack.c.bf16 %v884_v22, %v883_v21  ;;  %v7491_v45 = vmax.f32 %v405_v32, 0.0 }
  0xd8   : > { %6142 = vmatprep.subr.bf16.mxu1 %v9348_v0  ;;  %464 = vst [vmem:[#allocation2 + $0x190] sm:$0xff] %v7459_v4  ;;  %465 = vst [vmem:[#allocation2 + $0x1a8] sm:$0xff] %v7464_v8  ;;  %v7493_v46 = vld [vmem:[#allocation2 + $0xa9] sm:$0xff]  ;;  %v7506_v58 = vld [vmem:[#allocation2 + $0xb1] sm:$0xff] }
  0xd9   : > { %466 = vst [vmem:[#allocation2 + $0x1b0] sm:$0xff] %v7466_v9  ;;  %467 = vst [vmem:[#allocation2 + $0x1c8] sm:$0xff] %v7477_v23  ;;  %v407_v48 = vld [vmem:[%s7248_s8 + $0xe8] sm:$0xff]  ;;  %v887_v62 = vld [vmem:[#allocation11 + $0x50] sm:$0xff] }
  0xda   : > { %5597 = vmatmul.mubr.f32.gmra.mrb[2].mxu1 %v694_v59  ;;  %468 = vst [vmem:[#allocation2 + $0x1d0] sm:$0xff] %v7479_v24  ;;  %9452 = vst [vmem:[#allocation23_spill] sm:$0xff] %v7493_v46  ;;  %v7502_v55 = vmax.f32 %v407_v48, 0.0  ;;  %v1061_v59 = vld [vmem:[#allocation11 + $0x250] sm:$0xff]  ;;  %v409_v5 = vld [vmem:[%s7248_s8 + $0xf8] sm:$0xff] }
  0xdb   : > { %5599 = vmatprep.mubr.f32.mxu1 %v695_v3  ;;  %6144 = vmatpush1.bf16.msra.mxu1 %v6143_v60  ;;  %469 = vst [vmem:[#allocation2 + $0x1e8] sm:$0xff] %v7486_v34  ;;  %470 = vst [vmem:[#allocation2 + $0x1f0] sm:$0xff] %v7491_v45  ;;  %v1062_v60 = vld [vmem:[#allocation11 + $0x258] sm:$0xff]  ;;  %v408_v3 = vld [vmem:[%s7248_s8 + $0xf0] sm:$0xff]  ;;  %v7518_v12 = vmax.f32 %v409_v5, 0.0 }
  0xdc   : > { %6145 = vmatprep.subr.bf16.mxu1 %v9348_v0  ;;  %9453 = vst [vmem:[#allocation24_spill] sm:$0xff] %v7506_v58  ;;  %471 = vst [vmem:[#allocation2 + $0x208] sm:$0xff] %v7500_v54  ;;  %v7513_v6 = vld [vmem:[#allocation2 + $0xc9] sm:$0xff]  ;;  %v888_v7 = vld [vmem:[#allocation11 + $0x58] sm:$0xff]  ;;  %v7516_v11 = vmax.f32 %v408_v3, 0.0 }
  0xdd   : > { %472 = vst [vmem:[#allocation2 + $0x210] sm:$0xff] %v7502_v55  ;;  %9454 = vst [vmem:[#allocation25_spill] sm:$0xff] %v7513_v6  ;;  %v7524_v16 = vld [vmem:[%s7256_s20 + $0x28] sm:$0xff]  ;;  %v1063_v21 = vld [vmem:[#allocation11 + $0x260] sm:$0xff]  ;;  %v6155_v28 = vpack.c.bf16 %v888_v7, %v887_v62 }
  0xde   : > { %5600 = vmatmul.mubr.f32.gmra.mrb[4].mxu1 %v696_v14  ;;  %v7521_v14 = vld [vmem:[%s7256_s20 + $0x20] sm:$0xff]  ;;  %v1064_v22 = vld [vmem:[#allocation11 + $0x268] sm:$0xff]  ;;  %473 = vst [vmem:[#allocation2 + $0x228] sm:$0xff] %v7516_v11  ;;  %474 = vst [vmem:[#allocation2 + $0x230] sm:$0xff] %v7518_v12  ;;  %v9342_v25 = vmax.f32 %v7524_v16, 0.0 }
  0xdf   : > { %5602 = vmatprep.mubr.f32.mxu1 %v7474_v20  ;;  %6147 = vmatpush1.bf16.msra.mxu1 %v6146_v15  ;;  %v6099_v15 = vpack.c.bf16 %v1062_v60, %v1061_v59  ;;  %v9343_v17 = vmax.f32 %v7521_v14, 0.0  ;;  %v7533_v27 = vld [vmem:[#allocation2 + $0xd1] sm:$0xff]  ;;  %v7538_v30 = vld [vmem:[%s7256_s20] sm:$0xff]  ;;  %v7540_v32 = vld [vmem:[#allocation2 + $0xe9] sm:$0xff]  ;;  %v6102_v47 = vpack.c.bf16 %v1064_v22, %v1063_v21 }
  0xe0   : > { %6148 = vmatprep.subr.bf16.mxu1 %v9348_v0  ;;  %9455 = vst [vmem:[#allocation26_spill] sm:$0xff] %v7533_v27  ;;  %9456 = vst [vmem:[#allocation27_spill] sm:$0xff] %v7540_v32  ;;  %v890_v39 = vld [vmem:[#allocation11 + $0x68] sm:$0xff]  ;;  %v9344_v40 = vmax.f32 %v7538_v30, 0.0  ;;  %v1065_v49 = vld [vmem:[#allocation11 + $0x270] sm:$0xff] }
  0xe1   : > { %485 = vst [vmem:[#allocation2 + $0x248] sm:$0xff] %v9343_v17  ;;  %486 = vst [vmem:[#allocation2 + $0x250] sm:$0xff] %v9342_v25  ;;  %6100 = vmatpush1.bf16.msra.mxu0 %v6099_v15  ;;  %v7547_v48 = vld [vmem:[%s7256_s20 + $0x8] sm:$0xff]  ;;  %v1066_v59 = vld [vmem:[#allocation11 + $0x278] sm:$0xff] }
  0xe2   : > { %5603 = vmatmul.mubr.f32.gmra.mrb[6].mxu1 %v7489_v35  ;;  %6101 = vmatprep.subr.bf16.mxu0 %v9348_v0  ;;  %374 = vst [vmem:[#allocation2 + $0x8] sm:$0xff] %v9344_v40  ;;  %v9345_v60 = vmax.f32 %v7547_v48, 0.0  ;;  %v909_v62 = vld [vmem:[#allocation11 + $0x100] sm:$0xff]  ;;  %v910_v3 = vld [vmem:[#allocation11 + $0x108] sm:$0xff]  ;;  %v891_v15 = vld [vmem:[#allocation11 + $0x70] sm:$0xff]  ;;  %v6105_v22 = vpack.c.bf16 %v1066_v59, %v1065_v49 }
  0xe3   : > { %5605 = vmatprep.mubr.f32.mxu1 %v7493_v46  ;;  %6150 = vmatpush1.bf16.msra.mxu1 %v6149_v38  ;;  %v889_v38 = vld [vmem:[#allocation11 + $0x60] sm:$0xff]  ;;  %v7557_v7 = vld [vmem:[#allocation2 + $0x109] sm:$0xff]  ;;  %v892_v21 = vld [vmem:[#allocation11 + $0x78] sm:$0xff]  ;;  %v6187_v25 = vpack.c.bf16 %v910_v3, %v909_v62 }
  0xe4   : > { %6151 = vmatprep.subr.bf16.mxu1 %v9348_v0  ;;  %v6158_v5 = vpack.c.bf16 %v890_v39, %v889_v38  ;;  %9458 = vst [vmem:[#allocation29_spill] sm:$0xff] %v7557_v7  ;;  %375 = vst [vmem:[#allocation2 + $0x10] sm:$0xff] %v9345_v60  ;;  %v6161_v38 = vpack.c.bf16 %v892_v21, %v891_v15  ;;  %v911_v39 = vld [vmem:[#allocation11 + $0x110] sm:$0xff]  ;;  %v912_v17 = vld [vmem:[#allocation11 + $0x118] sm:$0xff] }
  0xe5   : > { %6103 = vmatpush1.bf16.msra.mxu0 %v6102_v47  ;;  %v7567_v40 = vld [vmem:[#allocation2 + $0x129] sm:$0xff]  ;;  %v893_v60 = vld [vmem:[#allocation11 + $0x80] sm:$0xff]  ;;  %v6191_v59 = vpack.c.bf16 %v912_v17, %v911_v39  ;;  %v7574_v62 = vld [vmem:[#allocation2 + $0x131] sm:$0xff] }
  0xe6   : > { %5606 = vmatmul.mubr.f32.gmra.mrb[8].mxu1 %v7506_v58  ;;  %6104 = vmatprep.subr.bf16.mxu0 %v9348_v0  ;;  %9460 = vst [vmem:[#allocation31_spill] sm:$0xff] %v7567_v40  ;;  %v894_v47 = vld [vmem:[#allocation11 + $0x88] sm:$0xff]  ;;  %9461 = vst [vmem:[#allocation32_spill] sm:$0xff] %v7574_v62  ;;  %v905_v58 = vld [vmem:[#allocation11 + $0xe0] sm:$0xff] }
  0xe7   : > { %5608 = vmatprep.mubr.f32.mxu1 %v7513_v6  ;;  %6153 = vmatpush1.bf16.msra.mxu1 %v6152_v61  ;;  %v7555_v61 = vld [vmem:[#allocation2 + $0xf1] sm:$0xff]  ;;  %v7570_v49 = vld [vmem:[#allocation2 + $0x27] sm:$0xff]  ;;  %v6164_v3 = vpack.c.bf16 %v894_v47, %v893_v60 }
  0xe8   : > { %6154 = vmatprep.subr.bf16.mxu1 %v9348_v0  ;;  %9457 = vst [vmem:[#allocation28_spill] sm:$0xff] %v7555_v61  ;;  %v914_v15 = vld [vmem:[#allocation11 + $0x128] sm:$0xff]  ;;  %v7585_v60 = vld [vmem:[#allocation2 + $0x151] sm:$0xff] }
  0xe9   : > { %6106 = vmatpush1.bf16.msra.mxu0 %v6105_v22  ;;  %v7577_v21 = vld [vmem:[#allocation2 + $0x149] sm:$0xff]  ;;  %9463 = vst [vmem:[#allocation34_spill] sm:$0xff] %v7585_v60 }
  0xea   : > { %5609 = vmatmul.mubr.f32.gmra.mrb[10].mxu1 %v7533_v27  ;;  %6188 = vmatprep.subr.bf16.mxu0 %v6187_v25  ;;  %9462 = vst [vmem:[#allocation33_spill] sm:$0xff] %v7577_v21  ;;  %v895_v22 = vld [vmem:[#allocation11 + $0x90] sm:$0xff]  ;;  %v901_v27 = vld [vmem:[#allocation11 + $0xc0] sm:$0xff] }
  0xeb   : > { %5611 = vmatprep.mubr.f32.mxu1 %v7540_v32  ;;  %6156 = vmatpush1.bf16.msra.mxu1 %v6155_v28  ;;  %v7565_v28 = vld [vmem:[#allocation2 + $0x111] sm:$0xff] }
  0xec   : > { %6157 = vmatprep.subr.bf16.mxu1 %v9348_v0  ;;  %9459 = vst [vmem:[#allocation30_spill] sm:$0xff] %v7565_v28  ;;  %1148 = vmatmul.mubr.f32.vlgmr.msra.gmra.mrb[0].mxu0 %v7570_v49  ;;  %v7581_v17 = vld [vmem:[#allocation2 + $0x2f] sm:$0xff] }
  0xed   : > { %6190 = vmatpush3.bf16.msra.mxu0 %v6187_v25  ;;  %1152 = vmatprep.mubr.f32.mxu0 %v7362_v33  ;;  %v915_v47 = vld [vmem:[#allocation11 + $0x130] sm:$0xff]  ;;  %v9465_v25 = vmov 0.0|0.0  }
  0xee   : > { %5612 = vmatmul.mubr.f32.gmra.mrb[12].mxu1 %v7555_v61  ;;  %6192 = vmatprep.subr.bf16.mxu0 %v6191_v59  ;;  %v898_v61 = vld [vmem:[#allocation11 + $0xa8] sm:$0xff]  ;;  %v899_v32 = vld [vmem:[#allocation11 + $0xb0] sm:$0xff] }
  0xef   : > { %5614 = vmatprep.mubr.f32.mxu1 %v7557_v7  ;;  %6159 = vmatpush1.bf16.msra.mxu1 %v6158_v5  ;;  %v913_v5 = vld [vmem:[#allocation11 + $0x120] sm:$0xff]  ;;  %v896_v7 = vld [vmem:[#allocation11 + $0x98] sm:$0xff]  ;;  %v903_v6 = vld [vmem:[#allocation11 + $0xd0] sm:$0xff] }
  0xf0   : > { %6160 = vmatprep.subr.bf16.mxu1 %v9348_v0  ;;  %v6167_v39 = vpack.c.bf16 %v896_v7, %v895_v22  ;;  %1153 = vmatmul.mubr.f32.gmra.mrb[2].mxu0 %v7581_v17  ;;  %v7596_v7 = vld [vmem:[#allocation2 + $0x171] sm:$0xff]  ;;  %v918_v22 = vld [vmem:[#allocation11 + $0x148] sm:$0xff] }
  0xf1   : > { %1157 = vmatprep.mubr.f32.mxu0 %v7367_v36  ;;  %6194 = vmatpush3.bf16.msra.mxu0 %v6191_v59  ;;  %9466 = vst [vmem:[#allocation36_spill] sm:$0xff] %v7596_v7  ;;  %v900_v59 = vld [vmem:[#allocation11 + $0xb8] sm:$0xff]  ;;  %v907_v46 = vld [vmem:[#allocation11 + $0xf0] sm:$0xff] }
  0xf2   : > { %5615 = vmatmul.mubr.f32.gmra.mrb[14].mxu1 %v7565_v28  ;;  %v897_v28 = vld [vmem:[#allocation11 + $0xa0] sm:$0xff] }
  0xf3   : > { %5617 = vmatprep.mubr.f32.mxu1 %v7567_v40  ;;  %6162 = vmatpush1.bf16.msra.mxu1 %v6161_v38  ;;  %v6195_v38 = vpack.c.bf16 %v914_v15, %v913_v5  ;;  %v916_v40 = vld [vmem:[#allocation11 + $0x138] sm:$0xff]  ;;  %v6170_v5 = vpack.c.bf16 %v898_v61, %v897_v28  ;;  %v917_v15 = vld [vmem:[#allocation11 + $0x140] sm:$0xff]  ;;  %v6173_v28 = vpack.c.bf16 %v900_v59, %v899_v32  ;;  %v922_v59 = vld [vmem:[#allocation11 + $0x168] sm:$0xff] }
  0xf4   : > { %6163 = vmatprep.subr.bf16.mxu1 %v9348_v0  ;;  %v7588_v0 = vld [vmem:[#allocation2 + $0x169] sm:$0xff]  ;;  %v7607_v61 = vld [vmem:[#allocation2 + $0x191] sm:$0xff] }
  0xf5   : > { %9464 = vst [vmem:[#allocation35_spill] sm:$0xff] %v7588_v0  ;;  %6196 = vmatprep.subr.bf16.mxu0 %v6195_v38  ;;  %9468 = vst [vmem:[#allocation38_spill] sm:$0xff] %v7607_v61  ;;  %v7618_v32 = vld [vmem:[#allocation2 + $0x1b1] sm:$0xff] }
  0xf6   : > { %5618 = vmatmul.mubr.f32.gmra.mrb[16].mxu1 %v7574_v62  ;;  %v7592_v62 = vld [vmem:[#allocation2 + $0x47] sm:$0xff]  ;;  %6198 = vmatpush3.bf16.msra.mxu0 %v6195_v38  ;;  %9470 = vst [vmem:[#allocation40_spill] sm:$0xff] %v7618_v32 }
  0xf7   : > { %5620 = vmatprep.mubr.f32.mxu1 %v7577_v21  ;;  %6165 = vmatpush1.bf16.msra.mxu1 %v6164_v3  ;;  %v6199_v3 = vpack.c.bf16 %v916_v40, %v915_v47  ;;  %v7599_v21 = vld [vmem:[#allocation2 + $0x189] sm:$0xff]  ;;  %v6203_v40 = vpack.c.bf16 %v918_v22, %v917_v15  ;;  %v920_v47 = vld [vmem:[#allocation11 + $0x158] sm:$0xff]  ;;  %v921_v22 = vld [vmem:[#allocation11 + $0x160] sm:$0xff] }
  0xf8   : > { %6166 = vmatprep.subr.bf16.mxu1 %v9465_v25  ;;  %1158 = vmatmul.mubr.f32.gmra.mrb[4].mxu0 %v7592_v62  ;;  %9467 = vst [vmem:[#allocation37_spill] sm:$0xff] %v7599_v21  ;;  %v902_v38 = vld [vmem:[#allocation11 + $0xc8] sm:$0xff] }
  0xf9   : > { %1162 = vmatprep.mubr.f32.mxu0 %v7369_v37  ;;  %6200 = vmatprep.subr.bf16.mxu0 %v6199_v3  ;;  %v6176_v15 = vpack.c.bf16 %v902_v38, %v901_v27  ;;  %v7629_v27 = vld [vmem:[#allocation2 + $0x1d1] sm:$0xff] }
  0xfa   : > { %5621 = vmatmul.mubr.f32.gmra.mrb[18].mxu1 %v7585_v60  ;;  %v7603_v60 = vld [vmem:[#allocation2 + $0x4f] sm:$0xff]  ;;  %6202 = vmatpush3.bf16.msra.mxu0 %v6199_v3  ;;  %v904_v3 = vld [vmem:[#allocation11 + $0xd8] sm:$0xff]  ;;  %9472 = vst [vmem:[#allocation42_spill] sm:$0xff] %v7629_v27 }
  0xfb   : > { %5623 = vmatprep.mubr.f32.mxu1 %v7588_v0  ;;  %6168 = vmatpush1.bf16.msra.mxu1 %v6167_v39  ;;  %v919_v39 = vld [vmem:[#allocation11 + $0x150] sm:$0xff]  ;;  %v924_v38 = vld [vmem:[#allocation11 + $0x178] sm:$0xff] }
  0xfc   : > { %6169 = vmatprep.subr.bf16.mxu1 %v9465_v25  ;;  %1163 = vmatmul.mubr.f32.gmra.mrb[6].mxu0 %v7603_v60  ;;  %v7610_v0 = vld [vmem:[#allocation2 + $0x1a9] sm:$0xff] }
  0xfd   : > { %9469 = vst [vmem:[#allocation39_spill] sm:$0xff] %v7610_v0  ;;  %1167 = vmatprep.mubr.f32.mxu0 %v7375_v42  ;;  %6204 = vmatprep.subr.bf16.mxu0 %v6203_v40 }
  0xfe   : > { %5624 = vmatmul.mubr.f32.gmra.mrb[20].mxu1 %v7596_v7  ;;  %v7614_v7 = vld [vmem:[#allocation2 + $0x67] sm:$0xff]  ;;  %6206 = vmatpush3.bf16.msra.mxu0 %v6203_v40 }
  0xff   : > { %5626 = vmatprep.mubr.f32.mxu1 %v7599_v21  ;;  %6171 = vmatpush1.bf16.msra.mxu1 %v6170_v5  ;;  %v6207_v5 = vpack.c.bf16 %v920_v47, %v919_v39  ;;  %v7621_v21 = vld [vmem:[#allocation2 + $0x1c9] sm:$0xff]  ;;  %v6179_v39 = vpack.c.bf16 %v904_v3, %v903_v6  ;;  %v7640_v6 = vld [vmem:[#allocation2 + $0x1f1] sm:$0xff] }
 0x100   : > { %6172 = vmatprep.subr.bf16.mxu1 %v9465_v25  ;;  %1168 = vmatmul.mubr.f32.gmra.mrb[8].mxu0 %v7614_v7  ;;  %9471 = vst [vmem:[#allocation41_spill] sm:$0xff] %v7621_v21  ;;  %v923_v47 = vld [vmem:[#allocation11 + $0x170] sm:$0xff]  ;;  %v906_v40 = vld [vmem:[#allocation11 + $0xe8] sm:$0xff]  ;;  %9474 = vst [vmem:[#allocation44_spill] sm:$0xff] %v7640_v6 }
 0x101   : > { %1172 = vmatprep.mubr.f32.mxu0 %v7377_v43  ;;  %6208 = vmatprep.subr.bf16.mxu0 %v6207_v5  ;;  %v2206_v3 = vld [vmem:[#allocation11 + $0x408] sm:$0xff] }
 0x102   : > { %5627 = vmatmul.mubr.f32.gmra.mrb[22].mxu1 %v7607_v61  ;;  %v7625_v61 = vld [vmem:[#allocation2 + $0x6f] sm:$0xff]  ;;  %6210 = vmatpush3.bf16.msra.mxu0 %v6207_v5  ;;  %v908_v5 = vld [vmem:[#allocation11 + $0xf8] sm:$0xff] }
 0x103   : > { %5629 = vmatprep.mubr.f32.mxu1 %v7610_v0  ;;  %6174 = vmatpush1.bf16.msra.mxu1 %v6173_v28  ;;  %v6211_v28 = vpack.c.bf16 %v922_v59, %v921_v22  ;;  %v7632_v0 = vld [vmem:[#allocation2 + $0x1e9] sm:$0xff]  ;;  %v6182_v22 = vpack.c.bf16 %v906_v40, %v905_v58  ;;  %v2205_v59 = vld [vmem:[#allocation11 + $0x400] sm:$0xff]  ;;  %v7653_v58 = vld [vmem:[#allocation2 + $0x211] sm:$0xff] }
 0x104   : > { %6175 = vmatprep.subr.bf16.mxu1 %v9465_v25  ;;  %1173 = vmatmul.mubr.f32.gmra.mrb[10].mxu0 %v7625_v61  ;;  %9473 = vst [vmem:[#allocation43_spill] sm:$0xff] %v7632_v0  ;;  %9476 = vst [vmem:[#allocation46_spill] sm:$0xff] %v7653_v58  ;;  %v7665_v40 = vld [vmem:[#allocation2 + $0x231] sm:$0xff] }
 0x105   : > { %1177 = vmatprep.mubr.f32.mxu0 %v7386_v50  ;;  %6212 = vmatprep.subr.bf16.mxu0 %v6211_v28  ;;  %9478 = vst [vmem:[#allocation48_spill] sm:$0xff] %v7665_v40 }
 0x106   : > { %5630 = vmatmul.mubr.f32.gmra.mrb[24].mxu1 %v7618_v32  ;;  %v7636_v32 = vld [vmem:[#allocation2 + $0x87] sm:$0xff]  ;;  %6214 = vmatpush3.bf16.msra.mxu0 %v6211_v28 }
 0x107   : > { %5632 = vmatprep.mubr.f32.mxu1 %v7621_v21  ;;  %6177 = vmatpush1.bf16.msra.mxu1 %v6176_v15  ;;  %v6215_v15 = vpack.c.bf16 %v924_v38, %v923_v47  ;;  %v7643_v21 = vld [vmem:[#allocation2 + $0x209] sm:$0xff]  ;;  %v6185_v47 = vpack.c.bf16 %v908_v5, %v907_v46 }
 0x108   : > { %6178 = vmatprep.subr.bf16.mxu1 %v9465_v25  ;;  %1178 = vmatmul.mubr.f32.gmra.mrb[12].mxu0 %v7636_v32  ;;  %9475 = vst [vmem:[#allocation45_spill] sm:$0xff] %v7643_v21  ;;  %v7656_v38 = vld [vmem:[#allocation2 + $0x229] sm:$0xff] }
 0x109   : > { %1182 = vmatprep.mubr.f32.mxu0 %v7388_v51  ;;  %6216 = vmatprep.subr.bf16.mxu0 %v6215_v15  ;;  %9477 = vst [vmem:[#allocation47_spill] sm:$0xff] %v7656_v38  ;;  %v7660_v28 = vld [vmem:[#allocation2 + $0xa7] sm:$0xff] }
 0x10a   : > { %5633 = vmatmul.mubr.f32.gmra.mrb[26].mxu1 %v7629_v27  ;;  %v7647_v27 = vld [vmem:[#allocation2 + $0x8f] sm:$0xff]  ;;  %6218 = vmatpush3.bf16.msra.mxu0 %v6215_v15  ;;  %v7675_v5 = vld [vmem:[#allocation2 + $0xc7] sm:$0xff] }
 0x10b   : > { %5635 = vmatprep.mubr.f32.mxu1 %v7632_v0  ;;  %6180 = vmatpush1.bf16.msra.mxu1 %v6179_v39  ;;  %v7650_v39 = vpack.c.bf16 %v2206_v3, %v2205_v59  ;;  %v725_v46 = vld [vmem:[#allocation2 + $0x249] sm:$0xff]  ;;  %v726_v15 = vld [vmem:[#allocation2 + $0x251] sm:$0xff]  ;;  %v2173_v59 = vld [vmem:[#allocation11 + $0x300] sm:$0xff] }
 0x10c   : > { %6181 = vmatprep.subr.bf16.mxu1 %v9465_v25  ;;  %1183 = vmatmul.mubr.f32.gmra.mrb[14].mxu0 %v7647_v27  ;;  %v2174_v3 = vld [vmem:[#allocation11 + $0x308] sm:$0xff] }
 0x10d   : > { %1187 = vmatprep.mubr.f32.mxu0 %v7394_v56  ;;  %6268 = vmatprep.subr.bf16.mxu0 %v7650_v39  ;;  %v530_v0 = vld [vmem:[#allocation2 + $0xf] sm:$0xff] }
 0x10e   : > { %5636 = vmatmul.mubr.f32.gmra.mrb[28].mxu1 %v7640_v6  ;;  %v9480_v6 = vmax.f32 %v7547_v48, 0.0  ;;  %v2179_v48 = vld [vmem:[#allocation11 + $0x330] sm:$0xff] }
 0x10f   : > { %5638 = vmatprep.mubr.f32.mxu1 %v7643_v21  ;;  %6183 = vmatpush1.bf16.msra.mxu1 %v6182_v22  ;;  %v7670_v22 = vld [vmem:[#allocation2 + $0xaf] sm:$0xff] }
 0x110   : > { %6184 = vmatprep.subr.bf16.mxu1 %v9465_v25  ;;  %1188 = vmatmul.mubr.f32.gmra.mrb[16].mxu0 %v7660_v28  ;;  %v2175_v21 = vld [vmem:[#allocation11 + $0x310] sm:$0xff] }
 0x111   : > { %1192 = vmatprep.mubr.f32.mxu0 %v7396_v57 }
 0x112   : > { %5639 = vmatmul.mubr.f32.gmra.mrb[30].mxu1 %v7653_v58  ;;  %v6220_v58 = vpack.c.bf16 %v2174_v3, %v2173_v59  ;;  %v2178_v59 = vld [vmem:[#allocation11 + $0x328] sm:$0xff] }
 0x113   : > { %5641 = vmatprep.mubr.f32.mxu1 %v7656_v38  ;;  %6186 = vmatpush1.bf16.msra.mxu1 %v6185_v47  ;;  %v9479_v47 = vmax.f32 %v7538_v30, 0.0  ;;  %v529_v38 = vld [vmem:[#allocation2 + $0x7] sm:$0xff] }
 0x114   : > { %6219 = vmatprep.subr.bf16.mxu1 %v9465_v25  ;;  %1193 = vmatmul.mubr.f32.gmra.mrb[18].mxu0 %v7670_v22  ;;  %v2177_v30 = vld [vmem:[#allocation11 + $0x320] sm:$0xff] }
 0x115   : > { %1197 = vmatprep.mubr.f32.mxu0 %v7403_v1  ;;  %v7688_v3 = vld [vmem:[#allocation2 + $0xe7] sm:$0xff] }
 0x116   : > { %5642 = vmatmul.mubr.f32.gmra.mrb[32].mxu1 %v7665_v40  ;;  %v2176_v40 = vld [vmem:[#allocation11 + $0x318] sm:$0xff] }
 0x117   : > { %5644 = vmatprep.mubr.f32.mxu1 %v725_v46  ;;  %v7681_v46 = vld [vmem:[#allocation2 + $0xcf] sm:$0xff] }
 0x118   : > { %1198 = vmatmul.mubr.f32.gmra.mrb[20].mxu0 %v7675_v5 }
 0x119   : > { %1202 = vmatprep.mubr.f32.mxu0 %v7405_v2 }
 0x11a   : > { %5645 = vmatmul.mubr.f32.gmra.mrb[34].mxu1 %v726_v15  ;;  %v6223_v15 = vpack.c.bf16 %v2176_v40, %v2175_v21  ;;  %v2180_v21 = vld [vmem:[#allocation11 + $0x338] sm:$0xff]  ;;  %v7701_v40 = vld [vmem:[#allocation2 + $0x107] sm:$0xff] }
 0x11b   : > { %1637 = vmatprep.mubr.f32.mxu1 %v9479_v47  ;;  %v2184_v47 = vld [vmem:[#allocation11 + $0x358] sm:$0xff] }
 0x11c   : > { %1203 = vmatmul.mubr.f32.gmra.mrb[22].mxu0 %v7681_v46 }
 0x11d   : > { %1207 = vmatprep.mubr.f32.mxu0 %v7411_v10 }
 0x11e   : > { %1638 = vmatmul.mubr.f32.vlgmr.msra.gmra.mrb[36].mxu1 %v529_v38  ;;  %v6226_v38 = vpack.c.bf16 %v2178_v59, %v2177_v30  ;;  %v2186_v30 = vld [vmem:[#allocation11 + $0x368] sm:$0xff] }
 0x11f   : > { %1642 = vmatprep.mubr.f32.mxu1 %v9480_v6  ;;  %6221 = vmatpush1.bf16.msra.mxu1 %v6220_v58  ;;  %v7694_v6 = vld [vmem:[#allocation2 + $0xef] sm:$0xff]  ;;  %v7715_v59 = vld [vmem:[#allocation2 + $0x127] sm:$0xff] }
 0x120   : > { %6222 = vmatprep.subr.bf16.mxu1 %v9465_v25  ;;  %1208 = vmatmul.mubr.f32.gmra.mrb[24].mxu0 %v7688_v3  ;;  %v2182_v58 = vld [vmem:[#allocation11 + $0x348] sm:$0xff] }
 0x121   : > { %1212 = vmatprep.mubr.f32.mxu0 %v7414_v13 }
 0x122   : > { %1643 = vmatmul.mubr.f32.gmra.mrb[38].mxu1 %v530_v0  ;;  %v6229_v0 = vpack.c.bf16 %v2180_v21, %v2179_v48  ;;  %v2188_v48 = vld [vmem:[#allocation11 + $0x378] sm:$0xff]  ;;  %v7722_v21 = vld [vmem:[#allocation2 + $0x12f] sm:$0xff] }
 0x123   : > { %1647 = vmatprep.mubr.f32.mxu1 %v7359_v31  ;;  %6224 = vmatpush1.bf16.msra.mxu1 %v6223_v15  ;;  %v2181_v31 = vld [vmem:[#allocation11 + $0x340] sm:$0xff]  ;;  %v7708_v15 = vld [vmem:[#allocation2 + $0x10f] sm:$0xff] }
 0x124   : > { %6225 = vmatprep.subr.bf16.mxu1 %v9465_v25  ;;  %1213 = vmatmul.mubr.f32.gmra.mrb[26].mxu0 %v7694_v6 }
 0x125   : > { %1217 = vmatprep.mubr.f32.mxu0 %v7420_v18 }
 0x126   : > { %1648 = vmatmul.mubr.f32.gmra.mrb[40].mxu1 %v7570_v49  ;;  %v6232_v49 = vpack.c.bf16 %v2182_v58, %v2181_v31  ;;  %v2190_v31 = vld [vmem:[#allocation11 + $0x388] sm:$0xff] }
 0x127   : > { %1652 = vmatprep.mubr.f32.mxu1 %v7362_v33  ;;  %6227 = vmatpush1.bf16.msra.mxu1 %v6226_v38  ;;  %v2183_v33 = vld [vmem:[#allocation11 + $0x350] sm:$0xff]  ;;  %v7729_v58 = vld [vmem:[#allocation2 + $0x147] sm:$0xff] }
 0x128   : > { %6228 = vmatprep.subr.bf16.mxu1 %v9465_v25  ;;  %1218 = vmatmul.mubr.f32.gmra.mrb[28].mxu0 %v7701_v40 }
 0x129   : > { %1222 = vmatprep.mubr.f32.mxu0 %v7422_v19 }
 0x12a   : > { %1653 = vmatmul.mubr.f32.gmra.mrb[42].mxu1 %v7581_v17  ;;  %v6235_v17 = vpack.c.bf16 %v2184_v47, %v2183_v33  ;;  %v2192_v33 = vld [vmem:[#allocation11 + $0x398] sm:$0xff]  ;;  %v7736_v47 = vld [vmem:[#allocation2 + $0x14f] sm:$0xff] }
 0x12b   : > { %1657 = vmatprep.mubr.f32.mxu1 %v7367_v36  ;;  %6230 = vmatpush1.bf16.msra.mxu1 %v6229_v0  ;;  %v2185_v36 = vld [vmem:[#allocation11 + $0x360] sm:$0xff] }
 0x12c   : > { %6231 = vmatprep.subr.bf16.mxu1 %v9465_v25  ;;  %1223 = vmatmul.mubr.f32.gmra.mrb[30].mxu0 %v7708_v15  ;;  %v6238_v38 = vpack.c.bf16 %v2186_v30, %v2185_v36  ;;  %v2194_v36 = vld [vmem:[#allocation11 + $0x3a8] sm:$0xff] }
 0x12d   : > { %1227 = vmatprep.mubr.f32.mxu0 %v7429_v26  ;;  %v7743_v30 = vld [vmem:[#allocation2 + $0x167] sm:$0xff] }
 0x12e   : > { %1658 = vmatmul.mubr.f32.gmra.mrb[44].mxu1 %v7592_v62 }
 0x12f   : > { %1662 = vmatprep.mubr.f32.mxu1 %v7369_v37  ;;  %6233 = vmatpush1.bf16.msra.mxu1 %v6232_v49  ;;  %v2187_v37 = vld [vmem:[#allocation11 + $0x370] sm:$0xff] }
 0x130   : > { %6234 = vmatprep.subr.bf16.mxu1 %v9465_v25  ;;  %1228 = vmatmul.mubr.f32.gmra.mrb[32].mxu0 %v7715_v59  ;;  %v6241_v0 = vpack.c.bf16 %v2188_v48, %v2187_v37  ;;  %v2196_v37 = vld [vmem:[#allocation11 + $0x3b8] sm:$0xff]  ;;  %v7750_v48 = vld [vmem:[#allocation2 + $0x16f] sm:$0xff] }
 0x131   : > { %1232 = vmatprep.mubr.f32.mxu0 %v7431_v29 }
 0x132   : > { %1663 = vmatmul.mubr.f32.gmra.mrb[46].mxu1 %v7603_v60 }
 0x133   : > { %1667 = vmatprep.mubr.f32.mxu1 %v7375_v42  ;;  %6236 = vmatpush1.bf16.msra.mxu1 %v6235_v17  ;;  %v2189_v42 = vld [vmem:[#allocation11 + $0x380] sm:$0xff] }
 0x134   : > { %6237 = vmatprep.subr.bf16.mxu1 %v9465_v25  ;;  %1233 = vmatmul.mubr.f32.gmra.mrb[34].mxu0 %v7722_v21  ;;  %v6244_v49 = vpack.c.bf16 %v2190_v31, %v2189_v42  ;;  %v2198_v42 = vld [vmem:[#allocation11 + $0x3c8] sm:$0xff] }
 0x135   : > { %1237 = vmatprep.mubr.f32.mxu0 %v7438_v41  ;;  %v7757_v31 = vld [vmem:[#allocation2 + $0x187] sm:$0xff] }
 0x136   : > { %1668 = vmatmul.mubr.f32.gmra.mrb[48].mxu1 %v7614_v7 }
 0x137   : > { %1672 = vmatprep.mubr.f32.mxu1 %v7377_v43  ;;  %6239 = vmatpush1.bf16.msra.mxu1 %v6238_v38  ;;  %v2191_v43 = vld [vmem:[#allocation11 + $0x390] sm:$0xff] }
 0x138   : > { %6240 = vmatprep.subr.bf16.mxu1 %v9465_v25  ;;  %1238 = vmatmul.mubr.f32.gmra.mrb[36].mxu0 %v7729_v58  ;;  %v6247_v17 = vpack.c.bf16 %v2192_v33, %v2191_v43  ;;  %v2200_v43 = vld [vmem:[#allocation11 + $0x3d8] sm:$0xff]  ;;  %v7764_v33 = vld [vmem:[#allocation2 + $0x18f] sm:$0xff] }
 0x139   : > { %1242 = vmatprep.mubr.f32.mxu0 %v7440_v44 }
 0x13a   : > { %1673 = vmatmul.mubr.f32.gmra.mrb[50].mxu1 %v7625_v61 }
 0x13b   : > { %1677 = vmatprep.mubr.f32.mxu1 %v7386_v50  ;;  %6242 = vmatpush1.bf16.msra.mxu1 %v6241_v0  ;;  %v2193_v50 = vld [vmem:[#allocation11 + $0x3a0] sm:$0xff] }
 0x13c   : > { %6243 = vmatprep.subr.bf16.mxu1 %v9465_v25  ;;  %1243 = vmatmul.mubr.f32.gmra.mrb[38].mxu0 %v7736_v47  ;;  %v6250_v38 = vpack.c.bf16 %v2194_v36, %v2193_v50  ;;  %v2202_v50 = vld [vmem:[#allocation11 + $0x3e8] sm:$0xff] }
 0x13d   : > { %1247 = vmatprep.mubr.f32.mxu0 %v7447_v52  ;;  %v7771_v36 = vld [vmem:[#allocation2 + $0x1a7] sm:$0xff] }
 0x13e   : > { %1678 = vmatmul.mubr.f32.gmra.mrb[52].mxu1 %v7636_v32 }
 0x13f   : > { %1682 = vmatprep.mubr.f32.mxu1 %v7388_v51  ;;  %6245 = vmatpush1.bf16.msra.mxu1 %v6244_v49  ;;  %v2195_v51 = vld [vmem:[#allocation11 + $0x3b0] sm:$0xff] }
 0x140   : > { %6246 = vmatprep.subr.bf16.mxu1 %v9465_v25  ;;  %1248 = vmatmul.mubr.f32.gmra.mrb[40].mxu0 %v7743_v30  ;;  %v6253_v0 = vpack.c.bf16 %v2196_v37, %v2195_v51  ;;  %v2204_v51 = vld [vmem:[#allocation11 + $0x3f8] sm:$0xff]  ;;  %v7778_v37 = vld [vmem:[#allocation2 + $0x1af] sm:$0xff] }
 0x141   : > { %1252 = vmatprep.mubr.f32.mxu0 %v7449_v53 }
 0x142   : > { %1683 = vmatmul.mubr.f32.gmra.mrb[54].mxu1 %v7647_v27 }
 0x143   : > { %1687 = vmatprep.mubr.f32.mxu1 %v7394_v56  ;;  %6248 = vmatpush1.bf16.msra.mxu1 %v6247_v17  ;;  %v2197_v56 = vld [vmem:[#allocation11 + $0x3c0] sm:$0xff] }
 0x144   : > { %6249 = vmatprep.subr.bf16.mxu1 %v9465_v25  ;;  %1253 = vmatmul.mubr.f32.gmra.mrb[42].mxu0 %v7750_v48  ;;  %v6256_v49 = vpack.c.bf16 %v2198_v42, %v2197_v56  ;;  %v7797_v56 = vld [vmem:[#allocation2 + $0x1e7] sm:$0xff] }
 0x145   : > { %1257 = vmatprep.mubr.f32.mxu0 %v7456_v63  ;;  %v7834_v42 = vld [vmem:[#allocation2 + $0x247] sm:$0xff] }
 0x146   : > { %1688 = vmatmul.mubr.f32.gmra.mrb[56].mxu1 %v7660_v28 }
 0x147   : > { %1692 = vmatprep.mubr.f32.mxu1 %v7396_v57  ;;  %6251 = vmatpush1.bf16.msra.mxu1 %v6250_v38  ;;  %v2199_v57 = vld [vmem:[#allocation11 + $0x3d0] sm:$0xff] }
 0x148   : > { %6252 = vmatprep.subr.bf16.mxu1 %v9465_v25  ;;  %1258 = vmatmul.mubr.f32.gmra.mrb[44].mxu0 %v7757_v31  ;;  %v6259_v17 = vpack.c.bf16 %v2200_v43, %v2199_v57  ;;  %v2208_v57 = vld [vmem:[#allocation11 + $0x418] sm:$0xff] }
 0x149   : > { %1262 = vmatprep.mubr.f32.mxu0 %v7459_v4  ;;  %v690_v43 = vld [vmem:[#allocation2 + $0x11] sm:$0xff] }
 0x14a   : > { %1693 = vmatmul.mubr.f32.gmra.mrb[58].mxu1 %v7670_v22 }
 0x14b   : > { %1697 = vmatprep.mubr.f32.mxu1 %v7403_v1  ;;  %6254 = vmatpush1.bf16.msra.mxu1 %v6253_v0  ;;  %v2201_v1 = vld [vmem:[#allocation11 + $0x3e0] sm:$0xff] }
 0x14c   : > { %6255 = vmatprep.subr.bf16.mxu1 %v9465_v25  ;;  %1263 = vmatmul.mubr.f32.gmra.mrb[46].mxu0 %v7764_v33  ;;  %v6262_v38 = vpack.c.bf16 %v2202_v50, %v2201_v1  ;;  %v6633_v1 = vld [vmem:[#allocation2 + $0x29] sm:$0xff] }
 0x14d   : > { %1267 = vmatprep.mubr.f32.mxu0 %v7464_v8  ;;  %v2211_v50 = vld [vmem:[#allocation11 + $0x430] sm:$0xff] }
 0x14e   : > { %1698 = vmatmul.mubr.f32.gmra.mrb[60].mxu1 %v7675_v5 }
 0x14f   : > { %1702 = vmatprep.mubr.f32.mxu1 %v7405_v2  ;;  %6257 = vmatpush1.bf16.msra.mxu1 %v6256_v49  ;;  %v2203_v2 = vld [vmem:[#allocation11 + $0x3f0] sm:$0xff] }
 0x150   : > { %6258 = vmatprep.subr.bf16.mxu1 %v9465_v25  ;;  %1268 = vmatmul.mubr.f32.gmra.mrb[48].mxu0 %v7771_v36  ;;  %v6265_v0 = vpack.c.bf16 %v2204_v51, %v2203_v2  ;;  %v7841_v49 = vld [vmem:[#allocation2 + $0x24f] sm:$0xff] }
 0x151   : > { %1272 = vmatprep.mubr.f32.mxu0 %v7466_v9  ;;  %v6634_v2 = vld [vmem:[#allocation2 + $0x31] sm:$0xff]  ;;  %v7851_v51 = vld [vmem:[#allocation2 + $0x49] sm:$0xff] }
 0x152   : > { %1703 = vmatmul.mubr.f32.gmra.mrb[62].mxu1 %v7681_v46 }
 0x153   : > { %1707 = vmatprep.mubr.f32.mxu1 %v7411_v10  ;;  %6260 = vmatpush1.bf16.msra.mxu1 %v6259_v17  ;;  %v7785_v10 = vld [vmem:[#allocation2 + $0x1c7] sm:$0xff] }
 0x154   : > { %6261 = vmatprep.subr.bf16.mxu1 %v9465_v25  ;;  %1273 = vmatmul.mubr.f32.gmra.mrb[50].mxu0 %v7778_v37  ;;  %v2210_v17 = vld [vmem:[#allocation11 + $0x428] sm:$0xff] }
 0x155   : > { %1277 = vmatprep.mubr.f32.mxu0 %v7477_v23 }
 0x156   : > { %1708 = vmatmul.mubr.f32.gmra.mrb[64].mxu1 %v7688_v3 }
 0x157   : > { %1712 = vmatprep.mubr.f32.mxu1 %v7414_v13  ;;  %6263 = vmatpush1.bf16.msra.mxu1 %v6262_v38  ;;  %v7791_v13 = vld [vmem:[#allocation2 + $0x1cf] sm:$0xff]  ;;  %v2212_v38 = vld [vmem:[#allocation11 + $0x438] sm:$0xff] }
 0x158   : > { %6264 = vmatprep.subr.bf16.mxu1 %v9465_v25  ;;  %1278 = vmatmul.mubr.f32.gmra.mrb[52].mxu0 %v7785_v10 }
 0x159   : > { %1282 = vmatprep.mubr.f32.mxu0 %v7479_v24 }
 0x15a   : > { %1713 = vmatmul.mubr.f32.gmra.mrb[66].mxu1 %v7694_v6 }
 0x15b   : > { %1717 = vmatprep.mubr.f32.mxu1 %v7420_v18  ;;  %6266 = vmatpush1.bf16.msra.mxu1 %v6265_v0  ;;  %v7803_v18 = vld [vmem:[#allocation2 + $0x1ef] sm:$0xff] }
 0x15c   : > { %1283 = vmatmul.mubr.f32.gmra.mrb[54].mxu0 %v7791_v13  ;;  %v2214_v0 = vld [vmem:[#allocation11 + $0x448] sm:$0xff] }
 0x15d   : > { %1287 = vmatprep.mubr.f32.mxu0 %v7486_v34 }
 0x15e   : > { %1718 = vmatmul.mubr.f32.gmra.mrb[68].mxu1 %v7701_v40 }
 0x15f   : > { %1722 = vmatprep.mubr.f32.mxu1 %v7422_v19  ;;  %v7809_v19 = vld [vmem:[#allocation2 + $0x207] sm:$0xff] }
 0x160   : > { %1288 = vmatmul.mubr.f32.gmra.mrb[56].mxu0 %v7797_v56 }
 0x161   : > { %1292 = vmatprep.mubr.f32.mxu0 %v7491_v45 }
 0x162   : > { %1723 = vmatmul.mubr.f32.gmra.mrb[70].mxu1 %v7708_v15 }
 0x163   : > { %1727 = vmatprep.mubr.f32.mxu1 %v7429_v26  ;;  %v7815_v26 = vld [vmem:[#allocation2 + $0x20f] sm:$0xff] }
 0x164   : > { %1293 = vmatmul.mubr.f32.gmra.mrb[58].mxu0 %v7803_v18 }
 0x165   : > { %1297 = vmatprep.mubr.f32.mxu0 %v7500_v54 }
 0x166   : > { %1728 = vmatmul.mubr.f32.gmra.mrb[72].mxu1 %v7715_v59 }
 0x167   : > { %1732 = vmatprep.mubr.f32.mxu1 %v7431_v29  ;;  %v7821_v29 = vld [vmem:[#allocation2 + $0x227] sm:$0xff] }
 0x168   : > { %1298 = vmatmul.mubr.f32.gmra.mrb[60].mxu0 %v7809_v19 }
 0x169   : > { %1302 = vmatprep.mubr.f32.mxu0 %v7502_v55 }
 0x16a   : > { %1733 = vmatmul.mubr.f32.gmra.mrb[74].mxu1 %v7722_v21 }
 0x16b   : > { %1737 = vmatprep.mubr.f32.mxu1 %v7438_v41  ;;  %v7827_v41 = vld [vmem:[#allocation2 + $0x22f] sm:$0xff] }
 0x16c   : > { %1303 = vmatmul.mubr.f32.gmra.mrb[62].mxu0 %v7815_v26 }
 0x16d   : > { %1307 = vmatprep.mubr.f32.mxu0 %v7516_v11 }
 0x16e   : > { %1738 = vmatmul.mubr.f32.gmra.mrb[76].mxu1 %v7729_v58 }
 0x16f   : > { %1742 = vmatprep.mubr.f32.mxu1 %v7440_v44  ;;  %v9481_v44 = vmax.f32 %v7521_v14, 0.0  ;;  %v2207_v14 = vld [vmem:[#allocation11 + $0x410] sm:$0xff] }
 0x170   : > { %1308 = vmatmul.mubr.f32.gmra.mrb[64].mxu0 %v7821_v29 }
 0x171   : > { %1312 = vmatprep.mubr.f32.mxu0 %v7518_v12 }
 0x172   : > { %1743 = vmatmul.mubr.f32.gmra.mrb[78].mxu1 %v7736_v47 }
 0x173   : > { %1747 = vmatprep.mubr.f32.mxu1 %v7447_v52  ;;  %v9482_v52 = vmax.f32 %v7524_v16, 0.0  ;;  %v2209_v16 = vld [vmem:[#allocation11 + $0x420] sm:$0xff] }
 0x174   : > { %1313 = vmatmul.mubr.f32.gmra.mrb[66].mxu0 %v7827_v41 }
 0x175   : > { %1317 = vmatprep.mubr.f32.mxu0 %v9481_v44  ;;  %v7856_v44 = vld [vmem:[#allocation2 + $0x51] sm:$0xff] }
 0x176   : > { %1748 = vmatmul.mubr.f32.gmra.mrb[80].mxu1 %v7743_v30 }
 0x177   : > { %1752 = vmatprep.mubr.f32.mxu1 %v7449_v53  ;;  %v689_v53 = vld [vmem:[#allocation2 + $0x9] sm:$0xff] }
 0x178   : > { %1318 = vmatmul.mubr.f32.gmra.mrb[68].mxu0 %v7834_v42 }
 0x179   : > { %1322 = vmatprep.mubr.f32.mxu0 %v9482_v52 }
 0x17a   : > { %1753 = vmatmul.mubr.f32.gmra.mrb[82].mxu1 %v7750_v48 }
 0x17b   : > { %1757 = vmatprep.mubr.f32.mxu1 %v7456_v63  ;;  %v6271_v63 = vpack.c.bf16 %v2208_v57, %v2207_v14  ;;  %v2216_v14 = vld [vmem:[#allocation11 + $0x458] sm:$0xff] }
 0x17c   : > { %1323 = vmatmul.mubr.f32.gmra.mrb[70].mxu0 %v7841_v49 }
 0x17d   : > { %5679 = vmatprep.mubr.f32.mxu0 %v689_v53  ;;  %v2215_v53 = vld [vmem:[#allocation11 + $0x450] sm:$0xff] }
 0x17e   : > { %1758 = vmatmul.mubr.f32.gmra.mrb[84].mxu1 %v7757_v31  ;;  %v6287_v57 = vpack.c.bf16 %v2216_v14, %v2215_v53  ;;  %v9494_v53 = vld [vmem:[#allocation34_spill] sm:$0xff] }
 0x17f   : > { %1762 = vmatprep.mubr.f32.mxu1 %v7459_v4  ;;  %v6275_v4 = vpack.c.bf16 %v2210_v17, %v2209_v16  ;;  %v2220_v17 = vld [vmem:[#allocation11 + $0x478] sm:$0xff] }
 0x180   : > { %5680 = vmatmul.mubr.f32.vlgmr.msra.gmra.mrb[72].mxu0 %v690_v43  ;;  %v2217_v43 = vld [vmem:[#allocation11 + $0x460] sm:$0xff] }
 0x181   : > { %6270 = vmatpush3.bf16.msra.mxu0 %v7650_v39  ;;  %5682 = vmatprep.mubr.f32.mxu0 %v6633_v1  ;;  %v2213_v39 = vld [vmem:[#allocation11 + $0x440] sm:$0xff]  ;;  %v9484_v1 = vld [vmem:[#allocation24_spill] sm:$0xff] }
 0x182   : > { %1763 = vmatmul.mubr.f32.gmra.mrb[86].mxu1 %v7764_v33  ;;  %6272 = vmatprep.subr.bf16.mxu0 %v6271_v63  ;;  %v6283_v52 = vpack.c.bf16 %v2214_v0, %v2213_v39 }
 0x183   : > { %1767 = vmatprep.mubr.f32.mxu1 %v7464_v8  ;;  %v6279_v8 = vpack.c.bf16 %v2212_v38, %v2211_v50  ;;  %v9487_v50 = vld [vmem:[#allocation27_spill] sm:$0xff]  ;;  %v9489_v38 = vld [vmem:[#allocation29_spill] sm:$0xff] }
 0x184   : > { %5683 = vmatmul.mubr.f32.gmra.mrb[74].mxu0 %v6634_v2  ;;  %v9491_v2 = vld [vmem:[#allocation31_spill] sm:$0xff] }
 0x185   : > { %5685 = vmatprep.mubr.f32.mxu0 %v7851_v51  ;;  %6274 = vmatpush3.bf16.msra.mxu0 %v6271_v63  ;;  %v2218_v63 = vld [vmem:[#allocation11 + $0x468] sm:$0xff] }
 0x186   : > { %1768 = vmatmul.mubr.f32.gmra.mrb[88].mxu1 %v7771_v36  ;;  %6276 = vmatprep.subr.bf16.mxu0 %v6275_v4  ;;  %v6291_v16 = vpack.c.bf16 %v2218_v63, %v2217_v43  ;;  %v9496_v43 = vld [vmem:[#allocation36_spill] sm:$0xff]  ;;  %v9497_v63 = vld [vmem:[#allocation37_spill] sm:$0xff] }
 0x187   : > { %1772 = vmatprep.mubr.f32.mxu1 %v7466_v9  ;;  %v7859_v9 = vld [vmem:[#allocation2 + $0x69] sm:$0xff] }
 0x188   : > { %5686 = vmatmul.mubr.f32.gmra.mrb[76].mxu0 %v7856_v44 }
 0x189   : > { %5688 = vmatprep.mubr.f32.mxu0 %v7859_v9  ;;  %6278 = vmatpush3.bf16.msra.mxu0 %v6275_v4  ;;  %v9485_v4 = vld [vmem:[#allocation25_spill] sm:$0xff] }
 0x18a   : > { %1773 = vmatmul.mubr.f32.gmra.mrb[90].mxu1 %v7778_v37  ;;  %6280 = vmatprep.subr.bf16.mxu0 %v6279_v8 }
 0x18b   : > { %1777 = vmatprep.mubr.f32.mxu1 %v7477_v23  ;;  %v7864_v23 = vld [vmem:[#allocation2 + $0x71] sm:$0xff] }
 0x18c   : > { %5689 = vmatmul.mubr.f32.gmra.mrb[78].mxu0 %v7864_v23 }
 0x18d   : > { %5691 = vmatprep.mubr.f32.mxu0 %v7474_v20  ;;  %6282 = vmatpush3.bf16.msra.mxu0 %v6279_v8  ;;  %v2219_v20 = vld [vmem:[#allocation11 + $0x470] sm:$0xff] }
 0x18e   : > { %1778 = vmatmul.mubr.f32.gmra.mrb[92].mxu1 %v7785_v10  ;;  %6284 = vmatprep.subr.bf16.mxu0 %v6283_v52  ;;  %v9493_v8 = vld [vmem:[#allocation33_spill] sm:$0xff] }
 0x18f   : > { %1782 = vmatprep.mubr.f32.mxu1 %v7479_v24  ;;  %v9483_v24 = vld [vmem:[#allocation23_spill] sm:$0xff] }
 0x190   : > { %5692 = vmatmul.mubr.f32.gmra.mrb[80].mxu0 %v7489_v35  ;;  %v9486_v35 = vld [vmem:[#allocation26_spill] sm:$0xff] }
 0x191   : > { %5694 = vmatprep.mubr.f32.mxu0 %v9483_v24  ;;  %6286 = vmatpush3.bf16.msra.mxu0 %v6283_v52  ;;  %v6639_v52 = vld [vmem:[#allocation2 + $0x48] sm:$0xff] }
 0x192   : > { %1783 = vmatmul.mubr.f32.gmra.mrb[94].mxu1 %v7791_v13  ;;  %6288 = vmatprep.subr.bf16.mxu0 %v6287_v57 }
 0x193   : > { %1787 = vmatprep.mubr.f32.mxu1 %v7486_v34  ;;  %v6295_v34 = vpack.c.bf16 %v2220_v17, %v2219_v20  ;;  %v6641_v20 = vld [vmem:[#allocation2 + $0x68] sm:$0xff]  ;;  %v9498_v17 = vld [vmem:[#allocation38_spill] sm:$0xff] }
 0x194   : > { %5695 = vmatmul.mubr.f32.gmra.mrb[82].mxu0 %v9484_v1  ;;  %v7910_v1 = vld [vmem:[%s7256_s20 + $0x30] sm:$0xff] }
 0x195   : > { %5697 = vmatprep.mubr.f32.mxu0 %v9485_v4  ;;  %6290 = vmatpush3.bf16.msra.mxu0 %v6287_v57  ;;  %v6640_v57 = vld [vmem:[#allocation2 + $0x50] sm:$0xff]  ;;  %v9499_v4 = vld [vmem:[#allocation39_spill] sm:$0xff] }
 0x196   : > { %1788 = vmatmul.mubr.f32.gmra.mrb[96].mxu1 %v7797_v56  ;;  %6292 = vmatprep.subr.bf16.mxu0 %v6291_v16 }
 0x197   : > { %1792 = vmatprep.mubr.f32.mxu1 %v7491_v45  ;;  %v9488_v45 = vld [vmem:[#allocation28_spill] sm:$0xff] }
 0x198   : > { %5698 = vmatmul.mubr.f32.gmra.mrb[84].mxu0 %v9486_v35  ;;  %v9375_v35 = vmax.f32 %v7910_v1, 0.0 }
 0x199   : > { %5700 = vmatprep.mubr.f32.mxu0 %v9487_v50  ;;  %6294 = vmatpush3.bf16.msra.mxu0 %v6291_v16 }
 0x19a   : > { %1793 = vmatmul.mubr.f32.gmra.mrb[98].mxu1 %v7803_v18  ;;  %6296 = vmatprep.subr.bf16.mxu0 %v6295_v34  ;;  %487 = vst [vmem:[#allocation2 + $0x268] sm:$0xff] %v9375_v35 }
 0x19b   : > { %1797 = vmatprep.mubr.f32.mxu1 %v7500_v54  ;;  %v9490_v54 = vld [vmem:[#allocation30_spill] sm:$0xff] }
 0x19c   : > { %5701 = vmatmul.mubr.f32.gmra.mrb[86].mxu0 %v9488_v45  ;;  %v6642_v45 = vld [vmem:[#allocation2 + $0x70] sm:$0xff] }
 0x19d   : > { %5703 = vmatprep.mubr.f32.mxu0 %v9489_v38  ;;  %6298 = vmatpush3.bf16.msra.mxu0 %v6295_v34  ;;  %v9500_v38 = vld [vmem:[#allocation40_spill] sm:$0xff] }
 0x19e   : > { %1798 = vmatmul.mubr.f32.gmra.mrb[100].mxu1 %v7809_v19  ;;  %6299 = vmatprep.subr.bf16.mxu0 %v9465_v25 }
 0x19f   : > { %1802 = vmatprep.mubr.f32.mxu1 %v7502_v55  ;;  %v9492_v55 = vld [vmem:[#allocation32_spill] sm:$0xff] }
 0x1a0   : > { %5704 = vmatmul.mubr.f32.gmra.mrb[88].mxu0 %v9490_v54  ;;  %v9501_v54 = vld [vmem:[#allocation41_spill] sm:$0xff] }
 0x1a1   : > { %5706 = vmatprep.mubr.f32.mxu0 %v9491_v2 }
 0x1a2   : > { %1803 = vmatmul.mubr.f32.gmra.mrb[102].mxu1 %v7815_v26 }
 0x1a3   : > { %1807 = vmatprep.mubr.f32.mxu1 %v7516_v11  ;;  %v9495_v11 = vld [vmem:[#allocation35_spill] sm:$0xff] }
 0x1a4   : > { %5707 = vmatmul.mubr.f32.gmra.mrb[90].mxu0 %v9492_v55 }
 0x1a5   : > { %5709 = vmatprep.mubr.f32.mxu0 %v9493_v8  ;;  %v9502_v8 = vld [vmem:[#allocation42_spill] sm:$0xff] }
 0x1a6   : > { %1808 = vmatmul.mubr.f32.gmra.mrb[104].mxu1 %v7821_v29 }
 0x1a7   : > { %1812 = vmatprep.mubr.f32.mxu1 %v7518_v12 }
 0x1a8   : > { %5710 = vmatmul.mubr.f32.gmra.mrb[92].mxu0 %v9494_v53  ;;  %v6644_v53 = vld [vmem:[#allocation2 + $0x90] sm:$0xff] }
 0x1a9   : > { %v5595_v39 = vpop.f32.mrb[0].mxu1  ;;  %5712 = vmatprep.mubr.f32.mxu0 %v9495_v11  ;;  %v9504_v11 = vld [vmem:[#allocation44_spill] sm:$0xff] }
 0x1aa   : > { %1813 = vmatmul.mubr.f32.gmra.mrb[106].mxu1 %v7827_v41  ;;  %v1394_v0 = vpop.f32.mrb[1].mxu1  ;;  %v9503_v39 = vld [vmem:[#allocation43_spill] sm:$0xff] }
 0x1ab   : > { %2285 = vmatprep.mubr.f32.mxu1 %v6639_v52 }
 0x1ac   : > { %5713 = vmatmul.mubr.f32.gmra.mrb[94].mxu0 %v9496_v43 }
 0x1ad   : > { %v7896_v14 = vpop.f32.mrb[2].mxu1  ;;  %5715 = vmatprep.mubr.f32.mxu0 %v9497_v63  ;;  %v6645_v63 = vld [vmem:[#allocation2 + $0xa8] sm:$0xff] }
 0x1ae   : > { %2286 = vmatmul.mubr.f32.vlgmr.msra.gmra.mrb[108].mxu1 %v7592_v62  ;;  %v7899_v12 = vpop.f32.mrb[3].mxu1  ;;  %v7913_v62 = vld [vmem:[%s7256_s20 + $0x38] sm:$0xff] }
 0x1af   : > { %2290 = vmatprep.mubr.f32.mxu1 %v6640_v57  ;;  %v9374_v50 = vmax.f32 %v7913_v62, 0.0  ;;  %v9505_v57 = vld [vmem:[#allocation45_spill] sm:$0xff] }
 0x1b0   : > { %5716 = vmatmul.mubr.f32.gmra.mrb[96].mxu0 %v9498_v17  ;;  %v9507_v17 = vld [vmem:[#allocation47_spill] sm:$0xff] }
 0x1b1   : > { %v7903_v24 = vpop.f32.mrb[4].mxu1  ;;  %5718 = vmatprep.mubr.f32.mxu0 %v9499_v4  ;;  %488 = vst [vmem:[#allocation2 + $0x270] sm:$0xff] %v9374_v50  ;;  %v6665_v50 = vld [vmem:[#allocation2 + $0x130] sm:$0xff] }
 0x1b2   : > { %2291 = vmatmul.mubr.f32.gmra.mrb[110].mxu1 %v7603_v60  ;;  %v7906_v16 = vpop.f32.mrb[5].mxu1 }
 0x1b3   : > { %2295 = vmatprep.mubr.f32.mxu1 %v6641_v20  ;;  %v9506_v20 = vld [vmem:[#allocation46_spill] sm:$0xff] }
 0x1b4   : > { %5719 = vmatmul.mubr.f32.gmra.mrb[98].mxu0 %v9500_v38  ;;  %v6646_v38 = vld [vmem:[#allocation2 + $0xb0] sm:$0xff] }
 0x1b5   : > { %v7916_v34 = vpop.f32.mrb[6].mxu1  ;;  %5721 = vmatprep.mubr.f32.mxu0 %v9501_v54 }
 0x1b6   : > { %2296 = vmatmul.mubr.f32.gmra.mrb[112].mxu1 %v7614_v7  ;;  %v7921_v60 = vpop.f32.mrb[7].mxu1  ;;  %v6643_v7 = vld [vmem:[#allocation2 + $0x88] sm:$0xff] }
 0x1b7   : > { %2300 = vmatprep.mubr.f32.mxu1 %v6642_v45 }
 0x1b8   : > { %5722 = vmatmul.mubr.f32.gmra.mrb[100].mxu0 %v9502_v8 }
 0x1b9   : > { %v7929_v2 = vpop.f32.mrb[8].mxu1  ;;  %5724 = vmatprep.mubr.f32.mxu0 %v9503_v39 }
 0x1ba   : > { %2301 = vmatmul.mubr.f32.gmra.mrb[114].mxu1 %v7625_v61  ;;  %v7932_v55 = vpop.f32.mrb[9].mxu1 }
 0x1bb   : > { %2305 = vmatprep.mubr.f32.mxu1 %v6643_v7  ;;  %v9508_v7 = vld [vmem:[#allocation48_spill] sm:$0xff] }
 0x1bc   : > { %5725 = vmatmul.mubr.f32.gmra.mrb[102].mxu0 %v9504_v11 }
 0x1bd   : > { %v7936_v0 = vpop.f32.mrb[10].mxu1  ;;  %5727 = vmatprep.mubr.f32.mxu0 %v9505_v57 }
 0x1be   : > { %2306 = vmatmul.mubr.f32.gmra.mrb[116].mxu1 %v7636_v32  ;;  %v7939_v52 = vpop.f32.mrb[11].mxu1 }
 0x1bf   : > { %2310 = vmatprep.mubr.f32.mxu1 %v6644_v53  ;;  %v1149_v45 = vpop.f32.mrb[0].mxu0  ;;  %v6647_v53 = vld [vmem:[#allocation2 + $0xc8] sm:$0xff] }
 0x1c0   : > { %5728 = vmatmul.mubr.f32.gmra.mrb[104].mxu0 %v9506_v20  ;;  %v1151_v54 = vpop.f32.mrb[1].mxu0  ;;  %v6650_v45 = vld [vmem:[#allocation2 + $0xe8] sm:$0xff] }
 0x1c1   : > { %v7943_v61 = vpop.f32.mrb[12].mxu1  ;;  %5730 = vmatprep.mubr.f32.mxu0 %v9507_v17  ;;  %v6649_v17 = vld [vmem:[#allocation2 + $0x89] sm:$0xff] }
 0x1c2   : > { %2311 = vmatmul.mubr.f32.gmra.mrb[118].mxu1 %v7647_v27  ;;  %v7946_v43 = vpop.f32.mrb[13].mxu1 }
 0x1c3   : > { %2315 = vmatprep.mubr.f32.mxu1 %v6645_v63  ;;  %v1154_v39 = vpop.f32.mrb[2].mxu0  ;;  %v6648_v63 = vld [vmem:[#allocation2 + $0xd0] sm:$0xff] }
 0x1c4   : > { %5731 = vmatmul.mubr.f32.gmra.mrb[106].mxu0 %v9508_v7  ;;  %v6652_v7 = vld [vmem:[#allocation2 + $0xa9] sm:$0xff] }
 0x1c5   : > { %v7950_v32 = vpop.f32.mrb[14].mxu1  ;;  %5765 = vmatprep.mubr.f32.mxu0 %v7851_v51 }
 0x1c6   : > { %2316 = vmatmul.mubr.f32.gmra.mrb[120].mxu1 %v7660_v28  ;;  %v7953_v4 = vpop.f32.mrb[15].mxu1  ;;  %v1156_v28 = vpop.f32.mrb[3].mxu0 }
 0x1c7   : > { %2320 = vmatprep.mubr.f32.mxu1 %v6646_v38 }
 0x1c8   : > { %5766 = vmatmul.mubr.f32.vlgmr.msra.gmra.mrb[108].mxu0 %v7856_v44 }
 0x1c9   : > { %v7957_v27 = vpop.f32.mrb[16].mxu1  ;;  %5768 = vmatprep.mubr.f32.mxu0 %v7859_v9 }
 0x1ca   : > { %2321 = vmatmul.mubr.f32.gmra.mrb[122].mxu1 %v7670_v22  ;;  %v7960_v8 = vpop.f32.mrb[17].mxu1 }
 0x1cb   : > { %2325 = vmatprep.mubr.f32.mxu1 %v6647_v53  ;;  %v1159_v51 = vpop.f32.mrb[4].mxu0  ;;  %v6653_v53 = vld [vmem:[#allocation2 + $0xf0] sm:$0xff] }
 0x1cc   : > { %v7970_v22 = vadd.f32 %v7899_v12, %v1159_v51  ;;  %v1161_v20 = vpop.f32.mrb[5].mxu0  ;;  %5769 = vmatmul.mubr.f32.gmra.mrb[110].mxu0 %v7864_v23  ;;  %v6651_v12 = vld [vmem:[#allocation2 + $0x91] sm:$0xff] }
 0x1cd   : > { %v7964_v11 = vpop.f32.mrb[18].mxu1  ;;  %5771 = vmatprep.mubr.f32.mxu0 %v6649_v17 }
 0x1ce   : > { %2326 = vmatmul.mubr.f32.gmra.mrb[124].mxu1 %v7675_v5  ;;  %v7967_v57 = vpop.f32.mrb[19].mxu1 }
 0x1cf   : > { %2330 = vmatprep.mubr.f32.mxu1 %v6648_v63  ;;  %v1164_v5 = vpop.f32.mrb[6].mxu0  ;;  %v6655_v63 = vld [vmem:[#allocation2 + $0xc9] sm:$0xff] }
 0x1d0   : > { %v7979_v38 = vadd.f32 %v7896_v14, %v1164_v5  ;;  %v1166_v54 = vpop.f32.mrb[7].mxu0  ;;  %5772 = vmatmul.mubr.f32.gmra.mrb[112].mxu0 %v6651_v12  ;;  %v6654_v14 = vld [vmem:[#allocation2 + $0xb1] sm:$0xff]  ;;  %v6656_v5 = vld [vmem:[#allocation2 + $0x108] sm:$0xff] }
 0x1d1   : > { %v7973_v44 = vpop.f32.mrb[20].mxu1  ;;  %5774 = vmatprep.mubr.f32.mxu0 %v6652_v7  ;;  %v6658_v12 = vld [vmem:[#allocation2 + $0xe9] sm:$0xff] }
 0x1d2   : > { %2331 = vmatmul.mubr.f32.gmra.mrb[126].mxu1 %v7681_v46  ;;  %v7976_v9 = vpop.f32.mrb[21].mxu1 }
 0x1d3   : > { %2335 = vmatprep.mubr.f32.mxu1 %v6650_v45  ;;  %v1169_v46 = vpop.f32.mrb[8].mxu0 }
 0x1d4   : > { %v7987_v28 = vadd.f32 %v7906_v16, %v1169_v46  ;;  %v1171_v51 = vpop.f32.mrb[9].mxu0  ;;  %5775 = vmatmul.mubr.f32.gmra.mrb[114].mxu0 %v6654_v14  ;;  %v6657_v16 = vld [vmem:[#allocation2 + $0xd1] sm:$0xff] }
 0x1d5   : > { %v7981_v23 = vpop.f32.mrb[22].mxu1  ;;  %5777 = vmatprep.mubr.f32.mxu0 %v6655_v63  ;;  %v6661_v63 = vld [vmem:[#allocation2 + $0x109] sm:$0xff] }
 0x1d6   : > { %2336 = vmatmul.mubr.f32.gmra.mrb[128].mxu1 %v7688_v3  ;;  %v7984_v39 = vpop.f32.mrb[23].mxu1 }
 0x1d7   : > { %2340 = vmatprep.mubr.f32.mxu1 %v6653_v53  ;;  %v1174_v3 = vpop.f32.mrb[10].mxu0  ;;  %v6659_v53 = vld [vmem:[#allocation2 + $0x110] sm:$0xff] }
 0x1d8   : > { %v7995_v45 = vadd.f32 %v7903_v24, %v1174_v3  ;;  %v1176_v54 = vpop.f32.mrb[11].mxu0  ;;  %5778 = vmatmul.mubr.f32.gmra.mrb[116].mxu0 %v6657_v16  ;;  %v6660_v24 = vld [vmem:[#allocation2 + $0xf1] sm:$0xff] }
 0x1d9   : > { %v7989_v20 = vpop.f32.mrb[24].mxu1  ;;  %5780 = vmatprep.mubr.f32.mxu0 %v6658_v12  ;;  %v6662_v54 = vld [vmem:[#allocation2 + $0x128] sm:$0xff] }
 0x1da   : > { %2341 = vmatmul.mubr.f32.gmra.mrb[130].mxu1 %v7694_v6  ;;  %v7992_v17 = vpop.f32.mrb[25].mxu1 }
 0x1db   : > { %2345 = vmatprep.mubr.f32.mxu1 %v6656_v5  ;;  %v1179_v6 = vpop.f32.mrb[12].mxu0 }
 0x1dc   : > { %v8003_v51 = vadd.f32 %v7921_v60, %v1179_v6  ;;  %v1181_v14 = vpop.f32.mrb[13].mxu0  ;;  %5781 = vmatmul.mubr.f32.gmra.mrb[118].mxu0 %v6660_v24  ;;  %v6663_v60 = vld [vmem:[#allocation2 + $0x111] sm:$0xff]  ;;  %v6664_v6 = vld [vmem:[#allocation2 + $0x129] sm:$0xff] }
 0x1dd   : > { %v7997_v7 = vpop.f32.mrb[26].mxu1  ;;  %5783 = vmatprep.mubr.f32.mxu0 %v6661_v63  ;;  %v3402_v24 = vld [vmem:[#allocation12 + $0x288] sm:$0xff] }
 0x1de   : > { %2346 = vmatmul.mubr.f32.gmra.mrb[132].mxu1 %v7701_v40  ;;  %v8000_v46 = vpop.f32.mrb[27].mxu1 }
 0x1df   : > { %2350 = vmatprep.mubr.f32.mxu1 %v6659_v53  ;;  %v1184_v40 = vpop.f32.mrb[14].mxu0 }
 0x1e0   : > { %v8011_v16 = vadd.f32 %v7916_v34, %v1184_v40  ;;  %v1186_v12 = vpop.f32.mrb[15].mxu0  ;;  %5784 = vmatmul.mubr.f32.gmra.mrb[120].mxu0 %v6663_v60  ;;  %v6666_v34 = vld [vmem:[#allocation2 + $0x131] sm:$0xff] }
 0x1e1   : > { %v8005_v3 = vpop.f32.mrb[28].mxu1  ;;  %5786 = vmatprep.mubr.f32.mxu0 %v6664_v6  ;;  %v6667_v12 = vld [vmem:[#allocation2 + $0x149] sm:$0xff] }
 0x1e2   : > { %2351 = vmatmul.mubr.f32.gmra.mrb[134].mxu1 %v7708_v15  ;;  %v8008_v5 = vpop.f32.mrb[29].mxu1  ;;  %v3401_v15 = vld [vmem:[#allocation12 + $0x280] sm:$0xff] }
 0x1e3   : > { %2355 = vmatprep.mubr.f32.mxu1 %v6662_v54  ;;  %v1189_v63 = vpop.f32.mrb[16].mxu0  ;;  %v6347_v54 = vpack.c.bf16 %v3402_v24, %v3401_v15  ;;  %v6670_v24 = vld [vmem:[#allocation2 + $0x169] sm:$0xff] }
 0x1e4   : > { %v1191_v35 = vpop.f32.mrb[17].mxu0  ;;  %5787 = vmatmul.mubr.f32.gmra.mrb[122].mxu0 %v6666_v34  ;;  %v8019_v40 = vadd.f32 %v7932_v55, %v1189_v63 }
 0x1e5   : > { %v8013_v53 = vpop.f32.mrb[30].mxu1  ;;  %5789 = vmatprep.mubr.f32.mxu0 %v6667_v12  ;;  %6348 = vmatprep.subr.bf16.mxu1 %v6347_v54  ;;  %v6669_v35 = vld [vmem:[#allocation2 + $0x151] sm:$0xff] }
 0x1e6   : > { %9509 = vst [vmem:[#allocation23_spill] sm:$0xff] %v8013_v53  ;;  %2356 = vmatmul.mubr.f32.gmra.mrb[136].mxu1 %v7715_v59  ;;  %v8016_v14 = vpop.f32.mrb[31].mxu1  ;;  %v6668_v53 = vld [vmem:[#allocation2 + $0x148] sm:$0xff] }
 0x1e7   : > { %2360 = vmatprep.mubr.f32.mxu1 %v6665_v50  ;;  %v1194_v6 = vpop.f32.mrb[18].mxu0  ;;  %6350 = vmatpush3.bf16.msra.mxu1 %v6347_v54  ;;  %v3369_v54 = vld [vmem:[#allocation12 + $0x180] sm:$0xff] }
 0x1e8   : > { %v1196_v50 = vpop.f32.mrb[19].mxu0  ;;  %5790 = vmatmul.mubr.f32.gmra.mrb[124].mxu0 %v6669_v35  ;;  %v8027_v15 = vadd.f32 %v7929_v2, %v1194_v6  ;;  %v6673_v2 = vld [vmem:[#allocation2 + $0x189] sm:$0xff] }
 0x1e9   : > { %v8021_v60 = vpop.f32.mrb[32].mxu1  ;;  %5792 = vmatprep.mubr.f32.mxu0 %v6670_v24  ;;  %v3370_v50 = vld [vmem:[#allocation12 + $0x188] sm:$0xff] }
 0x1ea   : > { %9510 = vst [vmem:[#allocation24_spill] sm:$0xff] %v8021_v60  ;;  %2361 = vmatmul.mubr.f32.gmra.mrb[138].mxu1 %v7722_v21  ;;  %v8024_v59 = vpop.f32.mrb[33].mxu1  ;;  %v6671_v21 = vld [vmem:[#allocation2 + $0x150] sm:$0xff]  ;;  %v6300_v6 = vpack.c.bf16 %v3370_v50, %v3369_v54  ;;  %v6674_v24 = vld [vmem:[#allocation2 + $0x168] sm:$0xff]  ;;  %v3372_v54 = vld [vmem:[#allocation12 + $0x198] sm:$0xff] }
 0x1eb   : > { %2365 = vmatprep.mubr.f32.mxu1 %v6668_v53  ;;  %v1199_v34 = vpop.f32.mrb[20].mxu0  ;;  %v6672_v60 = vld [vmem:[#allocation2 + $0x171] sm:$0xff] }
 0x1ec   : > { %v1201_v12 = vpop.f32.mrb[21].mxu0  ;;  %5793 = vmatmul.mubr.f32.gmra.mrb[126].mxu0 %v6672_v60  ;;  %v8031_v53 = vadd.f32 %v7939_v52, %v1199_v34  ;;  %v6676_v34 = vld [vmem:[#allocation2 + $0x1a9] sm:$0xff] }
 0x1ed   : > { %v5646_v55 = vpop.f32.mrb[34].mxu1  ;;  %5795 = vmatprep.mubr.f32.mxu0 %v6673_v2  ;;  %6301 = vmatpush1.bf16.msra.mxu0 %v6300_v6 }
 0x1ee   : > { %2366 = vmatmul.mubr.f32.gmra.mrb[140].mxu1 %v7729_v58  ;;  %v1564_v63 = vpop.f32.mrb[35].mxu1  ;;  %6302 = vmatprep.subr.bf16.mxu0 %v9465_v25 }
 0x1ef   : > { %2370 = vmatprep.mubr.f32.mxu1 %v6671_v21  ;;  %v1204_v58 = vpop.f32.mrb[22].mxu0  ;;  %v6675_v21 = vld [vmem:[#allocation2 + $0x191] sm:$0xff] }
 0x1f0   : > { %v1206_v63 = vpop.f32.mrb[23].mxu0  ;;  %5796 = vmatmul.mubr.f32.gmra.mrb[128].mxu0 %v6675_v21  ;;  %v8035_v60 = vadd.f32 %v7936_v0, %v1204_v58  ;;  %v3403_v58 = vld [vmem:[#allocation12 + $0x290] sm:$0xff] }
 0x1f1   : > { %v1639_v35 = vpop.f32.mrb[36].mxu1  ;;  %5798 = vmatprep.mubr.f32.mxu0 %v6676_v34  ;;  %v6679_v21 = vld [vmem:[#allocation2 + $0x1c9] sm:$0xff] }
 0x1f2   : > { %2371 = vmatmul.mubr.f32.gmra.mrb[142].mxu1 %v7736_v47  ;;  %v1641_v55 = vpop.f32.mrb[37].mxu1  ;;  %v3371_v47 = vld [vmem:[#allocation12 + $0x190] sm:$0xff]  ;;  %v3374_v34 = vld [vmem:[#allocation12 + $0x1a8] sm:$0xff] }
 0x1f3   : > { %2375 = vmatprep.mubr.f32.mxu1 %v6674_v24  ;;  %v1209_v50 = vpop.f32.mrb[24].mxu0  ;;  %v6677_v35 = vld [vmem:[#allocation2 + $0x170] sm:$0xff]  ;;  %v6303_v2 = vpack.c.bf16 %v3372_v54, %v3371_v47  ;;  %v3404_v24 = vld [vmem:[#allocation12 + $0x298] sm:$0xff] }
 0x1f4   : > { %v1211_v6 = vpop.f32.mrb[25].mxu0  ;;  %v6678_v55 = vld [vmem:[#allocation2 + $0x1b1] sm:$0xff]  ;;  %v8040_v0 = vadd.f32 %v7946_v43, %v1209_v50  ;;  %v6680_v50 = vld [vmem:[#allocation2 + $0x188] sm:$0xff] }
 0x1f5   : > { %v1644_v52 = vpop.f32.mrb[38].mxu1  ;;  %5799 = vmatmul.mubr.f32.gmra.mrb[130].mxu0 %v6678_v55  ;;  %v6681_v6 = vld [vmem:[#allocation2 + $0x1d1] sm:$0xff] }
 0x1f6   : > { %2376 = vmatmul.mubr.f32.gmra.mrb[144].mxu1 %v7743_v30  ;;  %v1646_v12 = vpop.f32.mrb[39].mxu1  ;;  %5801 = vmatprep.mubr.f32.mxu0 %v6679_v21  ;;  %v6351_v30 = vpack.c.bf16 %v3404_v24, %v3403_v58  ;;  %v3373_v52 = vld [vmem:[#allocation12 + $0x1a0] sm:$0xff]  ;;  %v3376_v58 = vld [vmem:[#allocation12 + $0x1b8] sm:$0xff] }
 0x1f7   : > { %2380 = vmatprep.mubr.f32.mxu1 %v6677_v35  ;;  %6304 = vmatpush1.bf16.msra.mxu0 %v6303_v2  ;;  %v6306_v54 = vpack.c.bf16 %v3374_v34, %v3373_v52  ;;  %v1214_v43 = vpop.f32.mrb[26].mxu0  ;;  %v6683_v34 = vld [vmem:[#allocation2 + $0x190] sm:$0xff] }
 0x1f8   : > { %6305 = vmatprep.subr.bf16.mxu0 %v9465_v25  ;;  %6352 = vmatprep.subr.bf16.mxu1 %v6351_v30  ;;  %v1216_v35 = vpop.f32.mrb[27].mxu0  ;;  %v8048_v2 = vadd.f32 %v7943_v61, %v1214_v43  ;;  %v6685_v43 = vld [vmem:[#allocation2 + $0x209] sm:$0xff] }
 0x1f9   : > { %v1649_v63 = vpop.f32.mrb[40].mxu1  ;;  %5802 = vmatmul.mubr.f32.gmra.mrb[132].mxu0 %v6681_v6  ;;  %6354 = vmatpush3.bf16.msra.mxu1 %v6351_v30  ;;  %v6684_v30 = vld [vmem:[#allocation2 + $0x1f1] sm:$0xff] }
 0x1fa   : > { %2381 = vmatmul.mubr.f32.gmra.mrb[146].mxu1 %v7750_v48  ;;  %v1651_v12 = vpop.f32.mrb[41].mxu1  ;;  %v8044_v47 = vadd.f32 %v1649_v63, %v7970_v22  ;;  %v6682_v48 = vld [vmem:[#allocation2 + $0x1e9] sm:$0xff] }
 0x1fb   : > { %2385 = vmatprep.mubr.f32.mxu1 %v6680_v50  ;;  %5804 = vmatprep.mubr.f32.mxu0 %v6682_v48  ;;  %v3375_v22 = vld [vmem:[#allocation12 + $0x1b0] sm:$0xff]  ;;  %v1219_v52 = vpop.f32.mrb[28].mxu0  ;;  %v3378_v50 = vld [vmem:[#allocation12 + $0x1c8] sm:$0xff] }
 0x1fc   : > { %6307 = vmatpush1.bf16.msra.mxu0 %v6306_v54  ;;  %v6309_v21 = vpack.c.bf16 %v3376_v58, %v3375_v22  ;;  %v1221_v61 = vpop.f32.mrb[29].mxu0  ;;  %v8056_v12 = vadd.f32 %v7953_v4, %v1219_v52  ;;  %v6686_v48 = vld [vmem:[#allocation2 + $0x1a8] sm:$0xff]  ;;  %v6687_v22 = vld [vmem:[#allocation2 + $0x211] sm:$0xff] }
 0x1fd   : > { %v1654_v55 = vpop.f32.mrb[42].mxu1  ;;  %6308 = vmatprep.subr.bf16.mxu0 %v9465_v25  ;;  %5805 = vmatmul.mubr.f32.gmra.mrb[134].mxu0 %v6684_v30  ;;  %v3380_v52 = vld [vmem:[#allocation12 + $0x1d8] sm:$0xff] }
 0x1fe   : > { %2386 = vmatmul.mubr.f32.gmra.mrb[148].mxu1 %v7757_v31  ;;  %v1656_v24 = vpop.f32.mrb[43].mxu1  ;;  %v8052_v63 = vadd.f32 %v1654_v55, %v7979_v38  ;;  %5807 = vmatprep.mubr.f32.mxu0 %v6685_v43  ;;  %v3377_v31 = vld [vmem:[#allocation12 + $0x1c0] sm:$0xff]  ;;  %v6690_v43 = vld [vmem:[#allocation2 + $0x231] sm:$0xff] }
 0x1ff   : > { %2390 = vmatprep.mubr.f32.mxu1 %v6683_v34  ;;  %v6312_v6 = vpack.c.bf16 %v3378_v50, %v3377_v31  ;;  %v1224_v55 = vpop.f32.mrb[30].mxu0 }
 0x200   : > { %6310 = vmatpush1.bf16.msra.mxu0 %v6309_v21  ;;  %v1226_v4 = vpop.f32.mrb[31].mxu0  ;;  %v8064_v58 = vadd.f32 %v7950_v32, %v1224_v55  ;;  %v6688_v21 = vld [vmem:[#allocation2 + $0x229] sm:$0xff] }
 0x201   : > { %v1659_v54 = vpop.f32.mrb[44].mxu1  ;;  %6311 = vmatprep.subr.bf16.mxu0 %v9465_v25  ;;  %5808 = vmatmul.mubr.f32.gmra.mrb[136].mxu0 %v6687_v22 }
 0x202   : > { %2391 = vmatmul.mubr.f32.gmra.mrb[150].mxu1 %v7764_v33  ;;  %v1661_v38 = vpop.f32.mrb[45].mxu1  ;;  %v8060_v35 = vadd.f32 %v1659_v54, %v7987_v28  ;;  %5810 = vmatprep.mubr.f32.mxu0 %v6688_v21  ;;  %v3379_v33 = vld [vmem:[#allocation12 + $0x1d0] sm:$0xff]  ;;  %v6692_v21 = vld [vmem:[#allocation2 + $0x1c8] sm:$0xff] }
 0x203   : > { %2395 = vmatprep.mubr.f32.mxu1 %v6686_v48  ;;  %v6315_v61 = vpack.c.bf16 %v3380_v52, %v3379_v33  ;;  %v1229_v30 = vpop.f32.mrb[32].mxu0  ;;  %v6689_v54 = vld [vmem:[#allocation2 + $0x1b0] sm:$0xff] }
 0x204   : > { %6313 = vmatpush1.bf16.msra.mxu0 %v6312_v6  ;;  %v1231_v32 = vpop.f32.mrb[33].mxu0  ;;  %v8072_v31 = vadd.f32 %v7960_v8, %v1229_v30  ;;  %v6691_v38 = vld [vmem:[#allocation2 + $0x249] sm:$0xff]  ;;  %v728_v30 = vld [vmem:[#allocation2 + $0x271] sm:$0xff] }
 0x205   : > { %v1664_v24 = vpop.f32.mrb[46].mxu1  ;;  %6314 = vmatprep.subr.bf16.mxu0 %v9465_v25  ;;  %5811 = vmatmul.mubr.f32.gmra.mrb[138].mxu0 %v6690_v43  ;;  %v3406_v6 = vld [vmem:[#allocation12 + $0x2a8] sm:$0xff]  ;;  %v6694_v43 = vld [vmem:[#allocation2 + $0x1d0] sm:$0xff] }
 0x206   : > { %2396 = vmatmul.mubr.f32.gmra.mrb[152].mxu1 %v7771_v36  ;;  %v1666_v28 = vpop.f32.mrb[47].mxu1  ;;  %v8068_v34 = vadd.f32 %v1664_v24, %v7995_v45  ;;  %5813 = vmatprep.mubr.f32.mxu0 %v6691_v38  ;;  %v3405_v36 = vld [vmem:[#allocation12 + $0x2a0] sm:$0xff]  ;;  %v727_v48 = vld [vmem:[#allocation2 + $0x269] sm:$0xff] }
 0x207   : > { %2400 = vmatprep.mubr.f32.mxu1 %v6689_v54  ;;  %v3381_v45 = vld [vmem:[#allocation12 + $0x1e0] sm:$0xff]  ;;  %v6355_v22 = vpack.c.bf16 %v3406_v6, %v3405_v36  ;;  %v3382_v24 = vld [vmem:[#allocation12 + $0x1e8] sm:$0xff]  ;;  %v1234_v8 = vpop.f32.mrb[34].mxu0  ;;  %v6693_v28 = vld [vmem:[#allocation2 + $0x251] sm:$0xff] }
 0x208   : > { %6316 = vmatpush1.bf16.msra.mxu0 %v6315_v61  ;;  %v6318_v33 = vpack.c.bf16 %v3382_v24, %v3381_v45  ;;  %v1236_v52 = vpop.f32.mrb[35].mxu0  ;;  %v8080_v61 = vadd.f32 %v7957_v27, %v1234_v8  ;;  %v3383_v38 = vld [vmem:[#allocation12 + $0x1f0] sm:$0xff]  ;;  %v3384_v36 = vld [vmem:[#allocation12 + $0x1f8] sm:$0xff]  ;;  %v3386_v8 = vld [vmem:[#allocation12 + $0x208] sm:$0xff] }
 0x209   : > { %v1669_v50 = vpop.f32.mrb[48].mxu1  ;;  %6317 = vmatprep.subr.bf16.mxu0 %v9465_v25  ;;  %5814 = vmatmul.mubr.f32.gmra.mrb[140].mxu0 %v6693_v28  ;;  %v6321_v45 = vpack.c.bf16 %v3384_v36, %v3383_v38  ;;  %v6696_v28 = vld [vmem:[#allocation2 + $0x1f0] sm:$0xff]  ;;  %v6697_v38 = vld [vmem:[#allocation2 + $0x208] sm:$0xff] }
 0x20a   : > { %2401 = vmatmul.mubr.f32.gmra.mrb[154].mxu1 %v7778_v37  ;;  %v1671_v55 = vpop.f32.mrb[49].mxu1  ;;  %v8076_v4 = vadd.f32 %v1669_v50, %v8003_v51  ;;  %6356 = vmatprep.subr.bf16.mxu1 %v6355_v22  ;;  %v3407_v36 = vld [vmem:[#allocation12 + $0x2b0] sm:$0xff] }
 0x20b   : > { %2405 = vmatprep.mubr.f32.mxu1 %v6692_v21  ;;  %5816 = vmatprep.mubr.f32.mxu0 %v727_v48  ;;  %v1239_v32 = vpop.f32.mrb[36].mxu0  ;;  %v6695_v48 = vld [vmem:[#allocation2 + $0x1e8] sm:$0xff] }
 0x20c   : > { %6319 = vmatpush1.bf16.msra.mxu0 %v6318_v33  ;;  %6358 = vmatpush3.bf16.msra.mxu1 %v6355_v22  ;;  %v1241_v50 = vpop.f32.mrb[37].mxu0  ;;  %v8088_v27 = vadd.f32 %v7967_v57, %v1239_v32  ;;  %v3385_v57 = vld [vmem:[#allocation12 + $0x200] sm:$0xff] }
 0x20d   : > { %v1674_v37 = vpop.f32.mrb[50].mxu1  ;;  %6320 = vmatprep.subr.bf16.mxu0 %v9465_v25  ;;  %5817 = vmatmul.mubr.f32.gmra.mrb[142].mxu0 %v728_v30  ;;  %v6324_v33 = vpack.c.bf16 %v3386_v8, %v3385_v57  ;;  %v3387_v30 = vld [vmem:[#allocation12 + $0x210] sm:$0xff] }
 0x20e   : > { %2406 = vmatmul.mubr.f32.gmra.mrb[156].mxu1 %v7785_v10  ;;  %v1676_v51 = vpop.f32.mrb[51].mxu1  ;;  %v8084_v54 = vadd.f32 %v1674_v37, %v8011_v16 }
 0x20f   : > { %2410 = vmatprep.mubr.f32.mxu1 %v6694_v43  ;;  %v1244_v55 = vpop.f32.mrb[38].mxu0  ;;  %v3388_v51 = vld [vmem:[#allocation12 + $0x218] sm:$0xff] }
 0x210   : > { %6322 = vmatpush1.bf16.msra.mxu0 %v6321_v45  ;;  %v1246_v22 = vpop.f32.mrb[39].mxu0  ;;  %v8095_v24 = vadd.f32 %v7964_v11, %v1244_v55  ;;  %v6327_v43 = vpack.c.bf16 %v3388_v51, %v3387_v30  ;;  %v3389_v55 = vld [vmem:[#allocation12 + $0x220] sm:$0xff]  ;;  %v6699_v51 = vld [vmem:[#allocation2 + $0x228] sm:$0xff] }
 0x211   : > { %v1679_v6 = vpop.f32.mrb[52].mxu1  ;;  %6323 = vmatprep.subr.bf16.mxu0 %v9465_v25 }
 0x212   : > { %v8091_v10 = vadd.f32 %v1679_v6, %v8019_v40  ;;  %2411 = vmatmul.mubr.f32.gmra.mrb[158].mxu1 %v7791_v13  ;;  %v1681_v16 = vpop.f32.mrb[53].mxu1  ;;  %v3408_v6 = vld [vmem:[#allocation12 + $0x2b8] sm:$0xff] }
 0x213   : > { %2415 = vmatprep.mubr.f32.mxu1 %v6695_v48  ;;  %v1249_v52 = vpop.f32.mrb[40].mxu0  ;;  %v6359_v16 = vpack.c.bf16 %v3408_v6, %v3407_v36  ;;  %v3390_v48 = vld [vmem:[#allocation12 + $0x228] sm:$0xff] }
 0x214   : > { %6325 = vmatpush1.bf16.msra.mxu0 %v6324_v33  ;;  %v1251_v37 = vpop.f32.mrb[41].mxu0  ;;  %v8103_v11 = vadd.f32 %v7976_v9, %v1249_v52  ;;  %v6330_v22 = vpack.c.bf16 %v3390_v48, %v3389_v55  ;;  %v3392_v52 = vld [vmem:[#allocation12 + $0x238] sm:$0xff]  ;;  %v6700_v55 = vld [vmem:[#allocation2 + $0x230] sm:$0xff] }
 0x215   : > { %v1684_v21 = vpop.f32.mrb[54].mxu1  ;;  %6326 = vmatprep.subr.bf16.mxu0 %v9465_v25  ;;  %6360 = vmatprep.subr.bf16.mxu1 %v6359_v16 }
 0x216   : > { %v8099_v40 = vadd.f32 %v1684_v21, %v8027_v15  ;;  %2416 = vmatmul.mubr.f32.gmra.mrb[160].mxu1 %v7797_v56  ;;  %v1686_v13 = vpop.f32.mrb[55].mxu1  ;;  %v6698_v21 = vld [vmem:[#allocation2 + $0x210] sm:$0xff] }
 0x217   : > { %2420 = vmatprep.mubr.f32.mxu1 %v6696_v28  ;;  %v1254_v50 = vpop.f32.mrb[42].mxu0  ;;  %6362 = vmatpush3.bf16.msra.mxu1 %v6359_v16  ;;  %v3391_v13 = vld [vmem:[#allocation12 + $0x230] sm:$0xff] }
 0x218   : > { %6328 = vmatpush1.bf16.msra.mxu0 %v6327_v43  ;;  %v1256_v9 = vpop.f32.mrb[43].mxu0  ;;  %v8111_v45 = vadd.f32 %v7973_v44, %v1254_v50  ;;  %v3393_v43 = vld [vmem:[#allocation12 + $0x240] sm:$0xff] }
 0x219   : > { %v1689_v32 = vpop.f32.mrb[56].mxu1  ;;  %6329 = vmatprep.subr.bf16.mxu0 %v9465_v25  ;;  %v3409_v50 = vld [vmem:[#allocation12 + $0x2c0] sm:$0xff] }
 0x21a   : > { %v8107_v15 = vadd.f32 %v1689_v32, %v8031_v53  ;;  %2421 = vmatmul.mubr.f32.gmra.mrb[162].mxu1 %v7803_v18  ;;  %v1691_v56 = vpop.f32.mrb[57].mxu1 }
 0x21b   : > { %2425 = vmatprep.mubr.f32.mxu1 %v6697_v38  ;;  %v1259_v8 = vpop.f32.mrb[44].mxu0  ;;  %v3394_v56 = vld [vmem:[#allocation12 + $0x248] sm:$0xff] }
 0x21c   : > { %6331 = vmatpush1.bf16.msra.mxu0 %v6330_v22  ;;  %v1261_v44 = vpop.f32.mrb[45].mxu0  ;;  %v8119_v33 = vadd.f32 %v7984_v39, %v1259_v8  ;;  %v6336_v36 = vpack.c.bf16 %v3394_v56, %v3393_v43  ;;  %v3396_v22 = vld [vmem:[#allocation12 + $0x258] sm:$0xff] }
 0x21d   : > { %v1694_v53 = vpop.f32.mrb[58].mxu1  ;;  %6332 = vmatprep.subr.bf16.mxu0 %v9465_v25 }
 0x21e   : > { %v8115_v18 = vadd.f32 %v1694_v53, %v8035_v60  ;;  %2426 = vmatmul.mubr.f32.gmra.mrb[164].mxu1 %v7809_v19  ;;  %v1696_v57 = vpop.f32.mrb[59].mxu1  ;;  %v6333_v60 = vpack.c.bf16 %v3392_v52, %v3391_v13  ;;  %v3395_v53 = vld [vmem:[#allocation12 + $0x250] sm:$0xff]  ;;  %v6701_v52 = vld [vmem:[#allocation2 + $0x248] sm:$0xff] }
 0x21f   : > { %2430 = vmatprep.mubr.f32.mxu1 %v6698_v21  ;;  %v1264_v30 = vpop.f32.mrb[46].mxu0  ;;  %v3411_v57 = vld [vmem:[#allocation12 + $0x2d0] sm:$0xff]  ;;  %v6339_v8 = vpack.c.bf16 %v3396_v22, %v3395_v53 }
 0x220   : > { %6334 = vmatpush1.bf16.msra.mxu0 %v6333_v60  ;;  %v1266_v32 = vpop.f32.mrb[47].mxu0  ;;  %v8127_v39 = vadd.f32 %v7981_v23, %v1264_v30  ;;  %v3398_v30 = vld [vmem:[#allocation12 + $0x268] sm:$0xff] }
 0x221   : > { %v1699_v28 = vpop.f32.mrb[60].mxu1  ;;  %6335 = vmatprep.subr.bf16.mxu0 %v9465_v25 }
 0x222   : > { %v8123_v37 = vadd.f32 %v1699_v28, %v8040_v0  ;;  %2431 = vmatmul.mubr.f32.gmra.mrb[166].mxu1 %v7815_v26  ;;  %v1701_v19 = vpop.f32.mrb[61].mxu1  ;;  %v3410_v0 = vld [vmem:[#allocation12 + $0x2c8] sm:$0xff] }
 0x223   : > { %2435 = vmatprep.mubr.f32.mxu1 %v6699_v51  ;;  %v6363_v9 = vpack.c.bf16 %v3410_v0, %v3409_v50  ;;  %v1269_v16 = vpop.f32.mrb[48].mxu0  ;;  %v3397_v19 = vld [vmem:[#allocation12 + $0x260] sm:$0xff] }
 0x224   : > { %6337 = vmatpush1.bf16.msra.mxu0 %v6336_v36  ;;  %v8135_v23 = vadd.f32 %v7992_v17, %v1269_v16  ;;  %v1271_v48 = vpop.f32.mrb[49].mxu0  ;;  %v3413_v51 = vld [vmem:[#allocation12 + $0x2e0] sm:$0xff]  ;;  %v6342_v32 = vpack.c.bf16 %v3398_v30, %v3397_v19  ;;  %v3399_v16 = vld [vmem:[#allocation12 + $0x270] sm:$0xff] }
 0x225   : > { %v1704_v38 = vpop.f32.mrb[62].mxu1  ;;  %6364 = vmatprep.subr.bf16.mxu1 %v6363_v9  ;;  %6338 = vmatprep.subr.bf16.mxu0 %v9465_v25 }
 0x226   : > { %v8131_v6 = vadd.f32 %v1704_v38, %v8048_v2  ;;  %2436 = vmatmul.mubr.f32.gmra.mrb[168].mxu1 %v7821_v29  ;;  %v1706_v26 = vpop.f32.mrb[63].mxu1  ;;  %v3412_v29 = vld [vmem:[#allocation12 + $0x2d8] sm:$0xff]  ;;  %v6702_v38 = vld [vmem:[#allocation2 + $0x250] sm:$0xff] }
 0x227   : > { %2440 = vmatprep.mubr.f32.mxu1 %v6700_v55  ;;  %6366 = vmatpush3.bf16.msra.mxu1 %v6363_v9  ;;  %v6367_v13 = vpack.c.bf16 %v3412_v29, %v3411_v57  ;;  %v1274_v17 = vpop.f32.mrb[50].mxu0  ;;  %v3415_v26 = vld [vmem:[#allocation12 + $0x2f0] sm:$0xff]  ;;  %v3416_v9 = vld [vmem:[#allocation12 + $0x2f8] sm:$0xff]  ;;  %v9511_v57 = vmax.f32 %v7910_v1, 0.0  ;;  %v9512_v1 = vmax.f32 %v7913_v62, 0.0  ;;  %v3256_v62 = vld [vmem:[#allocation12 + $0x108] sm:$0xff] }
 0x228   : > { %6340 = vmatpush1.bf16.msra.mxu0 %v6339_v8  ;;  %v8143_v28 = vadd.f32 %v7989_v20, %v1274_v17  ;;  %v1276_v60 = vpop.f32.mrb[51].mxu0  ;;  %v6375_v55 = vpack.c.bf16 %v3416_v9, %v3415_v26  ;;  %v568_v17 = vld [vmem:[#allocation2 + $0x26f] sm:$0xff] }
 0x229   : > { %v1709_v2 = vpop.f32.mrb[64].mxu1  ;;  %6368 = vmatprep.subr.bf16.mxu1 %v6367_v13  ;;  %6341 = vmatprep.subr.bf16.mxu0 %v9465_v25 }
 0x22a   : > { %v8139_v21 = vadd.f32 %v1709_v2, %v8056_v12  ;;  %2441 = vmatmul.mubr.f32.gmra.mrb[170].mxu1 %v7827_v41  ;;  %v1711_v44 = vpop.f32.mrb[65].mxu1  ;;  %v3414_v41 = vld [vmem:[#allocation12 + $0x2e8] sm:$0xff] }
 0x22b   : > { %2445 = vmatprep.mubr.f32.mxu1 %v6701_v52  ;;  %6370 = vmatpush3.bf16.msra.mxu1 %v6367_v13  ;;  %v6371_v50 = vpack.c.bf16 %v3414_v41, %v3413_v51  ;;  %v1279_v20 = vpop.f32.mrb[52].mxu0  ;;  %v567_v2 = vld [vmem:[#allocation2 + $0x267] sm:$0xff] }
 0x22c   : > { %6343 = vmatpush1.bf16.msra.mxu0 %v6342_v32  ;;  %v8151_v36 = vadd.f32 %v8000_v46, %v1279_v20  ;;  %v1281_v0 = vpop.f32.mrb[53].mxu0  ;;  %v3255_v41 = vld [vmem:[#allocation12 + $0x100] sm:$0xff] }
 0x22d   : > { %v1714_v12 = vpop.f32.mrb[66].mxu1  ;;  %6372 = vmatprep.subr.bf16.mxu1 %v6371_v50  ;;  %6344 = vmatprep.subr.bf16.mxu0 %v9465_v25 }
 0x22e   : > { %v8147_v43 = vadd.f32 %v1714_v12, %v8064_v58  ;;  %2446 = vmatmul.mubr.f32.gmra.mrb[172].mxu1 %v7834_v42  ;;  %v1716_v56 = vpop.f32.mrb[67].mxu1  ;;  %v3400_v42 = vld [vmem:[#allocation12 + $0x278] sm:$0xff] }
 0x22f   : > { %2450 = vmatprep.mubr.f32.mxu1 %v6702_v38  ;;  %6374 = vmatpush3.bf16.msra.mxu1 %v6371_v50  ;;  %v6345_v22 = vpack.c.bf16 %v3400_v42, %v3399_v16  ;;  %v1284_v46 = vpop.f32.mrb[54].mxu0  ;;  %v8181_v50 = vpack.c.bf16 %v3256_v62, %v3255_v41  ;;  %v9513_v16 = vld [vmem:[#allocation23_spill] sm:$0xff] }
 0x230   : > { %6376 = vmatprep.subr.bf16.mxu1 %v6375_v55  ;;  %v8161_v8 = vadd.f32 %v7997_v7, %v1284_v46  ;;  %v1286_v29 = vpop.f32.mrb[55].mxu0 }
 0x231   : > { %v1719_v58 = vpop.f32.mrb[68].mxu1  ;;  %6346 = vmatpush1.bf16.msra.mxu0 %v6345_v22 }
 0x232   : > { %v8155_v48 = vadd.f32 %v1719_v58, %v8072_v31  ;;  %2451 = vmatmul.mubr.f32.gmra.mrb[174].mxu1 %v7841_v49  ;;  %v1721_v53 = vpop.f32.mrb[69].mxu1  ;;  %6428 = vmatprep.subr.bf16.mxu0 %v8181_v50 }
 0x233   : > { %2455 = vmatprep.mubr.f32.mxu1 %v9511_v57  ;;  %6378 = vmatpush3.bf16.msra.mxu1 %v6375_v55  ;;  %v1289_v13 = vpop.f32.mrb[56].mxu0 }
 0x234   : > { %6379 = vmatprep.subr.bf16.mxu1 %v9465_v25  ;;  %v8170_v52 = vadd.f32 %v8008_v5, %v1289_v13  ;;  %v1291_v7 = vpop.f32.mrb[57].mxu0 }
 0x235   : > { %v1724_v44 = vpop.f32.mrb[70].mxu1 }
 0x236   : > { %v8164_v31 = vadd.f32 %v1724_v44, %v8080_v61  ;;  %2456 = vmatmul.mubr.f32.gmra.mrb[176].mxu1 %v567_v2  ;;  %v1726_v49 = vpop.f32.mrb[71].mxu1  ;;  %v9514_v44 = vld [vmem:[#allocation24_spill] sm:$0xff] }
 0x237   : > { %2460 = vmatprep.mubr.f32.mxu1 %v9512_v1  ;;  %v1294_v30 = vpop.f32.mrb[58].mxu0 }
 0x238   : > { %v8176_v51 = vadd.f32 %v8005_v3, %v1294_v30  ;;  %v1296_v12 = vpop.f32.mrb[59].mxu0 }
 0x239   : > { %v1729_v60 = vpop.f32.mrb[72].mxu1 }
 0x23a   : > { %v8173_v19 = vadd.f32 %v1729_v60, %v8088_v27  ;;  %2461 = vmatmul.mubr.f32.gmra.mrb[178].mxu1 %v568_v17  ;;  %v1731_v61 = vpop.f32.mrb[73].mxu1 }
 0x23b   : > { %v1299_v20 = vpop.f32.mrb[60].mxu0 }
 0x23c   : > { %v8184_v27 = vadd.f32 %v8016_v14, %v1299_v20  ;;  %v1301_v38 = vpop.f32.mrb[61].mxu0 }
 0x23d   : > { %v1734_v32 = vpop.f32.mrb[74].mxu1 }
 0x23e   : > { %v8179_v56 = vadd.f32 %v1734_v32, %v8095_v24  ;;  %v1736_v5 = vpop.f32.mrb[75].mxu1 }
 0x23f   : > { %v1304_v9 = vpop.f32.mrb[62].mxu0 }
 0x240   : > { %v8191_v58 = vadd.f32 %v9513_v16, %v1304_v9  ;;  %v1306_v24 = vpop.f32.mrb[63].mxu0 }
 0x241   : > { %v1739_v0 = vpop.f32.mrb[76].mxu1 }
 0x242   : > { %v8188_v3 = vadd.f32 %v1739_v0, %v8103_v11  ;;  %v1741_v26 = vpop.f32.mrb[77].mxu1 }
 0x243   : > { %v1309_v14 = vpop.f32.mrb[64].mxu0 }
 0x244   : > { %v8197_v22 = vadd.f32 %v8024_v59, %v1309_v14  ;;  %v1311_v46 = vpop.f32.mrb[65].mxu0 }
 0x245   : > { %v1744_v55 = vpop.f32.mrb[78].mxu1 }
 0x246   : > { %v8194_v42 = vadd.f32 %v1744_v55, %v8111_v45  ;;  %v1746_v53 = vpop.f32.mrb[79].mxu1 }
 0x247   : > { %v1314_v29 = vpop.f32.mrb[66].mxu0 }
 0x248   : > { %v8203_v49 = vadd.f32 %v9514_v44, %v1314_v29  ;;  %v1316_v13 = vpop.f32.mrb[67].mxu0 }
 0x249   : > { %v1749_v57 = vpop.f32.mrb[80].mxu1 }
 0x24a   : > { %v8200_v11 = vadd.f32 %v1749_v57, %v8119_v33  ;;  %v1751_v2 = vpop.f32.mrb[81].mxu1 }
 0x24b   : > { %v1319_v7 = vpop.f32.mrb[68].mxu0 }
 0x24c   : > { %v1321_v60 = vpop.f32.mrb[69].mxu0 }
 0x24d   : > { %v1754_v1 = vpop.f32.mrb[82].mxu1 }
 0x24e   : > { %v8206_v45 = vadd.f32 %v1754_v1, %v8127_v39  ;;  %v1756_v17 = vpop.f32.mrb[83].mxu1 }
 0x24f   : > { %v1324_v33 = vpop.f32.mrb[70].mxu0 }
 0x250   : > { %v1326_v12 = vpop.f32.mrb[71].mxu0 }
 0x251   : > { %v1759_v59 = vpop.f32.mrb[84].mxu1 }
 0x252   : > { %v8209_v61 = vadd.f32 %v1759_v59, %v8135_v23  ;;  %v1761_v30 = vpop.f32.mrb[85].mxu1 }
 0x253   : > { %v5681_v5 = vpop.f32.mrb[72].mxu0 }
 0x254   : > { %v1884_v20 = vpop.f32.mrb[73].mxu0 }
 0x255   : > { %v1764_v32 = vpop.f32.mrb[86].mxu1 }
 0x256   : > { %v8212_v41 = vadd.f32 %v1764_v32, %v8143_v28  ;;  %v1766_v62 = vpop.f32.mrb[87].mxu1 }
 0x257   : > { %v5684_v26 = vpop.f32.mrb[74].mxu0 }
 0x258   : > { %v8218_v9 = vadd.f32 %v5684_v26, %v8052_v63  ;;  %v1894_v23 = vpop.f32.mrb[75].mxu0 }
 0x259   : > { %v1769_v38 = vpop.f32.mrb[88].mxu1  ;;  %v8221_v24 = vadd.f32 %v1894_v23, %v8044_v47 }
 0x25a   : > { %v8215_v39 = vadd.f32 %v1769_v38, %v8151_v36  ;;  %v1771_v0 = vpop.f32.mrb[89].mxu1 }
 0x25b   : > { %v5687_v53 = vpop.f32.mrb[76].mxu0 }
 0x25c   : > { %v8227_v14 = vadd.f32 %v5687_v53, %v8068_v34  ;;  %v1904_v36 = vpop.f32.mrb[77].mxu0 }
 0x25d   : > { %v1774_v16 = vpop.f32.mrb[90].mxu1  ;;  %v8230_v57 = vadd.f32 %v1904_v36, %v8060_v35 }
 0x25e   : > { %v8224_v28 = vadd.f32 %v1774_v16, %v8161_v8  ;;  %v1776_v55 = vpop.f32.mrb[91].mxu1 }
 0x25f   : > { %v5690_v29 = vpop.f32.mrb[78].mxu0 }
 0x260   : > { %v8236_v47 = vadd.f32 %v5690_v29, %v8084_v54  ;;  %v1914_v8 = vpop.f32.mrb[79].mxu0 }
 0x261   : > { %v1779_v46 = vpop.f32.mrb[92].mxu1  ;;  %v8239_v13 = vadd.f32 %v1914_v8, %v8076_v4 }
 0x262   : > { %v8233_v63 = vadd.f32 %v1779_v46, %v8170_v52  ;;  %v1781_v2 = vpop.f32.mrb[93].mxu1 }
 0x263   : > { %v5693_v17 = vpop.f32.mrb[80].mxu0 }
 0x264   : > { %v8245_v35 = vadd.f32 %v5693_v17, %v8099_v40  ;;  %v1924_v52 = vpop.f32.mrb[81].mxu0 }
 0x265   : > { %v1784_v44 = vpop.f32.mrb[94].mxu1  ;;  %v8248_v60 = vadd.f32 %v1924_v52, %v8091_v10 }
 0x266   : > { %v8242_v34 = vadd.f32 %v1784_v44, %v8176_v51  ;;  %v1786_v1 = vpop.f32.mrb[95].mxu1 }
 0x267   : > { %v5696_v30 = vpop.f32.mrb[82].mxu0 }
 0x268   : > { %v8254_v4 = vadd.f32 %v5696_v30, %v8115_v18  ;;  %v1934_v51 = vpop.f32.mrb[83].mxu0 }
 0x269   : > { %v1789_v7 = vpop.f32.mrb[96].mxu1  ;;  %v8257_v12 = vadd.f32 %v1934_v51, %v8107_v15 }
 0x26a   : > { %v8251_v54 = vadd.f32 %v1789_v7, %v8184_v27  ;;  %v1791_v59 = vpop.f32.mrb[97].mxu1 }
 0x26b   : > { %v5699_v62 = vpop.f32.mrb[84].mxu0 }
 0x26c   : > { %v8261_v10 = vadd.f32 %v5699_v62, %v8131_v6  ;;  %v1944_v5 = vpop.f32.mrb[85].mxu0 }
 0x26d   : > { %v1794_v33 = vpop.f32.mrb[98].mxu1  ;;  %v8264_v20 = vadd.f32 %v1944_v5, %v8123_v37 }
 0x26e   : > { %v1795_v40 = vadd.f32 %v1794_v33, %v8191_v58  ;;  %v1796_v32 = vpop.f32.mrb[99].mxu1 }
 0x26f   : > { %v5702_v0 = vpop.f32.mrb[86].mxu0 }
 0x270   : > { %v8268_v26 = vadd.f32 %v5702_v0, %v8147_v43  ;;  %v1954_v15 = vpop.f32.mrb[87].mxu0 }
 0x271   : > { %v1799_v27 = vpop.f32.mrb[100].mxu1  ;;  %v8271_v58 = vadd.f32 %v1954_v15, %v8139_v21 }
 0x272   : > { %v1800_v18 = vadd.f32 %v1799_v27, %v8197_v22  ;;  %v1801_v38 = vpop.f32.mrb[101].mxu1 }
 0x273   : > { %v5705_v55 = vpop.f32.mrb[88].mxu0 }
 0x274   : > { %v8275_v53 = vadd.f32 %v5705_v55, %v8164_v31  ;;  %v1964_v37 = vpop.f32.mrb[89].mxu0 }
 0x275   : > { %v1804_v23 = vpop.f32.mrb[102].mxu1  ;;  %v8278_v22 = vadd.f32 %v1964_v37, %v8155_v48 }
 0x276   : > { %v1805_v6 = vadd.f32 %v1804_v23, %v8203_v49  ;;  %v1806_v16 = vpop.f32.mrb[103].mxu1 }
 0x277   : > { %v5708_v43 = vpop.f32.mrb[90].mxu0 }
 0x278   : > { %v8281_v2 = vadd.f32 %v5708_v43, %v8179_v56  ;;  %v1974_v29 = vpop.f32.mrb[91].mxu0 }
 0x279   : > { %v1809_v36 = vpop.f32.mrb[104].mxu1  ;;  %v8284_v8 = vadd.f32 %v1974_v29, %v8173_v19 }
 0x27a   : > { %v1811_v46 = vpop.f32.mrb[105].mxu1 }
 0x27b   : > { %v5711_v44 = vpop.f32.mrb[92].mxu0 }
 0x27c   : > { %v8287_v31 = vadd.f32 %v5711_v44, %v8194_v42  ;;  %v1984_v1 = vpop.f32.mrb[93].mxu0 }
 0x27d   : > { %v1814_v21 = vpop.f32.mrb[106].mxu1  ;;  %v8290_v17 = vadd.f32 %v1984_v1, %v8188_v3 }
 0x27e   : > { %v1816_v49 = vpop.f32.mrb[107].mxu1 }
 0x27f   : > { %v5714_v7 = vpop.f32.mrb[94].mxu0 }
 0x280   : > { %v8293_v56 = vadd.f32 %v5714_v7, %v8206_v45  ;;  %v1994_v59 = vpop.f32.mrb[95].mxu0 }
 0x281   : > { %v2287_v48 = vpop.f32.mrb[108].mxu1  ;;  %v8296_v30 = vadd.f32 %v1994_v59, %v8200_v11 }
 0x282   : > { %v2289_v52 = vpop.f32.mrb[109].mxu1 }
 0x283   : > { %v5717_v33 = vpop.f32.mrb[96].mxu0 }
 0x284   : > { %v8299_v42 = vadd.f32 %v5717_v33, %v8212_v41  ;;  %v2004_v32 = vpop.f32.mrb[97].mxu0 }
 0x285   : > { %v2292_v19 = vpop.f32.mrb[110].mxu1  ;;  %v8302_v3 = vadd.f32 %v2004_v32, %v8209_v61 }
 0x286   : > { %v2294_v51 = vpop.f32.mrb[111].mxu1 }
 0x287   : > { %v5720_v27 = vpop.f32.mrb[98].mxu0 }
 0x288   : > { %v8305_v45 = vadd.f32 %v5720_v27, %v8224_v28  ;;  %v2014_v38 = vpop.f32.mrb[99].mxu0 }
 0x289   : > { %v2297_v62 = vpop.f32.mrb[112].mxu1  ;;  %v8308_v11 = vadd.f32 %v2014_v38, %v8215_v39 }
 0x28a   : > { %v2299_v5 = vpop.f32.mrb[113].mxu1 }
 0x28b   : > { %v5723_v23 = vpop.f32.mrb[100].mxu0 }
 0x28c   : > { %v8311_v41 = vadd.f32 %v5723_v23, %v8242_v34  ;;  %v2024_v16 = vpop.f32.mrb[101].mxu0 }
 0x28d   : > { %v2302_v0 = vpop.f32.mrb[114].mxu1  ;;  %v8314_v61 = vadd.f32 %v2024_v16, %v8233_v63 }
 0x28e   : > { %v2304_v15 = vpop.f32.mrb[115].mxu1 }
 0x28f   : > { %v5726_v36 = vpop.f32.mrb[102].mxu0 }
 0x290   : > { %v8316_v46 = vadd.f32 %v5726_v36, %v1795_v40  ;;  %v2034_v28 = vpop.f32.mrb[103].mxu0 }
 0x291   : > { %v2307_v55 = vpop.f32.mrb[116].mxu1  ;;  %v8319_v43 = vadd.f32 %v2034_v28, %v8251_v54 }
 0x292   : > { %v2309_v37 = vpop.f32.mrb[117].mxu1 }
 0x293   : > { %v5729_v21 = vpop.f32.mrb[104].mxu0 }
 0x294   : > { %v8321_v49 = vadd.f32 %v5729_v21, %v1805_v6  ;;  %v2044_v34 = vpop.f32.mrb[105].mxu0  ;;  %v8328_v6 = vld [vmem:[%s9329_s3] ss:$0 sm:$0xff] }
 0x295   : > { %v2312_v39 = vpop.f32.mrb[118].mxu1  ;;  %v8323_v44 = vadd.f32 %v2044_v34, %v1800_v18 }
 0x296   : > { %v2314_v29 = vpop.f32.mrb[119].mxu1 }
 0x297   : > { %v5732_v48 = vpop.f32.mrb[106].mxu0 }
 0x298   : > { %v2054_v52 = vpop.f32.mrb[107].mxu0 }
 0x299   : > { %v2317_v1 = vpop.f32.mrb[120].mxu1 }
 0x29a   : > { %v2319_v63 = vpop.f32.mrb[121].mxu1 }
 0x29b   : > { %v5767_v40 = vpop.f32.mrb[108].mxu0 }
 0x29c   : > { %v2532_v19 = vpop.f32.mrb[109].mxu0 }
 0x29d   : > { %v2322_v7 = vpop.f32.mrb[122].mxu1 }
 0x29e   : > { %v2324_v59 = vpop.f32.mrb[123].mxu1 }
 0x29f   : > { %v5770_v54 = vpop.f32.mrb[110].mxu0 }
 0x2a0   : > { %v2548_v32 = vadd.f32 %v5770_v54, %v2302_v0  ;;  %v2542_v5 = vpop.f32.mrb[111].mxu0 }
 0x2a1   : > { %v2327_v51 = vpop.f32.mrb[124].mxu1  ;;  %v2543_v18 = vadd.f32 %v2542_v5, %v2297_v62 }
 0x2a2   : > { %v2329_v33 = vpop.f32.mrb[125].mxu1  ;;  %v2714_v38 = vadd.f32 %v2548_v32, %v8218_v9 }
 0x2a3   : > { %v2713_v23 = vadd.f32 %v2543_v18, %v8221_v24  ;;  %v5773_v16 = vpop.f32.mrb[112].mxu0 }
 0x2a4   : > { %v8333_v37 = vadd.f32 %v8328_v6, %v2714_v38  ;;  %v2558_v36 = vadd.f32 %v5773_v16, %v2312_v39  ;;  %v2552_v28 = vpop.f32.mrb[113].mxu0  ;;  %v3223_v38 = vld [vmem:[#allocation12] sm:$0xff] }
 0x2a5   : > { %v2332_v27 = vpop.f32.mrb[126].mxu1  ;;  %v2756_v0 = vadd.f32 %v8328_v6, %v2713_v23  ;;  %v2553_v29 = vadd.f32 %v2552_v28, %v2307_v55 }
 0x2a6   : > { %v2334_v15 = vpop.f32.mrb[127].mxu1  ;;  %v2793_v34 = vmax.f32 %v8333_v37, 0.0  ;;  %v2716_v62 = vadd.f32 %v2558_v36, %v8227_v14  ;;  %v3257_v37 = vld [vmem:[#allocation12 + $0x110] sm:$0xff]  ;;  %v3258_v36 = vld [vmem:[#allocation12 + $0x118] sm:$0xff] }
 0x2a7   : > { %v8338_v48 = vmax.f32 %v2756_v0, 0.0  ;;  %v2715_v9 = vadd.f32 %v2553_v29, %v8230_v57  ;;  %v5776_v24 = vpop.f32.mrb[114].mxu0  ;;  %v3224_v15 = vld [vmem:[#allocation12 + $0x8] sm:$0xff] }
 0x2a8   : > { %2829 = vst [vmem:[#allocation4 + $0x30] sm:$0xff] %v2793_v34  ;;  %v8342_v52 = vadd.f32 %v8328_v6, %v2716_v62  ;;  %v2568_v39 = vadd.f32 %v5776_v24, %v2322_v7  ;;  %v2562_v59 = vpop.f32.mrb[115].mxu0 }
 0x2a9   : > { %v2337_v21 = vpop.f32.mrb[128].mxu1  ;;  %2828 = vst [vmem:[#allocation4 + $0x28] sm:$0xff] %v8338_v48  ;;  %v2758_v55 = vadd.f32 %v8328_v6, %v2715_v9  ;;  %v2563_v40 = vadd.f32 %v2562_v59, %v2317_v1  ;;  %3481 = vmatprep.mubr.f32.mxu0 %v8338_v48  ;;  %v3225_v9 = vld [vmem:[#allocation12 + $0x10] sm:$0xff] }
 0x2aa   : > { %v2339_v63 = vpop.f32.mrb[129].mxu1  ;;  %v2795_v14 = vmax.f32 %v8342_v52, 0.0  ;;  %v2718_v33 = vadd.f32 %v2568_v39, %v8236_v47  ;;  %v3232_v52 = vld [vmem:[#allocation12 + $0x48] sm:$0xff] }
 0x2ab   : > { %v8349_v54 = vmax.f32 %v2758_v55, 0.0  ;;  %v2717_v32 = vadd.f32 %v2563_v40, %v8239_v13  ;;  %v5779_v5 = vpop.f32.mrb[116].mxu0  ;;  %v6380_v63 = vpack.c.bf16 %v3224_v15, %v3223_v38  ;;  %v3226_v40 = vld [vmem:[#allocation12 + $0x18] sm:$0xff] }
 0x2ac   : > { %2831 = vst [vmem:[#allocation4 + $0x50] sm:$0xff] %v2795_v14  ;;  %v8355_v7 = vadd.f32 %v8328_v6, %v2718_v33  ;;  %v2578_v1 = vadd.f32 %v5779_v5, %v2332_v27  ;;  %v2572_v18 = vpop.f32.mrb[117].mxu0  ;;  %v3259_v5 = vld [vmem:[#allocation12 + $0x120] sm:$0xff] }
 0x2ad   : > { %v2342_v19 = vpop.f32.mrb[130].mxu1  ;;  %2830 = vst [vmem:[#allocation4 + $0x48] sm:$0xff] %v8349_v54  ;;  %v2760_v47 = vadd.f32 %v8328_v6, %v2717_v32  ;;  %v2573_v23 = vadd.f32 %v2572_v18, %v2327_v51 }
 0x2ae   : > { %v2344_v57 = vpop.f32.mrb[131].mxu1  ;;  %v2797_v13 = vmax.f32 %v8355_v7, 0.0  ;;  %v2720_v28 = vadd.f32 %v2578_v1, %v8245_v35  ;;  %v6431_v35 = vpack.c.bf16 %v3258_v36, %v3257_v37  ;;  %v3260_v1 = vld [vmem:[#allocation12 + $0x128] sm:$0xff]  ;;  %v3227_v37 = vld [vmem:[#allocation12 + $0x20] sm:$0xff] }
 0x2af   : > { %v8361_v29 = vmax.f32 %v2760_v47, 0.0  ;;  %v2719_v27 = vadd.f32 %v2573_v23, %v8248_v60  ;;  %v5782_v62 = vpop.f32.mrb[118].mxu0  ;;  %v3058_v57 = vld [vmem:[#allocation4 + $0x31] sm:$0xff] }
 0x2b0   : > { %2833 = vst [vmem:[#allocation4 + $0x70] sm:$0xff] %v2797_v13  ;;  %v8367_v51 = vadd.f32 %v8328_v6, %v2720_v28  ;;  %v2588_v24 = vadd.f32 %v5782_v62, %v2342_v19  ;;  %v2582_v39 = vpop.f32.mrb[119].mxu0  ;;  %v3057_v59 = vld [vmem:[#allocation4 + $0x29] sm:$0xff] }
 0x2b1   : > { %v2347_v16 = vpop.f32.mrb[132].mxu1  ;;  %v8369_v55 = vld [vmem:[#allocation4 + $0x27] sm:$0xff]  ;;  %2832 = vst [vmem:[#allocation4 + $0x68] sm:$0xff] %v8361_v29  ;;  %v2762_v60 = vadd.f32 %v8328_v6, %v2719_v27  ;;  %v2583_v33 = vadd.f32 %v2582_v39, %v2337_v21  ;;  %5851 = vmatprep.mubr.f32.mxu1 %v3057_v59  ;;  %v6383_v21 = vpack.c.bf16 %v3226_v40, %v3225_v9  ;;  %v3262_v39 = vld [vmem:[#allocation12 + $0x138] sm:$0xff] }
 0x2b2   : > { %v2349_v0 = vpop.f32.mrb[133].mxu1  ;;  %3482 = vmatmul.mubr.f32.vlgmr.msra.gmra.mrb[144].mxu0 %v8369_v55  ;;  %v9376_v19 = vmax.f32 %v8367_v51, 0.0  ;;  %v2722_v18 = vadd.f32 %v2588_v24, %v8254_v4  ;;  %5852 = vmatmul.mubr.f32.vlgmr.msra.gmra.mrb[180].mxu1 %v3058_v57  ;;  %v6435_v27 = vpack.c.bf16 %v3260_v1, %v3259_v5  ;;  %v3261_v24 = vld [vmem:[#allocation12 + $0x130] sm:$0xff] }
 0x2b3   : > { %3486 = vmatprep.mubr.f32.mxu0 %v2793_v34  ;;  %v8376_v15 = vmax.f32 %v2762_v60, 0.0  ;;  %v2721_v47 = vadd.f32 %v2583_v33, %v8257_v12  ;;  %v5785_v23 = vpop.f32.mrb[120].mxu0  ;;  %6430 = vmatpush3.bf16.msra.mxu0 %v8181_v50  ;;  %v8385_v34 = vld [vmem:[#allocation4 + $0x2f] sm:$0xff] }
 0x2b4   : > { %6381 = vmatpush1.bf16.msra.mxu1 %v6380_v63  ;;  %2835 = vst [vmem:[#allocation4 + $0x90] sm:$0xff] %v9376_v19  ;;  %v2765_v36 = vadd.f32 %v8328_v6, %v2722_v18  ;;  %v2592_v4 = vpop.f32.mrb[121].mxu0  ;;  %v8383_v0 = vld [vmem:[#allocation4 + $0x49] sm:$0xff]  ;;  %6432 = vmatprep.subr.bf16.mxu0 %v6431_v35  ;;  %v8392_v9 = vld [vmem:[#allocation4 + $0x51] sm:$0xff] }
 0x2b5   : > { %v2352_v32 = vpop.f32.mrb[134].mxu1  ;;  %6382 = vmatprep.subr.bf16.mxu1 %v9465_v25  ;;  %v3228_v12 = vld [vmem:[#allocation12 + $0x28] sm:$0xff]  ;;  %2834 = vst [vmem:[#allocation4 + $0x88] sm:$0xff] %v8376_v15  ;;  %v2764_v50 = vadd.f32 %v8328_v6, %v2721_v47  ;;  %v2593_v62 = vadd.f32 %v2592_v4, %v2347_v16  ;;  %5854 = vmatprep.mubr.f32.mxu1 %v8383_v0  ;;  %v3229_v5 = vld [vmem:[#allocation12 + $0x30] sm:$0xff] }
 0x2b6   : > { %v2354_v38 = vpop.f32.mrb[135].mxu1  ;;  %v2598_v28 = vadd.f32 %v5785_v23, %v2352_v32  ;;  %3487 = vmatmul.mubr.f32.gmra.mrb[146].mxu0 %v8385_v34  ;;  %v8394_v59 = vmax.f32 %v2765_v36, 0.0  ;;  %5855 = vmatmul.mubr.f32.gmra.mrb[182].mxu1 %v8392_v9  ;;  %v6386_v32 = vpack.c.bf16 %v3228_v12, %v3227_v37  ;;  %v6439_v47 = vpack.c.bf16 %v3262_v39, %v3261_v24  ;;  %v3230_v23 = vld [vmem:[#allocation12 + $0x38] sm:$0xff]  ;;  %v3263_v36 = vld [vmem:[#allocation12 + $0x140] sm:$0xff] }
 0x2b7   : > { %3491 = vmatprep.mubr.f32.mxu0 %v8349_v54  ;;  %v8399_v33 = vmax.f32 %v2764_v50, 0.0  ;;  %v2723_v16 = vadd.f32 %v2593_v62, %v8264_v20  ;;  %v5788_v57 = vpop.f32.mrb[122].mxu0  ;;  %6434 = vmatpush3.bf16.msra.mxu0 %v6431_v35  ;;  %v8406_v38 = vld [vmem:[#allocation4 + $0x47] sm:$0xff]  ;;  %v8413_v37 = vld [vmem:[#allocation4 + $0x71] sm:$0xff]  ;;  %v6389_v39 = vpack.c.bf16 %v3230_v23, %v3229_v5 }
 0x2b8   : > { %9515 = vst [vmem:[#allocation25_spill] sm:$0xff] %v8394_v59  ;;  %v2724_v40 = vadd.f32 %v2598_v28, %v8261_v10  ;;  %6384 = vmatpush1.bf16.msra.mxu1 %v6383_v21  ;;  %2837 = vst [vmem:[#allocation4 + $0xb0] sm:$0xff] %v8394_v59  ;;  %v2602_v18 = vpop.f32.mrb[123].mxu0  ;;  %v8404_v10 = vld [vmem:[#allocation4 + $0x69] sm:$0xff]  ;;  %6436 = vmatprep.subr.bf16.mxu0 %v6435_v27  ;;  %v3266_v5 = vld [vmem:[#allocation12 + $0x158] sm:$0xff] }
 0x2b9   : > { %v2357_v63 = vpop.f32.mrb[136].mxu1  ;;  %6385 = vmatprep.subr.bf16.mxu1 %v9465_v25  ;;  %2836 = vst [vmem:[#allocation4 + $0xa8] sm:$0xff] %v8399_v33  ;;  %v2766_v20 = vadd.f32 %v8328_v6, %v2723_v16  ;;  %5857 = vmatprep.mubr.f32.mxu1 %v8404_v10  ;;  %9516 = vst [vmem:[#allocation26_spill] sm:$0xff] %v8413_v37  ;;  %v3264_v28 = vld [vmem:[#allocation12 + $0x148] sm:$0xff] }
 0x2ba   : > { %v2359_v60 = vpop.f32.mrb[137].mxu1  ;;  %v2767_v1 = vadd.f32 %v8328_v6, %v2724_v40  ;;  %v2603_v21 = vadd.f32 %v2602_v18, %v2357_v63  ;;  %3492 = vmatmul.mubr.f32.gmra.mrb[148].mxu0 %v8406_v38  ;;  %5858 = vmatmul.mubr.f32.gmra.mrb[184].mxu1 %v8413_v37  ;;  %v3231_v40 = vld [vmem:[#allocation12 + $0x40] sm:$0xff] }
 0x2bb   : > { %3496 = vmatprep.mubr.f32.mxu0 %v2795_v14  ;;  %v8420_v62 = vmax.f32 %v2766_v20, 0.0  ;;  %v5791_v24 = vpop.f32.mrb[124].mxu0  ;;  %6438 = vmatpush3.bf16.msra.mxu0 %v6435_v27  ;;  %v6443_v14 = vpack.c.bf16 %v3264_v28, %v3263_v36  ;;  %v6392_v36 = vpack.c.bf16 %v3232_v52, %v3231_v40  ;;  %v3233_v28 = vld [vmem:[#allocation12 + $0x50] sm:$0xff]  ;;  %v3268_v40 = vld [vmem:[#allocation12 + $0x168] sm:$0xff] }
 0x2bc   : > { %v8415_v4 = vmax.f32 %v2767_v1, 0.0  ;;  %v2725_v63 = vadd.f32 %v2603_v21, %v8271_v58  ;;  %6387 = vmatpush1.bf16.msra.mxu1 %v6386_v32  ;;  %v2612_v16 = vpop.f32.mrb[125].mxu0  ;;  %v8427_v1 = vld [vmem:[#allocation4 + $0x4f] sm:$0xff]  ;;  %6440 = vmatprep.subr.bf16.mxu0 %v6439_v47 }
 0x2bd   : > { %v2362_v35 = vpop.f32.mrb[138].mxu1  ;;  %9518 = vst [vmem:[#allocation28_spill] sm:$0xff] %v8420_v62  ;;  %6388 = vmatprep.subr.bf16.mxu1 %v9465_v25  ;;  %2838 = vst [vmem:[#allocation4 + $0xc8] sm:$0xff] %v8420_v62  ;;  %v3265_v32 = vld [vmem:[#allocation12 + $0x150] sm:$0xff] }
 0x2be   : > { %9517 = vst [vmem:[#allocation27_spill] sm:$0xff] %v8415_v4  ;;  %v2608_v12 = vadd.f32 %v5788_v57, %v2362_v35  ;;  %v2364_v50 = vpop.f32.mrb[139].mxu1  ;;  %2839 = vst [vmem:[#allocation4 + $0xd0] sm:$0xff] %v8415_v4  ;;  %v8425_v57 = vld [vmem:[#allocation4 + $0x89] sm:$0xff]  ;;  %v2768_v58 = vadd.f32 %v8328_v6, %v2725_v63  ;;  %3497 = vmatmul.mubr.f32.gmra.mrb[150].mxu0 %v8427_v1 }
 0x2bf   : > { %9519 = vst [vmem:[#allocation29_spill] sm:$0xff] %v8425_v57  ;;  %5860 = vmatprep.mubr.f32.mxu1 %v8425_v57  ;;  %3501 = vmatprep.mubr.f32.mxu0 %v8361_v29  ;;  %v8441_v21 = vpop.f32.mrb[126].mxu0 }
 0x2c0   : > { %v2726_v60 = vadd.f32 %v2608_v12, %v8268_v26  ;;  %v8434_v26 = vld [vmem:[#allocation4 + $0x91] sm:$0xff]  ;;  %v8439_v35 = vmax.f32 %v2768_v58, 0.0  ;;  %6390 = vmatpush1.bf16.msra.mxu1 %v6389_v39  ;;  %6442 = vmatpush3.bf16.msra.mxu0 %v6439_v47  ;;  %v8446_v63 = vld [vmem:[#allocation4 + $0xa9] sm:$0xff]  ;;  %v6447_v58 = vpack.c.bf16 %v3266_v5, %v3265_v32 }
 0x2c1   : > { %v2367_v27 = vpop.f32.mrb[140].mxu1  ;;  %9520 = vst [vmem:[#allocation30_spill] sm:$0xff] %v8434_v26  ;;  %5861 = vmatmul.mubr.f32.gmra.mrb[186].mxu1 %v8434_v26  ;;  %9521 = vst [vmem:[#allocation31_spill] sm:$0xff] %v8446_v63  ;;  %6391 = vmatprep.subr.bf16.mxu1 %v9465_v25  ;;  %v8454_v47 = vld [vmem:[#allocation4 + $0xb1] sm:$0xff] }
 0x2c2   : > { %v2769_v18 = vadd.f32 %v8328_v6, %v2726_v60  ;;  %v2613_v23 = vadd.f32 %v2612_v16, %v2367_v27  ;;  %v2369_v20 = vpop.f32.mrb[141].mxu1  ;;  %v8448_v60 = vld [vmem:[#allocation4 + $0x67] sm:$0xff]  ;;  %v2622_v16 = vpop.f32.mrb[127].mxu0  ;;  %v3234_v27 = vld [vmem:[#allocation12 + $0x58] sm:$0xff]  ;;  %6444 = vmatprep.subr.bf16.mxu0 %v6443_v14  ;;  %2840 = vst [vmem:[#allocation4 + $0xe8] sm:$0xff] %v8439_v35  ;;  %5863 = vmatprep.mubr.f32.mxu1 %v8446_v63  ;;  %9522 = vst [vmem:[#allocation32_spill] sm:$0xff] %v8454_v47 }
 0x2c3   : > { %3502 = vmatmul.mubr.f32.gmra.mrb[152].mxu0 %v8448_v60  ;;  %v8461_v32 = vpop.f32.mrb[128].mxu0  ;;  %v6395_v5 = vpack.c.bf16 %v3234_v27, %v3233_v28  ;;  %v3235_v20 = vld [vmem:[#allocation12 + $0x60] sm:$0xff]  ;;  %v3270_v28 = vld [vmem:[#allocation12 + $0x178] sm:$0xff] }
 0x2c4   : > { %v8443_v12 = vmax.f32 %v2769_v18, 0.0  ;;  %v2727_v50 = vadd.f32 %v2613_v23, %v8278_v22  ;;  %v3267_v22 = vld [vmem:[#allocation12 + $0x160] sm:$0xff]  ;;  %3506 = vmatprep.mubr.f32.mxu0 %v2797_v13  ;;  %6393 = vmatpush1.bf16.msra.mxu1 %v6392_v36  ;;  %v3269_v36 = vld [vmem:[#allocation12 + $0x170] sm:$0xff] }
 0x2c5   : > { %v2372_v39 = vpop.f32.mrb[142].mxu1  ;;  %5864 = vmatmul.mubr.f32.gmra.mrb[188].mxu1 %v8454_v47  ;;  %6446 = vmatpush3.bf16.msra.mxu0 %v6443_v14  ;;  %v8466_v26 = vld [vmem:[#allocation4 + $0xc9] sm:$0xff]  ;;  %v6451_v7 = vpack.c.bf16 %v3268_v40, %v3267_v22  ;;  %v8473_v14 = vld [vmem:[#allocation4 + $0xd1] sm:$0xff] }
 0x2c6   : > { %2841 = vst [vmem:[#allocation4 + $0xf0] sm:$0xff] %v8443_v12  ;;  %v2770_v52 = vadd.f32 %v8328_v6, %v2727_v50  ;;  %v2618_v18 = vadd.f32 %v5791_v24, %v2372_v39  ;;  %v2374_v23 = vpop.f32.mrb[143].mxu1  ;;  %9523 = vst [vmem:[#allocation33_spill] sm:$0xff] %v8466_v26  ;;  %v8468_v50 = vld [vmem:[#allocation4 + $0x6f] sm:$0xff]  ;;  %v2632_v24 = vpop.f32.mrb[129].mxu0  ;;  %6394 = vmatprep.subr.bf16.mxu1 %v9465_v25  ;;  %6448 = vmatprep.subr.bf16.mxu0 %v6447_v58 }
 0x2c7   : > { %v3236_v39 = vld [vmem:[#allocation12 + $0x68] sm:$0xff]  ;;  %5866 = vmatprep.mubr.f32.mxu1 %v8466_v26  ;;  %3507 = vmatmul.mubr.f32.gmra.mrb[154].mxu0 %v8468_v50  ;;  %9524 = vst [vmem:[#allocation34_spill] sm:$0xff] %v8473_v14 }
 0x2c8   : > { %v8463_v19 = vmax.f32 %v2770_v52, 0.0  ;;  %v2728_v63 = vadd.f32 %v2618_v18, %v8275_v53  ;;  %3511 = vmatprep.mubr.f32.mxu0 %v8376_v15  ;;  %v8479_v22 = vpop.f32.mrb[130].mxu0  ;;  %6396 = vmatpush1.bf16.msra.mxu1 %v6395_v5  ;;  %v8484_v23 = vld [vmem:[#allocation4 + $0x87] sm:$0xff]  ;;  %v3238_v5 = vld [vmem:[#allocation12 + $0x78] sm:$0xff]  ;;  %v8506_v47 = vld [vmem:[#allocation4 + $0x8f] sm:$0xff] }
 0x2c9   : > { %v2377_v13 = vpop.f32.mrb[144].mxu1  ;;  %5867 = vmatmul.mubr.f32.gmra.mrb[190].mxu1 %v8473_v14  ;;  %6450 = vmatpush3.bf16.msra.mxu0 %v6447_v58  ;;  %v8486_v26 = vpop.f32.mrb[131].mxu0 }
 0x2ca   : > { %2842 = vst [vmem:[#allocation4 + $0x108] sm:$0xff] %v8463_v19  ;;  %v2771_v53 = vadd.f32 %v8328_v6, %v2728_v63  ;;  %v2623_v27 = vadd.f32 %v2622_v16, %v2377_v13  ;;  %v2379_v52 = vpop.f32.mrb[145].mxu1  ;;  %6397 = vmatprep.subr.bf16.mxu1 %v9465_v25  ;;  %v6398_v63 = vpack.c.bf16 %v3236_v39, %v3235_v20  ;;  %v3237_v16 = vld [vmem:[#allocation12 + $0x70] sm:$0xff]  ;;  %v9527_v39 = vmax.f32 %v8367_v51, 0.0  ;;  %v3239_v51 = vld [vmem:[#allocation12 + $0x80] sm:$0xff] }
 0x2cb   : > { %6452 = vmatprep.subr.bf16.mxu0 %v6451_v7  ;;  %v6455_v13 = vpack.c.bf16 %v3270_v28, %v3269_v36  ;;  %3512 = vmatmul.mubr.f32.gmra.mrb[156].mxu0 %v8484_v23 }
 0x2cc   : > { %v8481_v40 = vmax.f32 %v2771_v53, 0.0  ;;  %v2729_v18 = vadd.f32 %v2623_v27, %v8284_v8  ;;  %3516 = vmatprep.mubr.f32.mxu0 %v9527_v39  ;;  %v8501_v36 = vpop.f32.mrb[132].mxu0  ;;  %6399 = vmatpush1.bf16.msra.mxu1 %v6398_v63 }
 0x2cd   : > { %v2382_v52 = vpop.f32.mrb[146].mxu1  ;;  %v8489_v14 = vld [vmem:[#allocation4 + $0xe9] sm:$0xff]  ;;  %v8492_v58 = vld [vmem:[#allocation4 + $0xf1] sm:$0xff]  ;;  %6454 = vmatpush3.bf16.msra.mxu0 %v6451_v7  ;;  %6400 = vmatprep.subr.bf16.mxu1 %v9465_v25 }
 0x2ce   : > { %9525 = vst [vmem:[#allocation35_spill] sm:$0xff] %v8489_v14  ;;  %9526 = vst [vmem:[#allocation36_spill] sm:$0xff] %v8492_v58  ;;  %v2772_v8 = vadd.f32 %v8328_v6, %v2729_v18  ;;  %v2628_v53 = vadd.f32 %v8441_v21, %v2382_v52  ;;  %5869 = vmatprep.mubr.f32.mxu1 %v8489_v14  ;;  %v2384_v20 = vpop.f32.mrb[147].mxu1  ;;  %v8508_v18 = vpop.f32.mrb[133].mxu0  ;;  %v6401_v21 = vpack.c.bf16 %v3238_v5, %v3237_v16  ;;  %v8520_v5 = vld [vmem:[#allocation4 + $0xa7] sm:$0xff]  ;;  %v3241_v14 = vld [vmem:[#allocation12 + $0x90] sm:$0xff] }
 0x2cf   : > { %2843 = vst [vmem:[#allocation4 + $0x110] sm:$0xff] %v8481_v40  ;;  %5870 = vmatmul.mubr.f32.gmra.mrb[192].mxu1 %v8492_v58  ;;  %6456 = vmatprep.subr.bf16.mxu0 %v6455_v13  ;;  %v3240_v20 = vld [vmem:[#allocation12 + $0x88] sm:$0xff]  ;;  %9528 = vst [vmem:[#allocation37_spill] sm:$0xff] %v8520_v5 }
 0x2d0   : > { %v8503_v28 = vmax.f32 %v2772_v8, 0.0  ;;  %v2730_v27 = vadd.f32 %v2628_v53, %v8281_v2  ;;  %3517 = vmatmul.mubr.f32.gmra.mrb[158].mxu0 %v8506_v47  ;;  %v8515_v53 = vpop.f32.mrb[134].mxu0  ;;  %6402 = vmatpush1.bf16.msra.mxu1 %v6401_v21  ;;  %v6404_v58 = vpack.c.bf16 %v3240_v20, %v3239_v51 }
 0x2d1   : > { %v2387_v52 = vpop.f32.mrb[148].mxu1  ;;  %3521 = vmatprep.mubr.f32.mxu0 %v8399_v33  ;;  %6458 = vmatpush3.bf16.msra.mxu0 %v6455_v13  ;;  %v8522_v39 = vpop.f32.mrb[135].mxu0  ;;  %v3242_v13 = vld [vmem:[#allocation12 + $0x98] sm:$0xff] }
 0x2d2   : > { %2844 = vst [vmem:[#allocation4 + $0x128] sm:$0xff] %v8503_v28  ;;  %v2773_v7 = vadd.f32 %v8328_v6, %v2730_v27  ;;  %v2633_v8 = vadd.f32 %v2632_v24, %v2387_v52  ;;  %v2389_v2 = vpop.f32.mrb[149].mxu1  ;;  %6459 = vmatprep.subr.bf16.mxu0 %v9465_v25  ;;  %6403 = vmatprep.subr.bf16.mxu1 %v9465_v25 }
 0x2d3   : > { %v8542_v2 = vld [vmem:[#allocation4 + $0xaf] sm:$0xff] }
 0x2d4   : > { %v8517_v63 = vmax.f32 %v2773_v7, 0.0  ;;  %v2731_v16 = vadd.f32 %v2633_v8, %v8290_v17  ;;  %3522 = vmatmul.mubr.f32.gmra.mrb[160].mxu0 %v8520_v5  ;;  %v8537_v20 = vpop.f32.mrb[136].mxu0  ;;  %9531 = vst [vmem:[#allocation40_spill] sm:$0xff] %v8542_v2  ;;  %6405 = vmatpush1.bf16.msra.mxu1 %v6404_v58 }
 0x2d5   : > { %v2392_v24 = vpop.f32.mrb[150].mxu1  ;;  %3526 = vmatprep.mubr.f32.mxu0 %v8394_v59  ;;  %v8544_v5 = vpop.f32.mrb[137].mxu0  ;;  %6406 = vmatprep.subr.bf16.mxu1 %v9465_v25  ;;  %v3245_v59 = vld [vmem:[#allocation12 + $0xb0] sm:$0xff] }
 0x2d6   : > { %v8525_v27 = vld [vmem:[#allocation4 + $0x109] sm:$0xff]  ;;  %v8528_v52 = vld [vmem:[#allocation4 + $0x111] sm:$0xff]  ;;  %2845 = vst [vmem:[#allocation4 + $0x130] sm:$0xff] %v8517_v63  ;;  %v2774_v17 = vadd.f32 %v8328_v6, %v2731_v16  ;;  %v2638_v21 = vadd.f32 %v8461_v32, %v2392_v24  ;;  %v2394_v51 = vpop.f32.mrb[151].mxu1  ;;  %v6407_v16 = vpack.c.bf16 %v3242_v13, %v3241_v14  ;;  %v3243_v24 = vld [vmem:[#allocation12 + $0xa0] sm:$0xff] }
 0x2d7   : > { %9529 = vst [vmem:[#allocation38_spill] sm:$0xff] %v8525_v27  ;;  %9530 = vst [vmem:[#allocation39_spill] sm:$0xff] %v8528_v52  ;;  %5872 = vmatprep.mubr.f32.mxu1 %v8525_v27  ;;  %v3244_v51 = vld [vmem:[#allocation12 + $0xa8] sm:$0xff] }
 0x2d8   : > { %5873 = vmatmul.mubr.f32.gmra.mrb[194].mxu1 %v8528_v52  ;;  %v8539_v7 = vmax.f32 %v2774_v17, 0.0  ;;  %v2732_v8 = vadd.f32 %v2638_v21, %v8287_v31  ;;  %3527 = vmatmul.mubr.f32.gmra.mrb[162].mxu0 %v8542_v2  ;;  %v8552_v21 = vpop.f32.mrb[138].mxu0  ;;  %v8557_v13 = vld [vmem:[#allocation4 + $0xc7] sm:$0xff]  ;;  %v6410_v2 = vpack.c.bf16 %v3244_v51, %v3243_v24 }
 0x2d9   : > { %v2397_v32 = vpop.f32.mrb[152].mxu1  ;;  %3531 = vmatprep.mubr.f32.mxu0 %v8420_v62  ;;  %9533 = vst [vmem:[#allocation42_spill] sm:$0xff] %v8557_v13  ;;  %v8559_v27 = vpop.f32.mrb[139].mxu0  ;;  %6408 = vmatpush1.bf16.msra.mxu1 %v6407_v16 }
 0x2da   : > { %2846 = vst [vmem:[#allocation4 + $0x148] sm:$0xff] %v8539_v7  ;;  %v2775_v17 = vadd.f32 %v8328_v6, %v2732_v8  ;;  %v2643_v52 = vadd.f32 %v8486_v26, %v2397_v32  ;;  %v2399_v31 = vpop.f32.mrb[153].mxu1  ;;  %6409 = vmatprep.subr.bf16.mxu1 %v9465_v25  ;;  %v3246_v32 = vld [vmem:[#allocation12 + $0xb8] sm:$0xff] }
 0x2db   : > { %v8578_v31 = vld [vmem:[#allocation4 + $0xcf] sm:$0xff] }
 0x2dc   : > { %v8554_v58 = vmax.f32 %v2775_v17, 0.0  ;;  %v2733_v14 = vadd.f32 %v2643_v52, %v8296_v30  ;;  %3532 = vmatmul.mubr.f32.gmra.mrb[164].mxu0 %v8557_v13  ;;  %v8573_v24 = vpop.f32.mrb[140].mxu0  ;;  %9536 = vst [vmem:[#allocation45_spill] sm:$0xff] %v8578_v31 }
 0x2dd   : > { %v2402_v57 = vpop.f32.mrb[154].mxu1  ;;  %v8561_v8 = vld [vmem:[#allocation4 + $0x129] sm:$0xff]  ;;  %v8564_v26 = vld [vmem:[#allocation4 + $0x131] sm:$0xff]  ;;  %3536 = vmatprep.mubr.f32.mxu0 %v8415_v4  ;;  %v8580_v13 = vpop.f32.mrb[141].mxu0  ;;  %6411 = vmatpush1.bf16.msra.mxu1 %v6410_v2 }
 0x2de   : > { %9532 = vst [vmem:[#allocation41_spill] sm:$0xff] %v8554_v58  ;;  %9534 = vst [vmem:[#allocation43_spill] sm:$0xff] %v8561_v8  ;;  %v2776_v30 = vadd.f32 %v8328_v6, %v2733_v14  ;;  %v2648_v52 = vadd.f32 %v8479_v22, %v2402_v57  ;;  %5875 = vmatprep.mubr.f32.mxu1 %v8561_v8  ;;  %v2404_v16 = vpop.f32.mrb[155].mxu1  ;;  %v6413_v14 = vpack.c.bf16 %v3246_v32, %v3245_v59  ;;  %v3247_v22 = vld [vmem:[#allocation12 + $0xc0] sm:$0xff]  ;;  %v3249_v4 = vld [vmem:[#allocation12 + $0xd0] sm:$0xff] }
 0x2df   : > { %9535 = vst [vmem:[#allocation44_spill] sm:$0xff] %v8564_v26  ;;  %2847 = vst [vmem:[#allocation4 + $0x150] sm:$0xff] %v8554_v58  ;;  %5876 = vmatmul.mubr.f32.gmra.mrb[196].mxu1 %v8564_v26  ;;  %6412 = vmatprep.subr.bf16.mxu1 %v9465_v25  ;;  %v3248_v16 = vld [vmem:[#allocation12 + $0xc8] sm:$0xff] }
 0x2e0   : > { %v8575_v51 = vmax.f32 %v2776_v30, 0.0  ;;  %v2734_v17 = vadd.f32 %v2648_v52, %v8293_v56  ;;  %3537 = vmatmul.mubr.f32.gmra.mrb[166].mxu0 %v8578_v31  ;;  %v5818_v52 = vpop.f32.mrb[142].mxu0  ;;  %v8591_v2 = vld [vmem:[#allocation4 + $0xe7] sm:$0xff]  ;;  %v6416_v31 = vpack.c.bf16 %v3248_v16, %v3247_v22  ;;  %v8608_v16 = vld [vmem:[#allocation4 + $0xef] sm:$0xff] }
 0x2e1   : > { %v2407_v57 = vpop.f32.mrb[156].mxu1  ;;  %3541 = vmatprep.mubr.f32.mxu0 %v8439_v35  ;;  %6414 = vmatpush1.bf16.msra.mxu1 %v6413_v14  ;;  %v2702_v32 = vpop.f32.mrb[143].mxu0 }
 0x2e2   : > { %2848 = vst [vmem:[#allocation4 + $0x168] sm:$0xff] %v8575_v51  ;;  %v2777_v30 = vadd.f32 %v8328_v6, %v2734_v17  ;;  %v2653_v26 = vadd.f32 %v8508_v18, %v2407_v57  ;;  %v2409_v56 = vpop.f32.mrb[157].mxu1  ;;  %6415 = vmatprep.subr.bf16.mxu1 %v9465_v25  ;;  %v3250_v17 = vld [vmem:[#allocation12 + $0xd8] sm:$0xff] }
 0x2e4   : > { %v8588_v8 = vmax.f32 %v2777_v30, 0.0  ;;  %v2735_v59 = vadd.f32 %v2653_v26, %v8302_v3  ;;  %3542 = vmatmul.mubr.f32.gmra.mrb[168].mxu0 %v8591_v2  ;;  %v6419_v30 = vpack.c.bf16 %v3250_v17, %v3249_v4 }
 0x2e5   : > { %v2412_v62 = vpop.f32.mrb[158].mxu1  ;;  %3546 = vmatprep.mubr.f32.mxu0 %v8443_v12  ;;  %6417 = vmatpush1.bf16.msra.mxu1 %v6416_v31  ;;  %v8619_v31 = vld [vmem:[#allocation4 + $0x107] sm:$0xff] }
 0x2e6   : > { %9537 = vst [vmem:[#allocation46_spill] sm:$0xff] %v8588_v8  ;;  %v8593_v37 = vld [vmem:[#allocation4 + $0x149] sm:$0xff]  ;;  %v8596_v18 = vld [vmem:[#allocation4 + $0x151] sm:$0xff]  ;;  %2849 = vst [vmem:[#allocation4 + $0x170] sm:$0xff] %v8588_v8  ;;  %v2778_v3 = vadd.f32 %v8328_v6, %v2735_v59  ;;  %v2658_v26 = vadd.f32 %v8501_v36, %v2412_v62  ;;  %v2414_v14 = vpop.f32.mrb[159].mxu1  ;;  %6418 = vmatprep.subr.bf16.mxu1 %v9465_v25 }
 0x2e7   : > { %9538 = vst [vmem:[#allocation47_spill] sm:$0xff] %v8596_v18  ;;  %5878 = vmatprep.mubr.f32.mxu1 %v8593_v37  ;;  %v3251_v62 = vld [vmem:[#allocation12 + $0xe0] sm:$0xff]  ;;  %v3252_v36 = vld [vmem:[#allocation12 + $0xe8] sm:$0xff] }
 0x2e8   : > { %5879 = vmatmul.mubr.f32.gmra.mrb[198].mxu1 %v8596_v18  ;;  %v8605_v57 = vmax.f32 %v2778_v3, 0.0  ;;  %v2736_v22 = vadd.f32 %v2658_v26, %v8299_v42  ;;  %3547 = vmatmul.mubr.f32.gmra.mrb[170].mxu0 %v8608_v16  ;;  %v6422_v17 = vpack.c.bf16 %v3252_v36, %v3251_v62  ;;  %v3253_v3 = vld [vmem:[#allocation12 + $0xf0] sm:$0xff]  ;;  %v4447_v62 = vld [vmem:[#allocation12 + $0x400] sm:$0xff]  ;;  %v4448_v36 = vld [vmem:[#allocation12 + $0x408] sm:$0xff] }
 0x2e9   : > { %v2417_v56 = vpop.f32.mrb[160].mxu1  ;;  %3551 = vmatprep.mubr.f32.mxu0 %v8463_v19  ;;  %6420 = vmatpush1.bf16.msra.mxu1 %v6419_v30 }
 0x2ea   : > { %2850 = vst [vmem:[#allocation4 + $0x188] sm:$0xff] %v8605_v57  ;;  %v2779_v52 = vadd.f32 %v8328_v6, %v2736_v22  ;;  %v2663_v59 = vadd.f32 %v8522_v39, %v2417_v56  ;;  %v2419_v32 = vpop.f32.mrb[161].mxu1  ;;  %6421 = vmatprep.subr.bf16.mxu1 %v9465_v25  ;;  %v3254_v39 = vld [vmem:[#allocation12 + $0xf8] sm:$0xff] }
 0x2eb   : > { %v8636_v32 = vld [vmem:[#allocation4 + $0x10f] sm:$0xff]  ;;  %v6425_v18 = vpack.c.bf16 %v3254_v39, %v3253_v3  ;;  %v8649_v3 = vld [vmem:[#allocation4 + $0x127] sm:$0xff] }
 0x2ec   : > { %v8616_v42 = vmax.f32 %v2779_v52, 0.0  ;;  %v2737_v4 = vadd.f32 %v2663_v59, %v8308_v11  ;;  %3552 = vmatmul.mubr.f32.gmra.mrb[172].mxu0 %v8619_v31 }
 0x2ed   : > { %v2422_v26 = vpop.f32.mrb[162].mxu1  ;;  %v8621_v14 = vld [vmem:[#allocation4 + $0x169] sm:$0xff]  ;;  %v8624_v22 = vld [vmem:[#allocation4 + $0x171] sm:$0xff]  ;;  %3556 = vmatprep.mubr.f32.mxu0 %v8481_v40  ;;  %6423 = vmatpush1.bf16.msra.mxu1 %v6422_v17 }
 0x2ee   : > { %9539 = vst [vmem:[#allocation48_spill] sm:$0xff] %v8616_v42  ;;  %2851 = vst [vmem:[#allocation4 + $0x190] sm:$0xff] %v8616_v42  ;;  %v2780_v56 = vadd.f32 %v8328_v6, %v2737_v4  ;;  %v2668_v11 = vadd.f32 %v8515_v53, %v2422_v26  ;;  %5881 = vmatprep.mubr.f32.mxu1 %v8621_v14  ;;  %v2424_v30 = vpop.f32.mrb[163].mxu1  ;;  %6424 = vmatprep.subr.bf16.mxu1 %v9465_v25 }
 0x2ef   : > { %5882 = vmatmul.mubr.f32.gmra.mrb[200].mxu1 %v8624_v22  ;;  %v8640_v53 = vpack.c.bf16 %v4448_v36, %v4447_v62 }
 0x2f0   : > { %v8633_v52 = vmax.f32 %v2780_v56, 0.0  ;;  %v2738_v59 = vadd.f32 %v2668_v11, %v8305_v45  ;;  %3557 = vmatmul.mubr.f32.gmra.mrb[174].mxu0 %v8636_v32 }
 0x2f1   : > { %v2427_v4 = vpop.f32.mrb[164].mxu1  ;;  %3561 = vmatprep.mubr.f32.mxu0 %v8503_v28  ;;  %6426 = vmatpush1.bf16.msra.mxu1 %v6425_v18 }
 0x2f2   : > { %9540 = vst [vmem:[#allocation23_spill] sm:$0xff] %v8633_v52  ;;  %2852 = vst [vmem:[#allocation4 + $0x1a8] sm:$0xff] %v8633_v52  ;;  %v2781_v26 = vadd.f32 %v8328_v6, %v2738_v59  ;;  %v2673_v56 = vadd.f32 %v8544_v5, %v2427_v4  ;;  %v2429_v30 = vpop.f32.mrb[165].mxu1  ;;  %6508 = vmatprep.subr.bf16.mxu1 %v8640_v53  ;;  %v8666_v4 = vld [vmem:[#allocation4 + $0x12f] sm:$0xff] }
 0x2f4   : > { %v8646_v45 = vmax.f32 %v2781_v26, 0.0  ;;  %v2739_v17 = vadd.f32 %v2673_v56, %v8314_v61  ;;  %3562 = vmatmul.mubr.f32.gmra.mrb[176].mxu0 %v8649_v3 }
 0x2f5   : > { %v2432_v39 = vpop.f32.mrb[166].mxu1  ;;  %v8651_v11 = vld [vmem:[#allocation4 + $0x189] sm:$0xff]  ;;  %v8654_v62 = vld [vmem:[#allocation4 + $0x191] sm:$0xff]  ;;  %3566 = vmatprep.mubr.f32.mxu0 %v8517_v63 }
 0x2f6   : > { %9541 = vst [vmem:[#allocation24_spill] sm:$0xff] %v8646_v45  ;;  %2853 = vst [vmem:[#allocation4 + $0x1b0] sm:$0xff] %v8646_v45  ;;  %v2782_v5 = vadd.f32 %v8328_v6, %v2739_v17  ;;  %v2678_v36 = vadd.f32 %v8537_v20, %v2432_v39  ;;  %5884 = vmatprep.mubr.f32.mxu1 %v8651_v11  ;;  %v2434_v61 = vpop.f32.mrb[167].mxu1 }
 0x2f7   : > { %5885 = vmatmul.mubr.f32.gmra.mrb[202].mxu1 %v8654_v62 }
 0x2f8   : > { %v8663_v18 = vmax.f32 %v2782_v5, 0.0  ;;  %v2740_v59 = vadd.f32 %v2678_v36, %v8311_v41  ;;  %3567 = vmatmul.mubr.f32.gmra.mrb[178].mxu0 %v8666_v4  ;;  %v8676_v5 = vld [vmem:[#allocation4 + $0x147] sm:$0xff] }
 0x2f9   : > { %v2437_v26 = vpop.f32.mrb[168].mxu1  ;;  %3571 = vmatprep.mubr.f32.mxu0 %v8539_v7 }
 0x2fa   : > { %2854 = vst [vmem:[#allocation4 + $0x1c8] sm:$0xff] %v8663_v18  ;;  %v2783_v20 = vadd.f32 %v8328_v6, %v2740_v59  ;;  %v2683_v56 = vadd.f32 %v8559_v27, %v2437_v26  ;;  %v2439_v30 = vpop.f32.mrb[169].mxu1 }
 0x2fc   : > { %v8673_v17 = vmax.f32 %v2783_v20, 0.0  ;;  %v2741_v39 = vadd.f32 %v2683_v56, %v8319_v43  ;;  %3572 = vmatmul.mubr.f32.gmra.mrb[180].mxu0 %v8676_v5  ;;  %v8692_v56 = vld [vmem:[#allocation4 + $0x14f] sm:$0xff] }
 0x2fd   : > { %v2442_v41 = vpop.f32.mrb[170].mxu1  ;;  %v8678_v36 = vld [vmem:[#allocation4 + $0x1a9] sm:$0xff]  ;;  %v8681_v61 = vld [vmem:[#allocation4 + $0x1b1] sm:$0xff]  ;;  %3576 = vmatprep.mubr.f32.mxu0 %v8554_v58  ;;  %9542 = vst [vmem:[#allocation49_spill] sm:$0xff] %v8692_v56 }
 0x2fe   : > { %2855 = vst [vmem:[#allocation4 + $0x1d0] sm:$0xff] %v8673_v17  ;;  %v2784_v27 = vadd.f32 %v8328_v6, %v2741_v39  ;;  %v2688_v59 = vadd.f32 %v8552_v21, %v2442_v41  ;;  %5887 = vmatprep.mubr.f32.mxu1 %v8678_v36  ;;  %v2444_v26 = vpop.f32.mrb[171].mxu1  ;;  %v8702_v58 = vld [vmem:[#allocation4 + $0x167] sm:$0xff] }
 0x2ff   : > { %5888 = vmatmul.mubr.f32.gmra.mrb[204].mxu1 %v8681_v61 }
 0x300   : > { %v8689_v43 = vmax.f32 %v2784_v27, 0.0  ;;  %v2742_v20 = vadd.f32 %v2688_v59, %v8316_v46  ;;  %3577 = vmatmul.mubr.f32.gmra.mrb[182].mxu0 %v8692_v56 }
 0x301   : > { %v2447_v30 = vpop.f32.mrb[172].mxu1  ;;  %3581 = vmatprep.mubr.f32.mxu0 %v8575_v51 }
 0x302   : > { %2856 = vst [vmem:[#allocation4 + $0x1e8] sm:$0xff] %v8689_v43  ;;  %v2785_v21 = vadd.f32 %v8328_v6, %v2742_v20  ;;  %v2693_v39 = vadd.f32 %v8580_v13, %v2447_v30  ;;  %v2449_v41 = vpop.f32.mrb[173].mxu1 }
 0x304   : > { %v8699_v26 = vmax.f32 %v2785_v21, 0.0  ;;  %v2743_v27 = vadd.f32 %v2693_v39, %v8323_v44  ;;  %3582 = vmatmul.mubr.f32.gmra.mrb[184].mxu0 %v8702_v58  ;;  %v8718_v39 = vld [vmem:[#allocation4 + $0x16f] sm:$0xff] }
 0x305   : > { %v2452_v46 = vpop.f32.mrb[174].mxu1  ;;  %v8704_v59 = vld [vmem:[#allocation4 + $0x1c9] sm:$0xff]  ;;  %v8707_v56 = vld [vmem:[#allocation4 + $0x1d1] sm:$0xff]  ;;  %3586 = vmatprep.mubr.f32.mxu0 %v8588_v8 }
 0x306   : > { %2857 = vst [vmem:[#allocation4 + $0x1f0] sm:$0xff] %v8699_v26  ;;  %v2786_v13 = vadd.f32 %v8328_v6, %v2743_v27  ;;  %v2698_v20 = vadd.f32 %v8573_v24, %v2452_v46  ;;  %5890 = vmatprep.mubr.f32.mxu1 %v8704_v59  ;;  %v2454_v30 = vpop.f32.mrb[175].mxu1 }
 0x307   : > { %5891 = vmatmul.mubr.f32.gmra.mrb[206].mxu1 %v8707_v56  ;;  %v8726_v30 = vld [vmem:[#allocation4 + $0x187] sm:$0xff] }
 0x308   : > { %v8715_v44 = vmax.f32 %v2786_v13, 0.0  ;;  %v2744_v21 = vadd.f32 %v2698_v20, %v8321_v49  ;;  %3587 = vmatmul.mubr.f32.gmra.mrb[186].mxu0 %v8718_v39  ;;  %9544 = vst [vmem:[#allocation51_spill] sm:$0xff] %v8726_v30  ;;  %v8737_v20 = vld [vmem:[#allocation4 + $0x18f] sm:$0xff] }
 0x309   : > { %v2457_v41 = vpop.f32.mrb[176].mxu1  ;;  %3591 = vmatprep.mubr.f32.mxu0 %v8605_v57  ;;  %9545 = vst [vmem:[#allocation52_spill] sm:$0xff] %v8737_v20 }
 0x30a   : > { %2858 = vst [vmem:[#allocation4 + $0x208] sm:$0xff] %v8715_v44  ;;  %v2787_v24 = vadd.f32 %v8328_v6, %v2744_v21  ;;  %v2459_v27 = vpop.f32.mrb[177].mxu1  ;;  %v8741_v21 = vld [vmem:[#allocation4 + $0x1a7] sm:$0xff] }
 0x30b   : > { %9546 = vst [vmem:[#allocation53_spill] sm:$0xff] %v8741_v21  ;;  %v4449_v27 = vld [vmem:[#allocation12 + $0x410] sm:$0xff] }
 0x30c   : > { %v8724_v46 = vmax.f32 %v2787_v24, 0.0  ;;  %3592 = vmatmul.mubr.f32.gmra.mrb[188].mxu0 %v8726_v30 }
 0x30d   : > { %v2462_v13 = vpop.f32.mrb[178].mxu1  ;;  %v8728_v8 = vld [vmem:[#allocation4 + $0x1e9] sm:$0xff]  ;;  %v8731_v49 = vld [vmem:[#allocation4 + $0x1f1] sm:$0xff]  ;;  %3596 = vmatprep.mubr.f32.mxu0 %v8616_v42  ;;  %v4451_v42 = vld [vmem:[#allocation12 + $0x420] sm:$0xff] }
 0x30e   : > { %9543 = vst [vmem:[#allocation50_spill] sm:$0xff] %v8724_v46  ;;  %2859 = vst [vmem:[#allocation4 + $0x210] sm:$0xff] %v8724_v46  ;;  %5893 = vmatprep.mubr.f32.mxu1 %v8728_v8  ;;  %v2464_v6 = vpop.f32.mrb[179].mxu1  ;;  %v4450_v13 = vld [vmem:[#allocation12 + $0x418] sm:$0xff] }
 0x30f   : > { %5894 = vmatmul.mubr.f32.gmra.mrb[208].mxu1 %v8731_v49  ;;  %v8751_v6 = vld [vmem:[#allocation4 + $0x10] sm:$0xff] }
 0x310   : > { %3597 = vmatmul.mubr.f32.gmra.mrb[190].mxu0 %v8737_v20  ;;  %9549 = vst [vmem:[#allocation56_spill] sm:$0xff] %v8751_v6  ;;  %v2911_v20 = vld [vmem:[#allocation4 + $0x7] sm:$0xff] }
 0x311   : > { %3601 = vmatprep.mubr.f32.mxu0 %v8633_v52  ;;  %v8754_v52 = vld [vmem:[#allocation4 + $0x1af] sm:$0xff] }
 0x312   : > { %9550 = vst [vmem:[#allocation57_spill] sm:$0xff] %v8754_v52 }
 0x314   : > { %3602 = vmatmul.mubr.f32.gmra.mrb[192].mxu0 %v8741_v21  ;;  %v6511_v21 = vpack.c.bf16 %v4450_v13, %v4449_v27  ;;  %v4454_v27 = vld [vmem:[#allocation12 + $0x438] sm:$0xff]  ;;  %v8765_v13 = vld [vmem:[#allocation4 + $0x1cf] sm:$0xff] }
 0x315   : > { %v8743_v41 = vld [vmem:[#allocation4 + $0x209] sm:$0xff]  ;;  %v8746_v24 = vld [vmem:[#allocation4 + $0x211] sm:$0xff]  ;;  %3606 = vmatprep.mubr.f32.mxu0 %v8646_v45 }
 0x316   : > { %9547 = vst [vmem:[#allocation54_spill] sm:$0xff] %v8743_v41  ;;  %9548 = vst [vmem:[#allocation55_spill] sm:$0xff] %v8746_v24  ;;  %5896 = vmatprep.mubr.f32.mxu1 %v8743_v41  ;;  %v4452_v41 = vld [vmem:[#allocation12 + $0x428] sm:$0xff] }
 0x317   : > { %5897 = vmatmul.mubr.f32.gmra.mrb[210].mxu1 %v8746_v24  ;;  %v8759_v45 = vld [vmem:[#allocation4 + $0x1c7] sm:$0xff]  ;;  %v2912_v24 = vld [vmem:[#allocation4 + $0xf] sm:$0xff]  ;;  %v6515_v30 = vpack.c.bf16 %v4452_v41, %v4451_v42 }
 0x318   : > { %3931 = vmatprep.mubr.f32.mxu1 %v8751_v6  ;;  %3607 = vmatmul.mubr.f32.gmra.mrb[194].mxu0 %v8754_v52  ;;  %v4453_v52 = vld [vmem:[#allocation12 + $0x430] sm:$0xff]  ;;  %v8770_v41 = vld [vmem:[#allocation4 + $0x1e7] sm:$0xff] }
 0x319   : > { %3611 = vmatprep.mubr.f32.mxu0 %v8663_v18  ;;  %v6704_v42 = vld [vmem:[#allocation4 + $0x30] sm:$0xff] }
 0x31b   : > { %3932 = vmatmul.mubr.f32.vlgmr.msra.gmra.mrb[212].mxu1 %v2911_v20  ;;  %v6519_v20 = vpack.c.bf16 %v4454_v27, %v4453_v52  ;;  %v8776_v52 = vld [vmem:[#allocation4 + $0x1ef] sm:$0xff] }
 0x31c   : > { %3936 = vmatprep.mubr.f32.mxu1 %v8751_v6  ;;  %6510 = vmatpush3.bf16.msra.mxu1 %v8640_v53  ;;  %v4455_v53 = vld [vmem:[#allocation12 + $0x440] sm:$0xff]  ;;  %v4456_v6 = vld [vmem:[#allocation12 + $0x448] sm:$0xff] }
 0x31d   : > { %3612 = vmatmul.mubr.f32.gmra.mrb[196].mxu0 %v8759_v45  ;;  %6512 = vmatprep.subr.bf16.mxu1 %v6511_v21  ;;  %v4460_v27 = vld [vmem:[#allocation12 + $0x468] sm:$0xff] }
 0x31e   : > { %3616 = vmatprep.mubr.f32.mxu0 %v8673_v17 }
 0x31f   : > { %3937 = vmatmul.mubr.f32.gmra.mrb[214].mxu1 %v2912_v24  ;;  %v4458_v24 = vld [vmem:[#allocation12 + $0x458] sm:$0xff] }
 0x320   : > { %3941 = vmatprep.mubr.f32.mxu1 %v8338_v48  ;;  %6514 = vmatpush3.bf16.msra.mxu1 %v6511_v21  ;;  %v6523_v48 = vpack.c.bf16 %v4456_v6, %v4455_v53  ;;  %v4457_v21 = vld [vmem:[#allocation12 + $0x450] sm:$0xff]  ;;  %v4462_v53 = vld [vmem:[#allocation12 + $0x478] sm:$0xff] }
 0x321   : > { %3617 = vmatmul.mubr.f32.gmra.mrb[198].mxu0 %v8765_v13  ;;  %6516 = vmatprep.subr.bf16.mxu1 %v6515_v30  ;;  %v8781_v6 = vld [vmem:[#allocation4 + $0x50] sm:$0xff] }
 0x322   : > { %3621 = vmatprep.mubr.f32.mxu0 %v8689_v43 }
 0x323   : > { %3942 = vmatmul.mubr.f32.gmra.mrb[216].mxu1 %v8369_v55  ;;  %v6527_v55 = vpack.c.bf16 %v4458_v24, %v4457_v21  ;;  %v4415_v21 = vld [vmem:[#allocation12 + $0x300] sm:$0xff]  ;;  %v8790_v24 = vld [vmem:[#allocation4 + $0x20f] sm:$0xff] }
 0x324   : > { %3946 = vmatprep.mubr.f32.mxu1 %v6704_v42  ;;  %6518 = vmatpush3.bf16.msra.mxu1 %v6515_v30  ;;  %v4459_v30 = vld [vmem:[#allocation12 + $0x460] sm:$0xff]  ;;  %v3055_v42 = vld [vmem:[#allocation4 + $0x9] sm:$0xff] }
 0x325   : > { %3622 = vmatmul.mubr.f32.gmra.mrb[200].mxu0 %v8770_v41  ;;  %6520 = vmatprep.subr.bf16.mxu1 %v6519_v20 }
 0x326   : > { %3626 = vmatprep.mubr.f32.mxu0 %v8699_v26 }
 0x327   : > { %3947 = vmatmul.mubr.f32.gmra.mrb[218].mxu1 %v8385_v34  ;;  %v8784_v34 = vld [vmem:[#allocation4 + $0x207] sm:$0xff] }
 0x328   : > { %3951 = vmatprep.mubr.f32.mxu1 %v8349_v54  ;;  %6522 = vmatpush3.bf16.msra.mxu1 %v6519_v20  ;;  %9551 = vst [vmem:[#allocation58_spill] sm:$0xff] %v8784_v34  ;;  %v6531_v54 = vpack.c.bf16 %v4460_v27, %v4459_v30  ;;  %v4461_v20 = vld [vmem:[#allocation12 + $0x470] sm:$0xff] }
 0x329   : > { %3627 = vmatmul.mubr.f32.gmra.mrb[202].mxu0 %v8776_v52  ;;  %6524 = vmatprep.subr.bf16.mxu1 %v6523_v48  ;;  %v3056_v30 = vld [vmem:[#allocation4 + $0x11] sm:$0xff] }
 0x32a   : > { %3631 = vmatprep.mubr.f32.mxu0 %v8715_v44 }
 0x32b   : > { %3952 = vmatmul.mubr.f32.gmra.mrb[220].mxu1 %v8406_v38  ;;  %v4416_v38 = vld [vmem:[#allocation12 + $0x308] sm:$0xff] }
 0x32c   : > { %3956 = vmatprep.mubr.f32.mxu1 %v8781_v6  ;;  %6526 = vmatpush3.bf16.msra.mxu1 %v6523_v48  ;;  %v6535_v48 = vpack.c.bf16 %v4462_v53, %v4461_v20  ;;  %v6460_v27 = vpack.c.bf16 %v4416_v38, %v4415_v21  ;;  %v4419_v20 = vld [vmem:[#allocation12 + $0x320] sm:$0xff]  ;;  %v4420_v53 = vld [vmem:[#allocation12 + $0x328] sm:$0xff]  ;;  %v9553_v21 = vld [vmem:[#allocation29_spill] sm:$0xff] }
 0x32d   : > { %3632 = vmatmul.mubr.f32.gmra.mrb[204].mxu0 %v8784_v34  ;;  %6528 = vmatprep.subr.bf16.mxu1 %v6527_v55  ;;  %v4418_v34 = vld [vmem:[#allocation12 + $0x318] sm:$0xff] }
 0x32e   : > { %3636 = vmatprep.mubr.f32.mxu0 %v8724_v46  ;;  %v4417_v46 = vld [vmem:[#allocation12 + $0x310] sm:$0xff] }
 0x32f   : > { %3957 = vmatmul.mubr.f32.gmra.mrb[222].mxu1 %v8427_v1  ;;  %v8794_v1 = vld [vmem:[#allocation4 + $0x70] sm:$0xff] }
 0x330   : > { %3961 = vmatprep.mubr.f32.mxu1 %v8361_v29  ;;  %6530 = vmatpush3.bf16.msra.mxu1 %v6527_v55  ;;  %v6707_v29 = vld [vmem:[#allocation4 + $0x29] sm:$0xff]  ;;  %v6463_v55 = vpack.c.bf16 %v4418_v34, %v4417_v46  ;;  %v4422_v34 = vld [vmem:[#allocation12 + $0x338] sm:$0xff] }
 0x331   : > { %3637 = vmatmul.mubr.f32.gmra.mrb[206].mxu0 %v8790_v24  ;;  %6532 = vmatprep.subr.bf16.mxu1 %v6531_v54  ;;  %v4421_v46 = vld [vmem:[#allocation12 + $0x330] sm:$0xff] }
 0x332   : > { %5931 = vmatprep.mubr.f32.mxu0 %v3055_v42  ;;  %v9552_v42 = vld [vmem:[#allocation26_spill] sm:$0xff] }
 0x333   : > { %3962 = vmatmul.mubr.f32.gmra.mrb[224].mxu1 %v8448_v60  ;;  %v6708_v60 = vld [vmem:[#allocation4 + $0x31] sm:$0xff] }
 0x334   : > { %3966 = vmatprep.mubr.f32.mxu1 %v8794_v1  ;;  %6534 = vmatpush3.bf16.msra.mxu1 %v6531_v54  ;;  %v6466_v54 = vpack.c.bf16 %v4420_v53, %v4419_v20  ;;  %v4427_v20 = vld [vmem:[#allocation12 + $0x360] sm:$0xff]  ;;  %v4428_v53 = vld [vmem:[#allocation12 + $0x368] sm:$0xff] }
 0x335   : > { %5932 = vmatmul.mubr.f32.vlgmr.msra.gmra.mrb[208].mxu0 %v3056_v30  ;;  %6536 = vmatprep.subr.bf16.mxu1 %v6535_v48  ;;  %v9555_v30 = vld [vmem:[#allocation25_spill] sm:$0xff] }
 0x336   : > { %5934 = vmatprep.mubr.f32.mxu0 %v6707_v29  ;;  %6461 = vmatpush1.bf16.msra.mxu0 %v6460_v27  ;;  %v9556_v27 = vld [vmem:[#allocation30_spill] sm:$0xff]  ;;  %v9557_v29 = vld [vmem:[#allocation31_spill] sm:$0xff] }
 0x337   : > { %3967 = vmatmul.mubr.f32.gmra.mrb[226].mxu1 %v8468_v50  ;;  %6462 = vmatprep.subr.bf16.mxu0 %v9465_v25  ;;  %v8803_v50 = vld [vmem:[#allocation4 + $0x90] sm:$0xff] }
 0x338   : > { %3971 = vmatprep.mubr.f32.mxu1 %v8376_v15  ;;  %6538 = vmatpush3.bf16.msra.mxu1 %v6535_v48  ;;  %v6469_v15 = vpack.c.bf16 %v4422_v34, %v4421_v46  ;;  %v9554_v48 = vld [vmem:[#allocation37_spill] sm:$0xff]  ;;  %v6478_v34 = vpack.c.bf16 %v4428_v53, %v4427_v20 }
 0x339   : > { %5935 = vmatmul.mubr.f32.gmra.mrb[210].mxu0 %v6708_v60  ;;  %v9559_v60 = vld [vmem:[#allocation28_spill] sm:$0xff]  ;;  %v9561_v46 = vld [vmem:[#allocation33_spill] sm:$0xff] }
 0x33a   : > { %5937 = vmatprep.mubr.f32.mxu0 %v8383_v0  ;;  %6464 = vmatpush1.bf16.msra.mxu0 %v6463_v55  ;;  %v4423_v0 = vld [vmem:[#allocation12 + $0x340] sm:$0xff]  ;;  %v9558_v55 = vld [vmem:[#allocation40_spill] sm:$0xff]  ;;  %v4433_v53 = vld [vmem:[#allocation12 + $0x390] sm:$0xff] }
 0x33b   : > { %3972 = vmatmul.mubr.f32.gmra.mrb[228].mxu1 %v8484_v23  ;;  %6465 = vmatprep.subr.bf16.mxu0 %v9465_v25  ;;  %v4424_v23 = vld [vmem:[#allocation12 + $0x348] sm:$0xff] }
 0x33c   : > { %3976 = vmatprep.mubr.f32.mxu1 %v8803_v50  ;;  %v6472_v38 = vpack.c.bf16 %v4424_v23, %v4423_v0  ;;  %v4429_v0 = vld [vmem:[#allocation12 + $0x370] sm:$0xff]  ;;  %v4430_v23 = vld [vmem:[#allocation12 + $0x378] sm:$0xff] }
 0x33d   : > { %5938 = vmatmul.mubr.f32.gmra.mrb[212].mxu0 %v8392_v9  ;;  %v4425_v9 = vld [vmem:[#allocation12 + $0x350] sm:$0xff] }
 0x33e   : > { %5940 = vmatprep.mubr.f32.mxu0 %v8404_v10  ;;  %6467 = vmatpush1.bf16.msra.mxu0 %v6466_v54  ;;  %v4426_v10 = vld [vmem:[#allocation12 + $0x358] sm:$0xff]  ;;  %v9560_v54 = vld [vmem:[#allocation32_spill] sm:$0xff] }
 0x33f   : > { %3977 = vmatmul.mubr.f32.gmra.mrb[230].mxu1 %v8506_v47  ;;  %6468 = vmatprep.subr.bf16.mxu0 %v9465_v25 }
 0x340   : > { %3981 = vmatprep.mubr.f32.mxu1 %v8399_v33  ;;  %v6475_v33 = vpack.c.bf16 %v4426_v10, %v4425_v9  ;;  %v6481_v9 = vpack.c.bf16 %v4430_v23, %v4429_v0  ;;  %v9566_v10 = vld [vmem:[#allocation45_spill] sm:$0xff]  ;;  %v4436_v0 = vld [vmem:[#allocation12 + $0x3a8] sm:$0xff] }
 0x341   : > { %5941 = vmatmul.mubr.f32.gmra.mrb[214].mxu0 %v9552_v42  ;;  %v9563_v42 = vld [vmem:[#allocation27_spill] sm:$0xff]  ;;  %v9571_v23 = vld [vmem:[#allocation44_spill] sm:$0xff] }
 0x342   : > { %5943 = vmatprep.mubr.f32.mxu0 %v9553_v21  ;;  %6470 = vmatpush1.bf16.msra.mxu0 %v6469_v15  ;;  %v9562_v15 = vld [vmem:[#allocation42_spill] sm:$0xff] }
 0x343   : > { %3982 = vmatmul.mubr.f32.gmra.mrb[232].mxu1 %v9554_v48  ;;  %6471 = vmatprep.subr.bf16.mxu0 %v9465_v25  ;;  %v9564_v21 = vld [vmem:[#allocation34_spill] sm:$0xff] }
 0x344   : > { %3986 = vmatprep.mubr.f32.mxu1 %v9555_v30  ;;  %v4431_v30 = vld [vmem:[#allocation12 + $0x380] sm:$0xff] }
 0x345   : > { %5944 = vmatmul.mubr.f32.gmra.mrb[216].mxu0 %v9556_v27  ;;  %v4432_v27 = vld [vmem:[#allocation12 + $0x388] sm:$0xff] }
 0x346   : > { %5946 = vmatprep.mubr.f32.mxu0 %v9557_v29  ;;  %6473 = vmatpush1.bf16.msra.mxu0 %v6472_v38  ;;  %v9565_v38 = vld [vmem:[#allocation35_spill] sm:$0xff]  ;;  %v9567_v29 = vld [vmem:[#allocation36_spill] sm:$0xff]  ;;  %v6484_v20 = vpack.c.bf16 %v4432_v27, %v4431_v30  ;;  %v4441_v27 = vld [vmem:[#allocation12 + $0x3d0] sm:$0xff] }
 0x347   : > { %3987 = vmatmul.mubr.f32.gmra.mrb[234].mxu1 %v9558_v55  ;;  %6474 = vmatprep.subr.bf16.mxu0 %v9465_v25  ;;  %v4440_v30 = vld [vmem:[#allocation12 + $0x3c8] sm:$0xff] }
 0x348   : > { %3991 = vmatprep.mubr.f32.mxu1 %v9559_v60  ;;  %v4434_v60 = vld [vmem:[#allocation12 + $0x398] sm:$0xff] }
 0x349   : > { %5947 = vmatmul.mubr.f32.gmra.mrb[218].mxu0 %v9560_v54  ;;  %v9569_v54 = vld [vmem:[#allocation39_spill] sm:$0xff] }
 0x34a   : > { %5949 = vmatprep.mubr.f32.mxu0 %v9561_v46  ;;  %6476 = vmatpush1.bf16.msra.mxu0 %v6475_v33  ;;  %v9568_v33 = vld [vmem:[#allocation38_spill] sm:$0xff]  ;;  %v9570_v46 = vld [vmem:[#allocation43_spill] sm:$0xff] }
 0x34b   : > { %3992 = vmatmul.mubr.f32.gmra.mrb[236].mxu1 %v9562_v15  ;;  %6477 = vmatprep.subr.bf16.mxu0 %v9465_v25 }
 0x34c   : > { %3996 = vmatprep.mubr.f32.mxu1 %v9563_v42  ;;  %v4437_v42 = vld [vmem:[#allocation12 + $0x3b0] sm:$0xff] }
 0x34d   : > { %5950 = vmatmul.mubr.f32.gmra.mrb[220].mxu0 %v9564_v21  ;;  %v4438_v21 = vld [vmem:[#allocation12 + $0x3b8] sm:$0xff] }
 0x34e   : > { %5952 = vmatprep.mubr.f32.mxu0 %v9565_v38  ;;  %6479 = vmatpush1.bf16.msra.mxu0 %v6478_v34  ;;  %v4435_v34 = vld [vmem:[#allocation12 + $0x3a0] sm:$0xff] }
 0x34f   : > { %3997 = vmatmul.mubr.f32.gmra.mrb[238].mxu1 %v9566_v10  ;;  %6480 = vmatprep.subr.bf16.mxu0 %v9465_v25  ;;  %v9572_v38 = vld [vmem:[#allocation47_spill] sm:$0xff] }
 0x350   : > { %4001 = vmatprep.mubr.f32.mxu1 %v8439_v35  ;;  %v6487_v35 = vpack.c.bf16 %v4434_v60, %v4433_v53  ;;  %v4445_v53 = vld [vmem:[#allocation12 + $0x3f0] sm:$0xff]  ;;  %v4446_v60 = vld [vmem:[#allocation12 + $0x3f8] sm:$0xff] }
 0x351   : > { %5953 = vmatmul.mubr.f32.gmra.mrb[222].mxu0 %v9567_v29  ;;  %v4442_v29 = vld [vmem:[#allocation12 + $0x3d8] sm:$0xff] }
 0x352   : > { %5955 = vmatprep.mubr.f32.mxu0 %v9568_v33  ;;  %6482 = vmatpush1.bf16.msra.mxu0 %v6481_v9  ;;  %v4439_v9 = vld [vmem:[#allocation12 + $0x3c0] sm:$0xff] }
 0x353   : > { %4002 = vmatmul.mubr.f32.gmra.mrb[240].mxu1 %v8591_v2  ;;  %6483 = vmatprep.subr.bf16.mxu0 %v9465_v25  ;;  %v4443_v33 = vld [vmem:[#allocation12 + $0x3e0] sm:$0xff] }
 0x354   : > { %4006 = vmatprep.mubr.f32.mxu1 %v8443_v12  ;;  %v6490_v12 = vpack.c.bf16 %v4436_v0, %v4435_v34  ;;  %v9575_v34 = vld [vmem:[#allocation46_spill] sm:$0xff]  ;;  %v6711_v0 = vld [vmem:[#allocation4 + $0x47] sm:$0xff] }
 0x355   : > { %5956 = vmatmul.mubr.f32.gmra.mrb[224].mxu0 %v9569_v54  ;;  %v9573_v54 = vld [vmem:[#allocation41_spill] sm:$0xff] }
 0x356   : > { %5958 = vmatprep.mubr.f32.mxu0 %v9570_v46  ;;  %6485 = vmatpush1.bf16.msra.mxu0 %v6484_v20  ;;  %v4444_v20 = vld [vmem:[#allocation12 + $0x3e8] sm:$0xff]  ;;  %v9574_v46 = vld [vmem:[#allocation49_spill] sm:$0xff] }
 0x357   : > { %4007 = vmatmul.mubr.f32.gmra.mrb[242].mxu1 %v8608_v16  ;;  %6486 = vmatprep.subr.bf16.mxu0 %v9465_v25 }
 0x358   : > { %4011 = vmatprep.mubr.f32.mxu1 %v8463_v19  ;;  %v6493_v19 = vpack.c.bf16 %v4438_v21, %v4437_v42  ;;  %v6714_v42 = vld [vmem:[#allocation4 + $0x67] sm:$0xff] }
 0x359   : > { %5959 = vmatmul.mubr.f32.gmra.mrb[226].mxu0 %v9571_v23  ;;  %v9576_v23 = vld [vmem:[#allocation51_spill] sm:$0xff]  ;;  %v9578_v21 = vld [vmem:[#allocation52_spill] sm:$0xff] }
 0x35a   : > { %5961 = vmatprep.mubr.f32.mxu0 %v8593_v37  ;;  %6488 = vmatpush1.bf16.msra.mxu0 %v6487_v35  ;;  %v6710_v35 = vld [vmem:[#allocation4 + $0x48] sm:$0xff] }
 0x35b   : > { %4012 = vmatmul.mubr.f32.gmra.mrb[244].mxu1 %v8619_v31  ;;  %6489 = vmatprep.subr.bf16.mxu0 %v9465_v25 }
 0x35c   : > { %4016 = vmatprep.mubr.f32.mxu1 %v8481_v40  ;;  %v6496_v40 = vpack.c.bf16 %v4440_v30, %v4439_v9  ;;  %v6716_v9 = vld [vmem:[#allocation4 + $0x88] sm:$0xff]  ;;  %v9580_v30 = vld [vmem:[#allocation53_spill] sm:$0xff] }
 0x35d   : > { %5962 = vmatmul.mubr.f32.gmra.mrb[228].mxu0 %v9572_v38 }
 0x35e   : > { %5964 = vmatprep.mubr.f32.mxu0 %v8621_v14  ;;  %6491 = vmatpush1.bf16.msra.mxu0 %v6490_v12  ;;  %v9577_v12 = vld [vmem:[#allocation48_spill] sm:$0xff] }
 0x35f   : > { %4017 = vmatmul.mubr.f32.gmra.mrb[246].mxu1 %v8636_v32  ;;  %6492 = vmatprep.subr.bf16.mxu0 %v9465_v25 }
 0x360   : > { %4021 = vmatprep.mubr.f32.mxu1 %v8503_v28  ;;  %v6499_v28 = vpack.c.bf16 %v4442_v29, %v4441_v27  ;;  %v6717_v27 = vld [vmem:[#allocation4 + $0x87] sm:$0xff]  ;;  %v9582_v29 = vld [vmem:[#allocation57_spill] sm:$0xff] }
 0x361   : > { %5965 = vmatmul.mubr.f32.gmra.mrb[230].mxu0 %v8624_v22 }
 0x362   : > { %5967 = vmatprep.mubr.f32.mxu0 %v8651_v11  ;;  %6494 = vmatpush1.bf16.msra.mxu0 %v6493_v19  ;;  %v9579_v19 = vld [vmem:[#allocation23_spill] sm:$0xff] }
 0x363   : > { %4022 = vmatmul.mubr.f32.gmra.mrb[248].mxu1 %v8649_v3  ;;  %6495 = vmatprep.subr.bf16.mxu0 %v9465_v25 }
 0x364   : > { %4026 = vmatprep.mubr.f32.mxu1 %v8517_v63  ;;  %v6502_v63 = vpack.c.bf16 %v4444_v20, %v4443_v33 }
 0x365   : > { %5968 = vmatmul.mubr.f32.gmra.mrb[232].mxu0 %v8654_v62 }
 0x366   : > { %5970 = vmatprep.mubr.f32.mxu0 %v8678_v36  ;;  %6497 = vmatpush1.bf16.msra.mxu0 %v6496_v40  ;;  %v9581_v40 = vld [vmem:[#allocation24_spill] sm:$0xff] }
 0x367   : > { %4027 = vmatmul.mubr.f32.gmra.mrb[250].mxu1 %v8666_v4  ;;  %6498 = vmatprep.subr.bf16.mxu0 %v9465_v25 }
 0x368   : > { %4031 = vmatprep.mubr.f32.mxu1 %v8539_v7  ;;  %v6505_v7 = vpack.c.bf16 %v4446_v60, %v4445_v53 }
 0x369   : > { %5971 = vmatmul.mubr.f32.gmra.mrb[234].mxu0 %v8681_v61 }
 0x36a   : > { %5973 = vmatprep.mubr.f32.mxu0 %v8704_v59  ;;  %6500 = vmatpush1.bf16.msra.mxu0 %v6499_v28 }
 0x36b   : > { %4032 = vmatmul.mubr.f32.gmra.mrb[252].mxu1 %v8676_v5  ;;  %6501 = vmatprep.subr.bf16.mxu0 %v9465_v25 }
 0x36c   : > { %4036 = vmatprep.mubr.f32.mxu1 %v9573_v54 }
 0x36d   : > { %5974 = vmatmul.mubr.f32.gmra.mrb[236].mxu0 %v8707_v56 }
 0x36e   : > { %5976 = vmatprep.mubr.f32.mxu0 %v8728_v8  ;;  %6503 = vmatpush1.bf16.msra.mxu0 %v6502_v63  ;;  %v6718_v63 = vld [vmem:[#allocation4 + $0xa8] sm:$0xff] }
 0x36f   : > { %4037 = vmatmul.mubr.f32.gmra.mrb[254].mxu1 %v9574_v46  ;;  %6504 = vmatprep.subr.bf16.mxu0 %v9465_v25  ;;  %v6712_v25 = vld [vmem:[#allocation4 + $0x4f] sm:$0xff] }
 0x370   : > { %4041 = vmatprep.mubr.f32.mxu1 %v8575_v51  ;;  %v6713_v51 = vld [vmem:[#allocation4 + $0x68] sm:$0xff] }
 0x371   : > { %5977 = vmatmul.mubr.f32.gmra.mrb[238].mxu0 %v8731_v49 }
 0x372   : > { %6506 = vmatpush1.bf16.msra.mxu0 %v6505_v7  ;;  %4527 = vmatprep.mubr.f32.mxu0 %v6710_v35 }
 0x373   : > { %4042 = vmatmul.mubr.f32.gmra.mrb[0].mxu1 %v8702_v58 }
 0x374   : > { %4046 = vmatprep.mubr.f32.mxu1 %v9575_v34 }
 0x375   : > { %4528 = vmatmul.mubr.f32.vlgmr.msra.gmra.mrb[240].mxu0 %v6711_v0  ;;  %v6719_v0 = vld [vmem:[#allocation4 + $0xb0] sm:$0xff] }
 0x376   : > { %4532 = vmatprep.mubr.f32.mxu0 %v8781_v6  ;;  %v6715_v6 = vld [vmem:[#allocation4 + $0x6f] sm:$0xff] }
 0x377   : > { %4047 = vmatmul.mubr.f32.gmra.mrb[2].mxu1 %v8718_v39 }
 0x378   : > { %4051 = vmatprep.mubr.f32.mxu1 %v8605_v57 }
 0x379   : > { %4533 = vmatmul.mubr.f32.gmra.mrb[242].mxu0 %v6712_v25 }
 0x37a   : > { %4537 = vmatprep.mubr.f32.mxu0 %v6713_v51 }
 0x37b   : > { %4052 = vmatmul.mubr.f32.gmra.mrb[4].mxu1 %v9576_v23 }
 0x37c   : > { %4056 = vmatprep.mubr.f32.mxu1 %v9577_v12 }
 0x37d   : > { %4538 = vmatmul.mubr.f32.gmra.mrb[244].mxu0 %v6714_v42 }
 0x37e   : > { %4542 = vmatprep.mubr.f32.mxu0 %v8794_v1 }
 0x37f   : > { %4057 = vmatmul.mubr.f32.gmra.mrb[6].mxu1 %v9578_v21 }
 0x380   : > { %4061 = vmatprep.mubr.f32.mxu1 %v9579_v19 }
 0x381   : > { %4543 = vmatmul.mubr.f32.gmra.mrb[246].mxu0 %v6715_v6 }
 0x382   : > { %4547 = vmatprep.mubr.f32.mxu0 %v6716_v9  ;;  %v6720_v9 = vld [vmem:[#allocation4 + $0xc8] sm:$0xff] }
 0x383   : > { %4062 = vmatmul.mubr.f32.gmra.mrb[8].mxu1 %v9580_v30 }
 0x384   : > { %4066 = vmatprep.mubr.f32.mxu1 %v9581_v40 }
 0x385   : > { %4548 = vmatmul.mubr.f32.gmra.mrb[248].mxu0 %v6717_v27  ;;  %v3483_v1 = vpop.f32.mrb[144].mxu0  ;;  %v5853_v28 = vpop.f32.mrb[180].mxu1 }
 0x386   : > { %4552 = vmatprep.mubr.f32.mxu0 %v8803_v50  ;;  %v3485_v33 = vpop.f32.mrb[145].mxu0  ;;  %v3708_v20 = vpop.f32.mrb[181].mxu1 }
 0x387   : > { %4067 = vmatmul.mubr.f32.gmra.mrb[10].mxu1 %v9582_v29  ;;  %v8888_v53 = vadd.f32 %v3708_v20, %v3483_v1  ;;  %v6721_v20 = vld [vmem:[#allocation4 + $0xd0] sm:$0xff] }
 0x388   : > { %4071 = vmatprep.mubr.f32.mxu1 %v8663_v18 }
 0x389   : > { %4553 = vmatmul.mubr.f32.gmra.mrb[250].mxu0 %v8506_v47  ;;  %v3488_v60 = vpop.f32.mrb[146].mxu0  ;;  %v5856_v54 = vpop.f32.mrb[182].mxu1 }
 0x38a   : > { %4557 = vmatprep.mubr.f32.mxu0 %v6718_v63  ;;  %v8892_v50 = vadd.f32 %v5853_v28, %v3488_v60  ;;  %v3490_v7 = vpop.f32.mrb[147].mxu0  ;;  %v3718_v35 = vpop.f32.mrb[183].mxu1 }
 0x38b   : > { %4072 = vmatmul.mubr.f32.gmra.mrb[12].mxu1 %v8759_v45 }
 0x38c   : > { %4076 = vmatprep.mubr.f32.mxu1 %v8673_v17 }
 0x38d   : > { %4558 = vmatmul.mubr.f32.gmra.mrb[252].mxu0 %v9554_v48  ;;  %v3493_v47 = vpop.f32.mrb[148].mxu0  ;;  %v5859_v51 = vpop.f32.mrb[184].mxu1 }
 0x38e   : > { %4562 = vmatprep.mubr.f32.mxu0 %v6719_v0  ;;  %v8897_v25 = vadd.f32 %v3718_v35, %v3493_v47  ;;  %v3495_v42 = vpop.f32.mrb[149].mxu0  ;;  %v3728_v6 = vpop.f32.mrb[185].mxu1  ;;  %v6723_v0 = vld [vmem:[#allocation4 + $0xe8] sm:$0xff]  ;;  %v6724_v47 = vld [vmem:[#allocation4 + $0x51] sm:$0xff] }
 0x38f   : > { %4077 = vmatmul.mubr.f32.gmra.mrb[14].mxu1 %v8765_v13 }
 0x390   : > { %4081 = vmatprep.mubr.f32.mxu1 %v8689_v43 }
 0x391   : > { %4563 = vmatmul.mubr.f32.gmra.mrb[254].mxu0 %v9558_v55  ;;  %v3498_v48 = vpop.f32.mrb[150].mxu0  ;;  %v6722_v55 = vld [vmem:[#allocation4 + $0x49] sm:$0xff] }
 0x392   : > { %4567 = vmatprep.mubr.f32.mxu0 %v6720_v9  ;;  %v8902_v27 = vadd.f32 %v5856_v54, %v3498_v48  ;;  %v3500_v28 = vpop.f32.mrb[151].mxu0 }
 0x393   : > { %4082 = vmatmul.mubr.f32.gmra.mrb[16].mxu1 %v8770_v41 }
 0x394   : > { %4086 = vmatprep.mubr.f32.mxu1 %v8699_v26  ;;  %v5862_v1 = vpop.f32.mrb[186].mxu1 }
 0x395   : > { %4568 = vmatmul.mubr.f32.gmra.mrb[0].mxu0 %v9562_v15  ;;  %v3738_v33 = vpop.f32.mrb[187].mxu1  ;;  %v6725_v15 = vld [vmem:[#allocation4 + $0x69] sm:$0xff] }
 0x396   : > { %4572 = vmatprep.mubr.f32.mxu0 %v6721_v20  ;;  %v3503_v63 = vpop.f32.mrb[152].mxu0  ;;  %v6726_v20 = vld [vmem:[#allocation4 + $0xf0] sm:$0xff] }
 0x397   : > { %4087 = vmatmul.mubr.f32.gmra.mrb[18].mxu1 %v8776_v52  ;;  %v8906_v60 = vadd.f32 %v3728_v6, %v3503_v63  ;;  %v3505_v35 = vpop.f32.mrb[153].mxu0 }
 0x398   : > { %6011 = vmatprep.mubr.f32.mxu1 %v6722_v55  ;;  %v5865_v7 = vpop.f32.mrb[188].mxu1  ;;  %v6727_v55 = vld [vmem:[#allocation4 + $0x71] sm:$0xff] }
 0x399   : > { %4573 = vmatmul.mubr.f32.gmra.mrb[2].mxu0 %v9566_v10  ;;  %v3748_v54 = vpop.f32.mrb[189].mxu1  ;;  %v6728_v10 = vld [vmem:[#allocation4 + $0x89] sm:$0xff] }
 0x39a   : > { %4577 = vmatprep.mubr.f32.mxu0 %v6723_v0  ;;  %v3508_v42 = vpop.f32.mrb[154].mxu0 }
 0x39b   : > { %6012 = vmatmul.mubr.f32.vlgmr.msra.gmra.mrb[20].mxu1 %v6724_v47  ;;  %v8909_v9 = vadd.f32 %v5859_v51, %v3508_v42  ;;  %v3510_v28 = vpop.f32.mrb[155].mxu0  ;;  %v6729_v47 = vld [vmem:[#allocation4 + $0x108] sm:$0xff]  ;;  %v6730_v42 = vld [vmem:[#allocation4 + $0x91] sm:$0xff] }
 0x39c   : > { %6014 = vmatprep.mubr.f32.mxu1 %v6725_v15  ;;  %v8911_v48 = vpop.f32.mrb[190].mxu1 }
 0x39d   : > { %4578 = vmatmul.mubr.f32.gmra.mrb[4].mxu0 %v8591_v2  ;;  %v3758_v6 = vpop.f32.mrb[191].mxu1  ;;  %v6731_v2 = vld [vmem:[#allocation4 + $0xa9] sm:$0xff] }
 0x39e   : > { %4582 = vmatprep.mubr.f32.mxu0 %v6726_v20  ;;  %v3513_v63 = vpop.f32.mrb[156].mxu0 }
 0x39f   : > { %6015 = vmatmul.mubr.f32.gmra.mrb[22].mxu1 %v6727_v55  ;;  %v8914_v35 = vadd.f32 %v3738_v33, %v3513_v63  ;;  %v3515_v0 = vpop.f32.mrb[157].mxu0  ;;  %v6732_v33 = vld [vmem:[#allocation4 + $0x110] sm:$0xff] }
 0x3a0   : > { %6017 = vmatprep.mubr.f32.mxu1 %v6728_v10  ;;  %v6733_v10 = vld [vmem:[#allocation4 + $0xb1] sm:$0xff] }
 0x3a1   : > { %4583 = vmatmul.mubr.f32.gmra.mrb[6].mxu0 %v8608_v16  ;;  %v6734_v16 = vld [vmem:[#allocation4 + $0xc9] sm:$0xff] }
 0x3a2   : > { %v8917_v51 = vpop.f32.mrb[192].mxu1  ;;  %4587 = vmatprep.mubr.f32.mxu0 %v6729_v47 }
 0x3a3   : > { %v3768_v15 = vpop.f32.mrb[193].mxu1  ;;  %6018 = vmatmul.mubr.f32.gmra.mrb[24].mxu1 %v6730_v42  ;;  %v3518_v28 = vpop.f32.mrb[158].mxu0 }
 0x3a4   : > { %6020 = vmatprep.mubr.f32.mxu1 %v6731_v2  ;;  %v8919_v20 = vadd.f32 %v5862_v1, %v3518_v28  ;;  %v3520_v55 = vpop.f32.mrb[159].mxu0  ;;  %v6735_v2 = vld [vmem:[#allocation4 + $0x128] sm:$0xff]  ;;  %v6736_v28 = vld [vmem:[#allocation4 + $0xd1] sm:$0xff] }
 0x3a5   : > { %4588 = vmatmul.mubr.f32.gmra.mrb[8].mxu0 %v8619_v31  ;;  %v6737_v31 = vld [vmem:[#allocation4 + $0xe9] sm:$0xff] }
 0x3a6   : > { %4592 = vmatprep.mubr.f32.mxu0 %v6732_v33 }
 0x3a7   : > { %6021 = vmatmul.mubr.f32.gmra.mrb[26].mxu1 %v6733_v10  ;;  %v3523_v63 = vpop.f32.mrb[160].mxu0 }
 0x3a8   : > { %6023 = vmatprep.mubr.f32.mxu1 %v6734_v16  ;;  %v8922_v0 = vadd.f32 %v3748_v54, %v3523_v63  ;;  %v3525_v47 = vpop.f32.mrb[161].mxu0  ;;  %v6738_v54 = vld [vmem:[#allocation4 + $0x130] sm:$0xff] }
 0x3a9   : > { %4593 = vmatmul.mubr.f32.gmra.mrb[10].mxu0 %v8636_v32  ;;  %v6739_v16 = vld [vmem:[#allocation4 + $0xf1] sm:$0xff]  ;;  %v6740_v32 = vld [vmem:[#allocation4 + $0x109] sm:$0xff] }
 0x3aa   : > { %4597 = vmatprep.mubr.f32.mxu0 %v6735_v2 }
 0x3ab   : > { %v8925_v42 = vpop.f32.mrb[194].mxu1  ;;  %6024 = vmatmul.mubr.f32.gmra.mrb[28].mxu1 %v6736_v28  ;;  %v3528_v55 = vpop.f32.mrb[162].mxu0 }
 0x3ac   : > { %v3778_v1 = vpop.f32.mrb[195].mxu1  ;;  %6026 = vmatprep.mubr.f32.mxu1 %v6737_v31  ;;  %v8927_v33 = vadd.f32 %v5865_v7, %v3528_v55  ;;  %v3530_v10 = vpop.f32.mrb[163].mxu0  ;;  %v6741_v31 = vld [vmem:[#allocation4 + $0x148] sm:$0xff]  ;;  %v6742_v55 = vld [vmem:[#allocation4 + $0x111] sm:$0xff] }
 0x3ad   : > { %4598 = vmatmul.mubr.f32.gmra.mrb[12].mxu0 %v8649_v3  ;;  %v6743_v10 = vld [vmem:[#allocation4 + $0x129] sm:$0xff] }
 0x3ae   : > { %4602 = vmatprep.mubr.f32.mxu0 %v6738_v54 }
 0x3af   : > { %6027 = vmatmul.mubr.f32.gmra.mrb[30].mxu1 %v6739_v16  ;;  %v3533_v63 = vpop.f32.mrb[164].mxu0 }
 0x3b0   : > { %6029 = vmatprep.mubr.f32.mxu1 %v6740_v32  ;;  %v8930_v47 = vadd.f32 %v3758_v6, %v3533_v63  ;;  %v3535_v2 = vpop.f32.mrb[165].mxu0  ;;  %v6744_v6 = vld [vmem:[#allocation4 + $0x150] sm:$0xff] }
 0x3b1   : > { %4603 = vmatmul.mubr.f32.gmra.mrb[14].mxu0 %v8666_v4  ;;  %v6745_v32 = vld [vmem:[#allocation4 + $0x131] sm:$0xff] }
 0x3b2   : > { %v5877_v28 = vpop.f32.mrb[196].mxu1  ;;  %4607 = vmatprep.mubr.f32.mxu0 %v6741_v31 }
 0x3b3   : > { %v3788_v7 = vpop.f32.mrb[197].mxu1  ;;  %6030 = vmatmul.mubr.f32.gmra.mrb[32].mxu1 %v6742_v55  ;;  %v3538_v3 = vpop.f32.mrb[166].mxu0  ;;  %v6746_v55 = vld [vmem:[#allocation4 + $0x168] sm:$0xff] }
 0x3b4   : > { %6032 = vmatprep.mubr.f32.mxu1 %v6743_v10  ;;  %v8934_v54 = vadd.f32 %v8911_v48, %v3538_v3  ;;  %v3540_v16 = vpop.f32.mrb[167].mxu0 }
 0x3b5   : > { %4608 = vmatmul.mubr.f32.gmra.mrb[16].mxu0 %v8676_v5 }
 0x3b6   : > { %4612 = vmatprep.mubr.f32.mxu0 %v6744_v6 }
 0x3b7   : > { %6033 = vmatmul.mubr.f32.gmra.mrb[34].mxu1 %v6745_v32  ;;  %v3543_v4 = vpop.f32.mrb[168].mxu0 }
 0x3b8   : > { %6035 = vmatprep.mubr.f32.mxu1 %v8593_v37  ;;  %v8938_v63 = vadd.f32 %v3768_v15, %v3543_v4  ;;  %v3545_v2 = vpop.f32.mrb[169].mxu0 }
 0x3b9   : > { %4613 = vmatmul.mubr.f32.gmra.mrb[18].mxu0 %v9574_v46 }
 0x3ba   : > { %4617 = vmatprep.mubr.f32.mxu0 %v6746_v55 }
 0x3bb   : > { %v5880_v31 = vpop.f32.mrb[198].mxu1  ;;  %6036 = vmatmul.mubr.f32.gmra.mrb[36].mxu1 %v9572_v38  ;;  %v3548_v5 = vpop.f32.mrb[170].mxu0 }
 0x3bc   : > { %v3798_v48 = vpop.f32.mrb[199].mxu1  ;;  %6038 = vmatprep.mubr.f32.mxu1 %v8621_v14  ;;  %v8944_v10 = vadd.f32 %v8917_v51, %v3548_v5  ;;  %v3550_v3 = vpop.f32.mrb[171].mxu0 }
 0x3bd   : > { %4618 = vmatmul.mubr.f32.gmra.mrb[20].mxu0 %v8702_v58  ;;  %v9585_v3 = vld [vmem:[#allocation58_spill] sm:$0xff] }
 0x3be   : > { %4622 = vmatprep.mubr.f32.mxu0 %v9575_v34 }
 0x3bf   : > { %6039 = vmatmul.mubr.f32.gmra.mrb[38].mxu1 %v8624_v22  ;;  %v3553_v37 = vpop.f32.mrb[172].mxu0 }
 0x3c0   : > { %6041 = vmatprep.mubr.f32.mxu1 %v8651_v11  ;;  %v8950_v46 = vadd.f32 %v3778_v1, %v3553_v37  ;;  %v3555_v15 = vpop.f32.mrb[173].mxu0  ;;  %v9584_v1 = vld [vmem:[#allocation55_spill] sm:$0xff]  ;;  %v9586_v37 = vld [vmem:[#allocation50_spill] sm:$0xff] }
 0x3c1   : > { %4623 = vmatmul.mubr.f32.gmra.mrb[22].mxu0 %v8718_v39 }
 0x3c2   : > { %v5883_v14 = vpop.f32.mrb[200].mxu1  ;;  %4627 = vmatprep.mubr.f32.mxu0 %v8605_v57 }
 0x3c3   : > { %v3808_v38 = vpop.f32.mrb[201].mxu1  ;;  %6042 = vmatmul.mubr.f32.gmra.mrb[40].mxu1 %v8654_v62  ;;  %v3558_v58 = vpop.f32.mrb[174].mxu0 }
 0x3c4   : > { %6044 = vmatprep.mubr.f32.mxu1 %v8678_v36  ;;  %v8957_v34 = vadd.f32 %v8925_v42, %v3558_v58  ;;  %v3560_v22 = vpop.f32.mrb[175].mxu0 }
 0x3c5   : > { %4628 = vmatmul.mubr.f32.gmra.mrb[24].mxu0 %v9576_v23 }
 0x3c6   : > { %4632 = vmatprep.mubr.f32.mxu0 %v9577_v12 }
 0x3c7   : > { %6045 = vmatmul.mubr.f32.gmra.mrb[42].mxu1 %v8681_v61  ;;  %v3563_v11 = vpop.f32.mrb[176].mxu0 }
 0x3c8   : > { %6047 = vmatprep.mubr.f32.mxu1 %v8704_v59  ;;  %v8963_v57 = vadd.f32 %v3788_v7, %v3563_v11  ;;  %v3565_v39 = vpop.f32.mrb[177].mxu0  ;;  %v9583_v59 = vld [vmem:[#allocation54_spill] sm:$0xff] }
 0x3c9   : > { %4633 = vmatmul.mubr.f32.gmra.mrb[26].mxu0 %v9578_v21 }
 0x3ca   : > { %v5886_v62 = vpop.f32.mrb[202].mxu1  ;;  %4637 = vmatprep.mubr.f32.mxu0 %v9579_v19 }
 0x3cb   : > { %v3818_v36 = vpop.f32.mrb[203].mxu1  ;;  %6048 = vmatmul.mubr.f32.gmra.mrb[44].mxu1 %v8707_v56  ;;  %v3568_v23 = vpop.f32.mrb[178].mxu0  ;;  %v3089_v56 = vld [vmem:[#allocation4 + $0x229] sm:$0xff] }
 0x3cc   : > { %6050 = vmatprep.mubr.f32.mxu1 %v8728_v8  ;;  %v8969_v12 = vadd.f32 %v5877_v28, %v3568_v23  ;;  %v3570_v61 = vpop.f32.mrb[179].mxu0 }
 0x3cd   : > { %4638 = vmatmul.mubr.f32.gmra.mrb[28].mxu0 %v9580_v30 }
 0x3ce   : > { %4642 = vmatprep.mubr.f32.mxu0 %v9581_v40  ;;  %v3090_v40 = vld [vmem:[#allocation4 + $0x231] sm:$0xff] }
 0x3cf   : > { %6051 = vmatmul.mubr.f32.gmra.mrb[46].mxu1 %v8731_v49  ;;  %v3573_v21 = vpop.f32.mrb[180].mxu0 }
 0x3d0   : > { %6053 = vmatprep.mubr.f32.mxu1 %v9583_v59  ;;  %v8975_v51 = vadd.f32 %v3798_v48, %v3573_v21  ;;  %v3575_v19 = vpop.f32.mrb[181].mxu0 }
 0x3d1   : > { %4643 = vmatmul.mubr.f32.gmra.mrb[30].mxu0 %v9582_v29 }
 0x3d2   : > { %v5889_v8 = vpop.f32.mrb[204].mxu1  ;;  %4647 = vmatprep.mubr.f32.mxu0 %v8663_v18 }
 0x3d3   : > { %v3828_v42 = vpop.f32.mrb[205].mxu1  ;;  %6054 = vmatmul.mubr.f32.gmra.mrb[48].mxu1 %v9584_v1  ;;  %v3578_v30 = vpop.f32.mrb[182].mxu0 }
 0x3d4   : > { %6056 = vmatprep.mubr.f32.mxu1 %v3089_v56  ;;  %v8980_v28 = vadd.f32 %v5880_v31, %v3578_v30  ;;  %v3580_v49 = vpop.f32.mrb[183].mxu0 }
 0x3d5   : > { %4648 = vmatmul.mubr.f32.gmra.mrb[32].mxu0 %v8759_v45 }
 0x3d6   : > { %4652 = vmatprep.mubr.f32.mxu0 %v8673_v17 }
 0x3d7   : > { %6057 = vmatmul.mubr.f32.gmra.mrb[50].mxu1 %v3090_v40  ;;  %v3583_v7 = vpop.f32.mrb[184].mxu0 }
 0x3d8   : > { %v8984_v29 = vadd.f32 %v3808_v38, %v3583_v7  ;;  %v3585_v16 = vpop.f32.mrb[185].mxu0  ;;  %v2945_v38 = vld [vmem:[#allocation4 + $0x227] sm:$0xff] }
 0x3d9   : > { %4653 = vmatmul.mubr.f32.gmra.mrb[34].mxu0 %v8765_v13 }
 0x3da   : > { %v5892_v18 = vpop.f32.mrb[206].mxu1  ;;  %4657 = vmatprep.mubr.f32.mxu0 %v8689_v43 }
 0x3db   : > { %v3838_v6 = vpop.f32.mrb[207].mxu1  ;;  %v3588_v32 = vpop.f32.mrb[186].mxu0 }
 0x3dc   : > { %v8988_v4 = vadd.f32 %v5883_v14, %v3588_v32  ;;  %v3590_v2 = vpop.f32.mrb[187].mxu0 }
 0x3dd   : > { %4658 = vmatmul.mubr.f32.gmra.mrb[36].mxu0 %v8770_v41 }
 0x3de   : > { %4662 = vmatprep.mubr.f32.mxu0 %v8699_v26 }
 0x3df   : > { %v3593_v45 = vpop.f32.mrb[188].mxu0 }
 0x3e0   : > { %v8992_v17 = vadd.f32 %v3818_v36, %v3593_v45  ;;  %v3595_v31 = vpop.f32.mrb[189].mxu0 }
 0x3e1   : > { %4663 = vmatmul.mubr.f32.gmra.mrb[38].mxu0 %v8776_v52  ;;  %v9587_v52 = vld [vmem:[#allocation56_spill] sm:$0xff] }
 0x3e2   : > { %v5895_v55 = vpop.f32.mrb[208].mxu1  ;;  %4667 = vmatprep.mubr.f32.mxu0 %v8715_v44 }
 0x3e3   : > { %v3848_v13 = vpop.f32.mrb[209].mxu1  ;;  %v3598_v43 = vpop.f32.mrb[190].mxu0 }
 0x3e4   : > { %v8996_v48 = vadd.f32 %v5886_v62, %v3598_v43  ;;  %v3600_v5 = vpop.f32.mrb[191].mxu0  ;;  %v2946_v62 = vld [vmem:[#allocation4 + $0x22f] sm:$0xff] }
 0x3e5   : > { %4668 = vmatmul.mubr.f32.gmra.mrb[40].mxu0 %v9585_v3 }
 0x3e6   : > { %4672 = vmatprep.mubr.f32.mxu0 %v9586_v37 }
 0x3e7   : > { %v3603_v41 = vpop.f32.mrb[192].mxu0 }
 0x3e8   : > { %v9000_v26 = vadd.f32 %v3828_v42, %v3603_v41  ;;  %v3605_v15 = vpop.f32.mrb[193].mxu0 }
 0x3e9   : > { %4673 = vmatmul.mubr.f32.gmra.mrb[42].mxu0 %v8790_v24 }
 0x3ea   : > { %v5898_v14 = vpop.f32.mrb[210].mxu1  ;;  %4677 = vmatprep.mubr.f32.mxu0 %v9587_v52 }
 0x3eb   : > { %v3858_v44 = vpop.f32.mrb[211].mxu1  ;;  %v3608_v58 = vpop.f32.mrb[194].mxu0 }
 0x3ec   : > { %v9004_v22 = vadd.f32 %v5889_v8, %v3608_v58  ;;  %v3610_v11 = vpop.f32.mrb[195].mxu0 }
 0x3ed   : > { %4678 = vmatmul.mubr.f32.gmra.mrb[44].mxu0 %v2945_v38 }
 0x3ee   : > { %v3933_v39 = vpop.f32.mrb[212].mxu1  ;;  %4682 = vmatprep.mubr.f32.mxu0 %v9587_v52 }
 0x3ef   : > { %v3934_v36 = vadd.f32 %v3933_v39, %v8888_v53  ;;  %v3935_v23 = vpop.f32.mrb[213].mxu1 }
 0x3f0   : > { %v3613_v61 = vpop.f32.mrb[196].mxu0 }
 0x3f1   : > { %v9008_v59 = vadd.f32 %v3838_v6, %v3613_v61  ;;  %v3615_v24 = vpop.f32.mrb[197].mxu0  ;;  %4683 = vmatmul.mubr.f32.gmra.mrb[46].mxu0 %v2946_v62 }
 0x3f2   : > { %v3938_v21 = vpop.f32.mrb[214].mxu1 }
 0x3f3   : > { %v3939_v19 = vadd.f32 %v3938_v21, %v8892_v50  ;;  %v3940_v56 = vpop.f32.mrb[215].mxu1 }
 0x3f4   : > { %v3618_v8 = vpop.f32.mrb[198].mxu0 }
 0x3f5   : > { %v9011_v42 = vadd.f32 %v5892_v18, %v3618_v8  ;;  %v3620_v1 = vpop.f32.mrb[199].mxu0 }
 0x3f6   : > { %v3943_v30 = vpop.f32.mrb[216].mxu1 }
 0x3f7   : > { %v3944_v40 = vadd.f32 %v3943_v30, %v8897_v25  ;;  %v3945_v49 = vpop.f32.mrb[217].mxu1 }
 0x3f8   : > { %v3623_v7 = vpop.f32.mrb[200].mxu0 }
 0x3f9   : > { %v9014_v53 = vadd.f32 %v3848_v13, %v3623_v7  ;;  %v3625_v16 = vpop.f32.mrb[201].mxu0 }
 0x3fa   : > { %v3948_v6 = vpop.f32.mrb[218].mxu1 }
 0x3fb   : > { %v3949_v32 = vadd.f32 %v3948_v6, %v8902_v27  ;;  %v3950_v2 = vpop.f32.mrb[219].mxu1 }
 0x3fc   : > { %v3628_v45 = vpop.f32.mrb[202].mxu0 }
 0x3fd   : > { %v9017_v31 = vadd.f32 %v5895_v55, %v3628_v45  ;;  %v3630_v50 = vpop.f32.mrb[203].mxu0 }
 0x3fe   : > { %v3953_v43 = vpop.f32.mrb[220].mxu1 }
 0x3ff   : > { %v3954_v18 = vadd.f32 %v3953_v43, %v8906_v60  ;;  %v3955_v5 = vpop.f32.mrb[221].mxu1 }
 0x400   : > { %v3633_v3 = vpop.f32.mrb[204].mxu0 }
 0x401   : > { %v9020_v37 = vadd.f32 %v3858_v44, %v3633_v3  ;;  %v3635_v25 = vpop.f32.mrb[205].mxu0 }
 0x402   : > { %v3958_v41 = vpop.f32.mrb[222].mxu1 }
 0x403   : > { %v3959_v13 = vadd.f32 %v3958_v41, %v8909_v9  ;;  %v3960_v15 = vpop.f32.mrb[223].mxu1 }
 0x404   : > { %v3638_v52 = vpop.f32.mrb[206].mxu0 }
 0x405   : > { %v9023_v38 = vadd.f32 %v5898_v14, %v3638_v52  ;;  %v3640_v27 = vpop.f32.mrb[207].mxu0 }
 0x406   : > { %v3963_v58 = vpop.f32.mrb[224].mxu1 }
 0x407   : > { %v3964_v55 = vadd.f32 %v3963_v58, %v8914_v35  ;;  %v3965_v11 = vpop.f32.mrb[225].mxu1 }
 0x408   : > { %v5933_v39 = vpop.f32.mrb[208].mxu0 }
 0x409   : > { %v9026_v62 = vadd.f32 %v5933_v39, %v3939_v19  ;;  %v4158_v60 = vpop.f32.mrb[209].mxu0 }
 0x40a   : > { %v3968_v23 = vpop.f32.mrb[226].mxu1  ;;  %v9028_v44 = vadd.f32 %v4158_v60, %v3934_v36 }
 0x40b   : > { %v3969_v61 = vadd.f32 %v3968_v23, %v8919_v20  ;;  %v3970_v24 = vpop.f32.mrb[227].mxu1 }
 0x40c   : > { %v5936_v9 = vpop.f32.mrb[210].mxu0 }
 0x40d   : > { %v9031_v21 = vadd.f32 %v5936_v9, %v3949_v32  ;;  %v4168_v14 = vpop.f32.mrb[211].mxu0 }
 0x40e   : > { %v3973_v56 = vpop.f32.mrb[228].mxu1  ;;  %v9033_v8 = vadd.f32 %v4168_v14, %v3944_v40 }
 0x40f   : > { %v3974_v35 = vadd.f32 %v3973_v56, %v8922_v0  ;;  %v3975_v1 = vpop.f32.mrb[229].mxu1 }
 0x410   : > { %v5939_v30 = vpop.f32.mrb[212].mxu0 }
 0x411   : > { %v9036_v19 = vadd.f32 %v5939_v30, %v3959_v13  ;;  %v4178_v49 = vpop.f32.mrb[213].mxu0 }
 0x412   : > { %v3978_v7 = vpop.f32.mrb[230].mxu1  ;;  %v9038_v36 = vadd.f32 %v4178_v49, %v3954_v18 }
 0x413   : > { %v3979_v20 = vadd.f32 %v3978_v7, %v8927_v33  ;;  %v3980_v16 = vpop.f32.mrb[231].mxu1 }
 0x414   : > { %v5942_v6 = vpop.f32.mrb[214].mxu0 }
 0x415   : > { %v9041_v32 = vadd.f32 %v5942_v6, %v3969_v61  ;;  %v4188_v2 = vpop.f32.mrb[215].mxu0 }
 0x416   : > { %v3983_v45 = vpop.f32.mrb[232].mxu1  ;;  %v9043_v40 = vadd.f32 %v4188_v2, %v3964_v55 }
 0x417   : > { %v3984_v0 = vadd.f32 %v3983_v45, %v8930_v47  ;;  %v3985_v50 = vpop.f32.mrb[233].mxu1 }
 0x418   : > { %v5945_v43 = vpop.f32.mrb[216].mxu0 }
 0x419   : > { %v9046_v5 = vadd.f32 %v5945_v43, %v3979_v20  ;;  %v4198_v3 = vpop.f32.mrb[217].mxu0 }
 0x41a   : > { %v3988_v25 = vpop.f32.mrb[234].mxu1  ;;  %v9048_v18 = vadd.f32 %v4198_v3, %v3974_v35 }
 0x41b   : > { %v3989_v33 = vadd.f32 %v3988_v25, %v8934_v54  ;;  %v3990_v41 = vpop.f32.mrb[235].mxu1 }
 0x41c   : > { %v5948_v13 = vpop.f32.mrb[218].mxu0 }
 0x41d   : > { %v9051_v15 = vadd.f32 %v5948_v13, %v3989_v33  ;;  %v4208_v52 = vpop.f32.mrb[219].mxu0 }
 0x41e   : > { %v3993_v27 = vpop.f32.mrb[236].mxu1  ;;  %v9053_v58 = vadd.f32 %v4208_v52, %v3984_v0 }
 0x41f   : > { %v3994_v47 = vadd.f32 %v3993_v27, %v8938_v63  ;;  %v3995_v55 = vpop.f32.mrb[237].mxu1 }
 0x420   : > { %v5951_v11 = vpop.f32.mrb[220].mxu0 }
 0x421   : > { %v4218_v39 = vpop.f32.mrb[221].mxu0 }
 0x422   : > { %v3998_v60 = vpop.f32.mrb[238].mxu1  ;;  %v9056_v23 = vadd.f32 %v4218_v39, %v3994_v47 }
 0x423   : > { %v3999_v61 = vadd.f32 %v3998_v60, %v8944_v10  ;;  %v4000_v24 = vpop.f32.mrb[239].mxu1 }
 0x424   : > { %v5954_v54 = vpop.f32.mrb[222].mxu0 }
 0x425   : > { %v9059_v9 = vadd.f32 %v5951_v11, %v3999_v61  ;;  %v4228_v14 = vpop.f32.mrb[223].mxu0 }
 0x426   : > { %v4003_v56 = vpop.f32.mrb[240].mxu1 }
 0x427   : > { %v4004_v35 = vadd.f32 %v4003_v56, %v8950_v46  ;;  %v4005_v1 = vpop.f32.mrb[241].mxu1 }
 0x428   : > { %v5957_v30 = vpop.f32.mrb[224].mxu0 }
 0x429   : > { %v9062_v49 = vadd.f32 %v4228_v14, %v4004_v35  ;;  %v4238_v63 = vpop.f32.mrb[225].mxu0 }
 0x42a   : > { %v4008_v7 = vpop.f32.mrb[242].mxu1 }
 0x42b   : > { %v4009_v20 = vadd.f32 %v4008_v7, %v8957_v34  ;;  %v4010_v16 = vpop.f32.mrb[243].mxu1 }
 0x42c   : > { %v5960_v6 = vpop.f32.mrb[226].mxu0 }
 0x42d   : > { %v9065_v2 = vadd.f32 %v5954_v54, %v4009_v20  ;;  %v4248_v10 = vpop.f32.mrb[227].mxu0 }
 0x42e   : > { %v4013_v45 = vpop.f32.mrb[244].mxu1 }
 0x42f   : > { %v4014_v0 = vadd.f32 %v4013_v45, %v8963_v57  ;;  %v4015_v50 = vpop.f32.mrb[245].mxu1 }
 0x430   : > { %v5963_v43 = vpop.f32.mrb[228].mxu0 }
 0x431   : > { %v9068_v3 = vadd.f32 %v4238_v63, %v4014_v0  ;;  %v4258_v46 = vpop.f32.mrb[229].mxu0 }
 0x432   : > { %v4018_v25 = vpop.f32.mrb[246].mxu1 }
 0x433   : > { %v4019_v33 = vadd.f32 %v4018_v25, %v8969_v12  ;;  %v4020_v41 = vpop.f32.mrb[247].mxu1 }
 0x434   : > { %v5966_v13 = vpop.f32.mrb[230].mxu0 }
 0x435   : > { %v9071_v52 = vadd.f32 %v5957_v30, %v4019_v33  ;;  %v4268_v34 = vpop.f32.mrb[231].mxu0 }
 0x436   : > { %v4023_v27 = vpop.f32.mrb[248].mxu1 }
 0x437   : > { %v4024_v47 = vadd.f32 %v4023_v27, %v8975_v51  ;;  %v4025_v55 = vpop.f32.mrb[249].mxu1 }
 0x438   : > { %v5969_v11 = vpop.f32.mrb[232].mxu0 }
 0x439   : > { %v9074_v39 = vadd.f32 %v4248_v10, %v4024_v47  ;;  %v4278_v57 = vpop.f32.mrb[233].mxu0 }
 0x43a   : > { %v4028_v60 = vpop.f32.mrb[250].mxu1 }
 0x43b   : > { %v4029_v61 = vadd.f32 %v4028_v60, %v8980_v28  ;;  %v4030_v24 = vpop.f32.mrb[251].mxu1 }
 0x43c   : > { %v5972_v54 = vpop.f32.mrb[234].mxu0 }
 0x43d   : > { %v9077_v14 = vadd.f32 %v5960_v6, %v4029_v61  ;;  %v4288_v12 = vpop.f32.mrb[235].mxu0 }
 0x43e   : > { %v4033_v56 = vpop.f32.mrb[252].mxu1 }
 0x43f   : > { %v4034_v35 = vadd.f32 %v4033_v56, %v8984_v29  ;;  %v4035_v1 = vpop.f32.mrb[253].mxu1 }
 0x440   : > { %v5975_v30 = vpop.f32.mrb[236].mxu0 }
 0x441   : > { %v9080_v63 = vadd.f32 %v4258_v46, %v4034_v35  ;;  %v4298_v51 = vpop.f32.mrb[237].mxu0 }
 0x442   : > { %v4038_v7 = vpop.f32.mrb[254].mxu1 }
 0x443   : > { %v4039_v20 = vadd.f32 %v4038_v7, %v8988_v4  ;;  %v4040_v16 = vpop.f32.mrb[255].mxu1 }
 0x444   : > { %v5978_v10 = vpop.f32.mrb[238].mxu0 }
 0x445   : > { %v9083_v45 = vadd.f32 %v5963_v43, %v4039_v20  ;;  %v4308_v28 = vpop.f32.mrb[239].mxu0 }
 0x446   : > { %v4043_v0 = vpop.f32.mrb[0].mxu1 }
 0x447   : > { %v4044_v6 = vadd.f32 %v4043_v0, %v8992_v17  ;;  %v4045_v50 = vpop.f32.mrb[1].mxu1 }
 0x448   : > { %v4529_v25 = vpop.f32.mrb[240].mxu0 }
 0x449   : > { %v9086_v33 = vadd.f32 %v4268_v34, %v4044_v6  ;;  %v4531_v29 = vpop.f32.mrb[241].mxu0 }
 0x44a   : > { %v4048_v41 = vpop.f32.mrb[2].mxu1 }
 0x44b   : > { %v4049_v46 = vadd.f32 %v4048_v41, %v8996_v48  ;;  %v4050_v27 = vpop.f32.mrb[3].mxu1 }
 0x44c   : > { %v4534_v47 = vpop.f32.mrb[242].mxu0 }
 0x44d   : > { %v9089_v55 = vadd.f32 %v5966_v13, %v4049_v46  ;;  %v4536_v4 = vpop.f32.mrb[243].mxu0 }
 0x44e   : > { %v4053_v60 = vpop.f32.mrb[4].mxu1 }
 0x44f   : > { %v4054_v43 = vadd.f32 %v4053_v60, %v9000_v26  ;;  %v4055_v61 = vpop.f32.mrb[5].mxu1 }
 0x450   : > { %v4539_v24 = vpop.f32.mrb[244].mxu0 }
 0x451   : > { %v9092_v56 = vadd.f32 %v4278_v57, %v4054_v43  ;;  %v4541_v17 = vpop.f32.mrb[245].mxu0 }
 0x452   : > { %v4058_v35 = vpop.f32.mrb[6].mxu1 }
 0x453   : > { %v4059_v34 = vadd.f32 %v4058_v35, %v9004_v22  ;;  %v4060_v1 = vpop.f32.mrb[7].mxu1 }
 0x454   : > { %v4544_v7 = vpop.f32.mrb[246].mxu0 }
 0x455   : > { %v9095_v20 = vadd.f32 %v5969_v11, %v4059_v34  ;;  %v4546_v48 = vpop.f32.mrb[247].mxu0 }
 0x456   : > { %v4063_v16 = vpop.f32.mrb[8].mxu1 }
 0x457   : > { %v4064_v13 = vadd.f32 %v4063_v16, %v9008_v59  ;;  %v4065_v0 = vpop.f32.mrb[9].mxu1 }
 0x458   : > { %v9098_v6 = vpop.f32.mrb[248].mxu0 }
 0x459   : > { %v9100_v26 = vadd.f32 %v4288_v12, %v4064_v13  ;;  %v4551_v50 = vpop.f32.mrb[249].mxu0 }
 0x45a   : > { %v4068_v57 = vpop.f32.mrb[10].mxu1 }
 0x45b   : > { %v4069_v29 = vadd.f32 %v4068_v57, %v9011_v42  ;;  %v4070_v41 = vpop.f32.mrb[11].mxu1 }
 0x45c   : > { %v4554_v46 = vpop.f32.mrb[250].mxu0 }
 0x45d   : > { %v9103_v22 = vadd.f32 %v5972_v54, %v4069_v29  ;;  %v4556_v27 = vpop.f32.mrb[251].mxu0 }
 0x45e   : > { %v4073_v11 = vpop.f32.mrb[12].mxu1 }
 0x45f   : > { %v4074_v4 = vadd.f32 %v4073_v11, %v9014_v53  ;;  %v4075_v60 = vpop.f32.mrb[13].mxu1 }
 0x460   : > { %v9106_v43 = vpop.f32.mrb[252].mxu0 }
 0x461   : > { %v9108_v59 = vadd.f32 %v4298_v51, %v4074_v4  ;;  %v4561_v61 = vpop.f32.mrb[253].mxu0 }
 0x462   : > { %v4078_v12 = vpop.f32.mrb[14].mxu1  ;;  %v4985_v61 = vld [vmem:[%s7248_s8 + $0x8] sm:$0xff] }
 0x463   : > { %v4079_v17 = vadd.f32 %v4078_v12, %v9017_v31  ;;  %v4080_v35 = vpop.f32.mrb[15].mxu1 }
 0x464   : > { %v4564_v34 = vpop.f32.mrb[254].mxu0 }
 0x465   : > { %v9111_v42 = vadd.f32 %v5975_v30, %v4079_v17  ;;  %v4566_v1 = vpop.f32.mrb[255].mxu0  ;;  %v4984_v17 = vld [vmem:[%s7248_s8] sm:$0xff] }
 0x466   : > { %v4083_v54 = vpop.f32.mrb[16].mxu1 }
 0x467   : > { %v4084_v48 = vadd.f32 %v4083_v54, %v9020_v37  ;;  %v4085_v16 = vpop.f32.mrb[17].mxu1 }
 0x468   : > { %v9114_v13 = vpop.f32.mrb[0].mxu0 }
 0x469   : > { %v9116_v53 = vadd.f32 %v4308_v28, %v4084_v48  ;;  %v4571_v51 = vpop.f32.mrb[1].mxu0  ;;  %v9126_v28 = vld [vmem:[%s9331_s5] ss:$0 sm:$0xff] }
 0x46a   : > { %v4088_v0 = vpop.f32.mrb[18].mxu1 }
 0x46b   : > { %v4089_v50 = vadd.f32 %v4088_v0, %v9023_v38  ;;  %v4090_v57 = vpop.f32.mrb[19].mxu1 }
 0x46c   : > { %v9119_v31 = vpop.f32.mrb[2].mxu0 }
 0x46d   : > { %v9121_v30 = vadd.f32 %v5978_v10, %v4089_v50  ;;  %v4576_v29 = vpop.f32.mrb[3].mxu0  ;;  %v4987_v50 = vld [vmem:[%s7248_s8 + $0x18] sm:$0xff] }
 0x46e   : > { %v6013_v41 = vpop.f32.mrb[20].mxu1 }
 0x46f   : > { %v4760_v27 = vadd.f32 %v6013_v41, %v4534_v47  ;;  %v4754_v37 = vpop.f32.mrb[21].mxu1 }
 0x470   : > { %v4755_v11 = vadd.f32 %v4754_v37, %v4529_v25  ;;  %v9128_v4 = vpop.f32.mrb[4].mxu0 }
 0x471   : > { %v4914_v38 = vadd.f32 %v4760_v27, %v9026_v62  ;;  %v4581_v60 = vpop.f32.mrb[5].mxu0 }
 0x472   : > { %v4913_v10 = vadd.f32 %v4755_v11, %v9028_v44  ;;  %v6016_v12 = vpop.f32.mrb[22].mxu1 }
 0x473   : > { %v4953_v47 = vadd.f32 %v9126_v28, %v4914_v38  ;;  %v4770_v35 = vadd.f32 %v6016_v12, %v4544_v7  ;;  %v4764_v1 = vpop.f32.mrb[23].mxu1  ;;  %v4986_v7 = vld [vmem:[%s7248_s8 + $0x10] sm:$0xff] }
 0x474   : > { %v4952_v54 = vadd.f32 %v9126_v28, %v4913_v10  ;;  %v4765_v25 = vadd.f32 %v4764_v1, %v4539_v24  ;;  %v4584_v48 = vpop.f32.mrb[6].mxu0 }
 0x475   : > { %v5017_v16 = vadd.f32 %v4985_v61, %v4953_v47  ;;  %v4916_v62 = vadd.f32 %v4770_v35, %v9031_v21  ;;  %v4586_v51 = vpop.f32.mrb[7].mxu0  ;;  %v4989_v61 = vld [vmem:[%s7248_s8 + $0x28] sm:$0xff]  ;;  %v4988_v47 = vld [vmem:[%s7248_s8 + $0x20] sm:$0xff] }
 0x476   : > { %v5016_v0 = vadd.f32 %v4984_v17, %v4952_v54  ;;  %v4915_v44 = vadd.f32 %v4765_v25, %v9033_v8  ;;  %v6019_v57 = vpop.f32.mrb[24].mxu1 }
 0x477   : > { %5049 = vst [vmem:[%s9141_s17 + $0x8] sm:$0xff] %v5017_v16  ;;  %v4955_v24 = vadd.f32 %v9126_v28, %v4916_v62  ;;  %v4780_v29 = vadd.f32 %v6019_v57, %v4554_v46  ;;  %v4774_v21 = vpop.f32.mrb[25].mxu1  ;;  %v4991_v62 = vld [vmem:[%s7248_s8 + $0x38] sm:$0xff] }
 0x478   : > { %5048 = vst [vmem:[%s9141_s17] sm:$0xff] %v5016_v0  ;;  %v4954_v41 = vadd.f32 %v9126_v28, %v4915_v44  ;;  %v4775_v8 = vadd.f32 %v4774_v21, %v9098_v6  ;;  %v9149_v27 = vpop.f32.mrb[8].mxu0 }
 0x479   : > { %v5019_v37 = vadd.f32 %v4987_v50, %v4955_v24  ;;  %v4918_v11 = vadd.f32 %v4780_v29, %v9036_v19  ;;  %v4591_v38 = vpop.f32.mrb[9].mxu0  ;;  %v4990_v50 = vld [vmem:[%s7248_s8 + $0x30] sm:$0xff] }
 0x47a   : > { %v5018_v60 = vadd.f32 %v4986_v7, %v4954_v41  ;;  %v4917_v10 = vadd.f32 %v4775_v8, %v9038_v36  ;;  %v6022_v12 = vpop.f32.mrb[26].mxu1  ;;  %v4993_v41 = vld [vmem:[%s7248_s8 + $0x48] sm:$0xff] }
 0x47b   : > { %5051 = vst [vmem:[%s9141_s17 + $0x18] sm:$0xff] %v5019_v37  ;;  %v4957_v46 = vadd.f32 %v9126_v28, %v4918_v11  ;;  %v4790_v17 = vadd.f32 %v6022_v12, %v4564_v34  ;;  %v4784_v6 = vpop.f32.mrb[27].mxu1  ;;  %v4992_v11 = vld [vmem:[%s7248_s8 + $0x40] sm:$0xff] }
 0x47c   : > { %5050 = vst [vmem:[%s9141_s17 + $0x10] sm:$0xff] %v5018_v60  ;;  %v4956_v35 = vadd.f32 %v9126_v28, %v4917_v10  ;;  %v4785_v19 = vadd.f32 %v4784_v6, %v9106_v43  ;;  %v4594_v1 = vpop.f32.mrb[10].mxu0 }
 0x47d   : > { %v5021_v54 = vadd.f32 %v4989_v61, %v4957_v46  ;;  %v4920_v25 = vadd.f32 %v4790_v17, %v9041_v32  ;;  %v4596_v36 = vpop.f32.mrb[11].mxu0 }
 0x47e   : > { %v5020_v16 = vadd.f32 %v4988_v47, %v4956_v35  ;;  %v4919_v51 = vadd.f32 %v4785_v19, %v9043_v40  ;;  %v6025_v0 = vpop.f32.mrb[28].mxu1  ;;  %v4995_v47 = vld [vmem:[%s7248_s8 + $0x58] sm:$0xff]  ;;  %v4994_v35 = vld [vmem:[%s7248_s8 + $0x50] sm:$0xff] }
 0x47f   : > { %5053 = vst [vmem:[%s9141_s17 + $0x28] sm:$0xff] %v5021_v54  ;;  %v4959_v34 = vadd.f32 %v9126_v28, %v4920_v25  ;;  %v4800_v44 = vadd.f32 %v6025_v0, %v9119_v31  ;;  %v4794_v43 = vpop.f32.mrb[29].mxu1 }
 0x480   : > { %5052 = vst [vmem:[%s9141_s17 + $0x20] sm:$0xff] %v5020_v16  ;;  %v4958_v32 = vadd.f32 %v9126_v28, %v4919_v51  ;;  %v4795_v57 = vadd.f32 %v4794_v43, %v9114_v13  ;;  %v4599_v24 = vpop.f32.mrb[12].mxu0  ;;  %v4997_v51 = vld [vmem:[%s7248_s8 + $0x68] sm:$0xff] }
 0x481   : > { %v5023_v7 = vadd.f32 %v4991_v62, %v4959_v34  ;;  %v4922_v40 = vadd.f32 %v4800_v44, %v9046_v5  ;;  %v4601_v29 = vpop.f32.mrb[13].mxu0 }
 0x482   : > { %v5022_v21 = vadd.f32 %v4990_v50, %v4958_v32  ;;  %v4921_v8 = vadd.f32 %v4795_v57, %v9048_v18  ;;  %v6028_v37 = vpop.f32.mrb[30].mxu1  ;;  %v4996_v50 = vld [vmem:[%s7248_s8 + $0x60] sm:$0xff]  ;;  %v4999_v29 = vld [vmem:[%s7248_s8 + $0x78] sm:$0xff] }
 0x483   : > { %5055 = vst [vmem:[%s9141_s17 + $0x38] sm:$0xff] %v5023_v7  ;;  %v4961_v31 = vadd.f32 %v9126_v28, %v4922_v40  ;;  %v4810_v38 = vadd.f32 %v6028_v37, %v4584_v48  ;;  %v4804_v60 = vpop.f32.mrb[31].mxu1  ;;  %v4998_v37 = vld [vmem:[%s7248_s8 + $0x70] sm:$0xff] }
 0x484   : > { %5054 = vst [vmem:[%s9141_s17 + $0x30] sm:$0xff] %v5022_v21  ;;  %v4960_v13 = vadd.f32 %v9126_v28, %v4921_v8  ;;  %v4805_v5 = vadd.f32 %v4804_v60, %v9128_v4  ;;  %v4604_v61 = vpop.f32.mrb[14].mxu0 }
 0x485   : > { %v5025_v10 = vadd.f32 %v4993_v41, %v4961_v31  ;;  %v4924_v12 = vadd.f32 %v4810_v38, %v9051_v15  ;;  %v4606_v18 = vpop.f32.mrb[15].mxu0 }
 0x486   : > { %v5024_v46 = vadd.f32 %v4992_v11, %v4960_v13  ;;  %v4923_v17 = vadd.f32 %v4805_v5, %v9053_v58  ;;  %v6031_v6 = vpop.f32.mrb[32].mxu1 }
 0x487   : > { %5057 = vst [vmem:[%s9141_s17 + $0x48] sm:$0xff] %v5025_v10  ;;  %v4963_v48 = vadd.f32 %v9126_v28, %v4924_v12  ;;  %v4820_v19 = vadd.f32 %v6031_v6, %v4594_v1  ;;  %v4814_v54 = vpop.f32.mrb[33].mxu1 }
 0x488   : > { %5056 = vst [vmem:[%s9141_s17 + $0x40] sm:$0xff] %v5024_v46  ;;  %v4962_v4 = vadd.f32 %v9126_v28, %v4923_v17  ;;  %v4815_v15 = vadd.f32 %v4814_v54, %v9149_v27  ;;  %v4609_v25 = vpop.f32.mrb[16].mxu0  ;;  %v5000_v46 = vld [vmem:[%s7248_s8 + $0x80] sm:$0xff] }
 0x489   : > { %v5027_v36 = vadd.f32 %v4995_v47, %v4963_v48  ;;  %v4926_v16 = vadd.f32 %v4820_v19, %v9059_v9  ;;  %v4611_v58 = vpop.f32.mrb[17].mxu0 }
 0x48a   : > { %v5026_v62 = vadd.f32 %v4994_v35, %v4962_v4  ;;  %v4925_v0 = vadd.f32 %v4815_v15, %v9056_v23  ;;  %v6034_v34 = vpop.f32.mrb[34].mxu1  ;;  %v5002_v15 = vld [vmem:[%s7248_s8 + $0x90] sm:$0xff]  ;;  %v5003_v58 = vld [vmem:[%s7248_s8 + $0x98] sm:$0xff] }
 0x48b   : > { %5059 = vst [vmem:[%s9141_s17 + $0x58] sm:$0xff] %v5027_v36  ;;  %v4965_v1 = vadd.f32 %v9126_v28, %v4926_v16  ;;  %v4830_v44 = vadd.f32 %v6034_v34, %v4604_v61  ;;  %v4824_v43 = vpop.f32.mrb[35].mxu1  ;;  %v5001_v61 = vld [vmem:[%s7248_s8 + $0x88] sm:$0xff] }
 0x48c   : > { %5058 = vst [vmem:[%s9141_s17 + $0x50] sm:$0xff] %v5026_v62  ;;  %v4964_v27 = vadd.f32 %v9126_v28, %v4925_v0  ;;  %v4825_v9 = vadd.f32 %v4824_v43, %v4599_v24  ;;  %v4614_v32 = vpop.f32.mrb[18].mxu0 }
 0x48d   : > { %v5029_v57 = vadd.f32 %v4997_v51, %v4965_v1  ;;  %v4928_v7 = vadd.f32 %v4830_v44, %v9065_v2  ;;  %v4616_v40 = vpop.f32.mrb[19].mxu0 }
 0x48e   : > { %v5028_v23 = vadd.f32 %v4996_v50, %v4964_v27  ;;  %v4927_v21 = vadd.f32 %v4825_v9, %v9062_v49  ;;  %v6037_v41 = vpop.f32.mrb[36].mxu1 }
 0x48f   : > { %5061 = vst [vmem:[%s9141_s17 + $0x68] sm:$0xff] %v5029_v57  ;;  %v4967_v8 = vadd.f32 %v9126_v28, %v4928_v7  ;;  %v4840_v31 = vadd.f32 %v6037_v41, %v4614_v32  ;;  %v4834_v11 = vpop.f32.mrb[37].mxu1 }
 0x490   : > { %5060 = vst [vmem:[%s9141_s17 + $0x60] sm:$0xff] %v5028_v23  ;;  %v4966_v24 = vadd.f32 %v9126_v28, %v4927_v21  ;;  %v4835_v2 = vadd.f32 %v4834_v11, %v4609_v25  ;;  %v4619_v38 = vpop.f32.mrb[20].mxu0  ;;  %v5005_v21 = vld [vmem:[%s7248_s8 + $0xa8] sm:$0xff] }
 0x491   : > { %v5031_v60 = vadd.f32 %v4999_v29, %v4967_v8  ;;  %v4930_v13 = vadd.f32 %v4840_v31, %v9071_v52  ;;  %v4621_v5 = vpop.f32.mrb[21].mxu0 }
 0x492   : > { %v5030_v49 = vadd.f32 %v4998_v37, %v4966_v24  ;;  %v4929_v10 = vadd.f32 %v4835_v2, %v9068_v3  ;;  %v6040_v12 = vpop.f32.mrb[38].mxu1 }
 0x493   : > { %5063 = vst [vmem:[%s9141_s17 + $0x78] sm:$0xff] %v5031_v60  ;;  %v4969_v18 = vadd.f32 %v9126_v28, %v4930_v13  ;;  %v4844_v47 = vpop.f32.mrb[39].mxu1 }
 0x494   : > { %5062 = vst [vmem:[%s9141_s17 + $0x70] sm:$0xff] %v5030_v49  ;;  %v4968_v17 = vadd.f32 %v9126_v28, %v4929_v10  ;;  %v4845_v6 = vadd.f32 %v4844_v47, %v4619_v38  ;;  %v4624_v52 = vpop.f32.mrb[22].mxu0  ;;  %v5006_v38 = vld [vmem:[%s7248_s8 + $0xb0] sm:$0xff] }
 0x495   : > { %v5033_v48 = vadd.f32 %v5001_v61, %v4969_v18  ;;  %v4850_v35 = vadd.f32 %v6040_v12, %v4624_v52  ;;  %v4626_v19 = vpop.f32.mrb[23].mxu0  ;;  %v5007_v18 = vld [vmem:[%s7248_s8 + $0xb8] sm:$0xff] }
 0x496   : > { %v5032_v54 = vadd.f32 %v5000_v46, %v4968_v17  ;;  %v4931_v3 = vadd.f32 %v4845_v6, %v9074_v39  ;;  %v6043_v4 = vpop.f32.mrb[40].mxu1  ;;  %v5008_v19 = vld [vmem:[%s7248_s8 + $0xc0] sm:$0xff] }
 0x497   : > { %5065 = vst [vmem:[%s9141_s17 + $0x88] sm:$0xff] %v5033_v48  ;;  %v4932_v25 = vadd.f32 %v4850_v35, %v9077_v14  ;;  %v4854_v36 = vpop.f32.mrb[41].mxu1  ;;  %v5004_v14 = vld [vmem:[%s7248_s8 + $0xa0] sm:$0xff] }
 0x498   : > { %5064 = vst [vmem:[%s9141_s17 + $0x80] sm:$0xff] %v5032_v54  ;;  %v4970_v16 = vadd.f32 %v9126_v28, %v4931_v3  ;;  %v4629_v62 = vpop.f32.mrb[24].mxu0 }
 0x499   : > { %v4971_v51 = vadd.f32 %v9126_v28, %v4932_v25  ;;  %v4855_v0 = vadd.f32 %v4854_v36, %v4629_v62  ;;  %v4631_v34 = vpop.f32.mrb[25].mxu0  ;;  %v5009_v36 = vld [vmem:[%s7248_s8 + $0xc8] sm:$0xff] }
 0x49a   : > { %v5034_v1 = vadd.f32 %v5002_v15, %v4970_v16  ;;  %v6046_v39 = vpop.f32.mrb[42].mxu1  ;;  %v5010_v34 = vld [vmem:[%s7248_s8 + $0xd0] sm:$0xff] }
 0x49b   : > { %v5035_v50 = vadd.f32 %v5003_v58, %v4971_v51  ;;  %v4933_v44 = vadd.f32 %v4855_v0, %v9080_v63  ;;  %v4864_v43 = vpop.f32.mrb[43].mxu1 }
 0x49c   : > { %5066 = vst [vmem:[%s9141_s17 + $0x90] sm:$0xff] %v5034_v1  ;;  %v4634_v27 = vpop.f32.mrb[26].mxu0 }
 0x49d   : > { %5067 = vst [vmem:[%s9141_s17 + $0x98] sm:$0xff] %v5035_v50  ;;  %v4972_v9 = vadd.f32 %v9126_v28, %v4933_v44  ;;  %v4860_v32 = vadd.f32 %v6043_v4, %v4634_v27  ;;  %v4636_v57 = vpop.f32.mrb[27].mxu0 }
 0x49e   : > { %v6049_v7 = vpop.f32.mrb[44].mxu1 }
 0x49f   : > { %v5036_v40 = vadd.f32 %v5004_v14, %v4972_v9  ;;  %v4934_v23 = vadd.f32 %v4860_v32, %v9083_v45  ;;  %v4874_v29 = vpop.f32.mrb[45].mxu1  ;;  %v5011_v14 = vld [vmem:[%s7248_s8 + $0xd8] sm:$0xff] }
 0x4a0   : > { %v4639_v41 = vpop.f32.mrb[28].mxu0 }
 0x4a1   : > { %5068 = vst [vmem:[%s9141_s17 + $0xa0] sm:$0xff] %v5036_v40  ;;  %v4973_v63 = vadd.f32 %v9126_v28, %v4934_v23  ;;  %v4865_v8 = vadd.f32 %v4864_v43, %v4639_v41  ;;  %v4641_v37 = vpop.f32.mrb[29].mxu0  ;;  %v5012_v40 = vld [vmem:[%s7248_s8 + $0xe0] sm:$0xff] }
 0x4a2   : > { %v6052_v31 = vpop.f32.mrb[46].mxu1 }
 0x4a3   : > { %v5037_v11 = vadd.f32 %v5005_v21, %v4973_v63  ;;  %v4935_v24 = vadd.f32 %v4865_v8, %v9086_v33  ;;  %v4884_v2 = vpop.f32.mrb[47].mxu1  ;;  %v5013_v8 = vld [vmem:[%s7248_s8 + $0xe8] sm:$0xff] }
 0x4a4   : > { %v4644_v60 = vpop.f32.mrb[30].mxu0 }
 0x4a5   : > { %5069 = vst [vmem:[%s9141_s17 + $0xa8] sm:$0xff] %v5037_v11  ;;  %v4974_v45 = vadd.f32 %v9126_v28, %v4935_v24  ;;  %v4870_v13 = vadd.f32 %v6046_v39, %v4644_v60  ;;  %v4646_v5 = vpop.f32.mrb[31].mxu0 }
 0x4a6   : > { %v6055_v49 = vpop.f32.mrb[48].mxu1 }
 0x4a7   : > { %v5038_v61 = vadd.f32 %v5006_v38, %v4974_v45  ;;  %v4936_v10 = vadd.f32 %v4870_v13, %v9089_v55  ;;  %v4894_v12 = vpop.f32.mrb[49].mxu1  ;;  %v5014_v38 = vld [vmem:[%s7248_s8 + $0xf0] sm:$0xff] }
 0x4a8   : > { %v4649_v46 = vpop.f32.mrb[32].mxu0 }
 0x4a9   : > { %5070 = vst [vmem:[%s9141_s17 + $0xb0] sm:$0xff] %v5038_v61  ;;  %v4975_v33 = vadd.f32 %v9126_v28, %v4936_v10  ;;  %v4875_v47 = vadd.f32 %v4874_v29, %v4649_v46  ;;  %v4651_v17 = vpop.f32.mrb[33].mxu0  ;;  %v5015_v61 = vld [vmem:[%s7248_s8 + $0xf8] sm:$0xff] }
 0x4aa   : > { %v6058_v6 = vpop.f32.mrb[50].mxu1 }
 0x4ab   : > { %v5039_v52 = vadd.f32 %v5007_v18, %v4975_v33  ;;  %v4937_v48 = vadd.f32 %v4875_v47, %v9092_v56  ;;  %v4904_v35 = vpop.f32.mrb[51].mxu1 }
 0x4ac   : > { %v4654_v54 = vpop.f32.mrb[34].mxu0 }
 0x4ad   : > { %5071 = vst [vmem:[%s9141_s17 + $0xb8] sm:$0xff] %v5039_v52  ;;  %v4976_v55 = vadd.f32 %v9126_v28, %v4937_v48  ;;  %v4880_v3 = vadd.f32 %v6049_v7, %v4654_v54  ;;  %v4656_v4 = vpop.f32.mrb[35].mxu0 }
 0x4af   : > { %v5040_v15 = vadd.f32 %v5008_v19, %v4976_v55  ;;  %v4938_v25 = vadd.f32 %v4880_v3, %v9095_v20 }
 0x4b0   : > { %v4659_v16 = vpop.f32.mrb[36].mxu0 }
 0x4b1   : > { %5072 = vst [vmem:[%s9141_s17 + $0xc0] sm:$0xff] %v5040_v15  ;;  %v4977_v56 = vadd.f32 %v9126_v28, %v4938_v25  ;;  %v4885_v58 = vadd.f32 %v4884_v2, %v4659_v16  ;;  %v4661_v62 = vpop.f32.mrb[37].mxu0 }
 0x4b3   : > { %v5041_v51 = vadd.f32 %v5009_v36, %v4977_v56  ;;  %v4939_v0 = vadd.f32 %v4885_v58, %v9100_v26 }
 0x4b4   : > { %v4664_v1 = vpop.f32.mrb[38].mxu0 }
 0x4b5   : > { %5073 = vst [vmem:[%s9141_s17 + $0xc8] sm:$0xff] %v5041_v51  ;;  %v4978_v39 = vadd.f32 %v9126_v28, %v4939_v0  ;;  %v4890_v20 = vadd.f32 %v6052_v31, %v4664_v1  ;;  %v4666_v50 = vpop.f32.mrb[39].mxu0 }
 0x4b7   : > { %v5042_v44 = vadd.f32 %v5010_v34, %v4978_v39  ;;  %v4940_v43 = vadd.f32 %v4890_v20, %v9103_v22 }
 0x4b8   : > { %v4669_v27 = vpop.f32.mrb[40].mxu0 }
 0x4b9   : > { %5074 = vst [vmem:[%s9141_s17 + $0xd0] sm:$0xff] %v5042_v44  ;;  %v4979_v9 = vadd.f32 %v9126_v28, %v4940_v43  ;;  %v4895_v26 = vadd.f32 %v4894_v12, %v4669_v27  ;;  %v4671_v32 = vpop.f32.mrb[41].mxu0 }
 0x4bb   : > { %v5043_v57 = vadd.f32 %v5011_v14, %v4979_v9  ;;  %v4941_v7 = vadd.f32 %v4895_v26, %v9108_v59 }
 0x4bc   : > { %v4674_v23 = vpop.f32.mrb[42].mxu0 }
 0x4bd   : > { %5075 = vst [vmem:[%s9141_s17 + $0xd8] sm:$0xff] %v5043_v57  ;;  %v4980_v29 = vadd.f32 %v9126_v28, %v4941_v7  ;;  %v4900_v22 = vadd.f32 %v6055_v49, %v4674_v23  ;;  %v4676_v21 = vpop.f32.mrb[43].mxu0 }
 0x4bf   : > { %v5044_v41 = vadd.f32 %v5012_v40, %v4980_v29  ;;  %v4942_v63 = vadd.f32 %v4900_v22, %v9111_v42 }
 0x4c0   : > { %v4679_v37 = vpop.f32.mrb[44].mxu0 }
 0x4c1   : > { %5076 = vst [vmem:[%s9141_s17 + $0xe0] sm:$0xff] %v5044_v41  ;;  %v4981_v59 = vadd.f32 %v9126_v28, %v4942_v63  ;;  %v4905_v31 = vadd.f32 %v4904_v35, %v4679_v37  ;;  %v4681_v11 = vpop.f32.mrb[45].mxu0 }
 0x4c3   : > { %v5045_v24 = vadd.f32 %v5013_v8, %v4981_v59  ;;  %v4943_v2 = vadd.f32 %v4905_v31, %v9116_v53 }
 0x4c4   : > { %v4684_v60 = vpop.f32.mrb[46].mxu0 }
 0x4c5   : > { %5077 = vst [vmem:[%s9141_s17 + $0xe8] sm:$0xff] %v5045_v24  ;;  %v4982_v42 = vadd.f32 %v9126_v28, %v4943_v2  ;;  %v4910_v45 = vadd.f32 %v6058_v6, %v4684_v60  ;;  %v4686_v13 = vpop.f32.mrb[47].mxu0 }
 0x4c7   : > { %v5046_v5 = vadd.f32 %v5014_v38, %v4982_v42  ;;  %v4944_v49 = vadd.f32 %v4910_v45, %v9121_v30 }
 0x4c9   : > { %5078 = vst [vmem:[%s9141_s17 + $0xf0] sm:$0xff] %v5046_v5  ;;  %v4983_v10 = vadd.f32 %v9126_v28, %v4944_v49 }
 0x4cb   : > { %v5047_v53 = vadd.f32 %v5015_v61, %v4983_v10 }
 0x4cd   : > { %5079 = vst [vmem:[%s9141_s17 + $0xf8] sm:$0xff] %v5047_v53 }
 0x4ce   : > { %6876 = shalt.err (!%p6873_p7)
}
 0x4cf   : > { %s6877_s8 = scalar_lea.hbm %s9274_s10, 4096  ;;  %s6881_s19 = scalar_lea.hbm %s9332_s6, 8192 }
 0x4d0   : > { %p6878_p11 = scmp.ne.s32.totalorder %s9274_s10, %s6877_s8  ;;  %p6882_p12 = scmp.lt.u32.totalorder %s9274_s10, %s9332_s6 }
 0x4d1   : > { %p6883_p13 = scmp.lt.u32.totalorder %s6881_s19, %s6877_s8  ;;  %p6885_p2 = scmp.lt.u32.totalorder %s6877_s8, %s9274_s10 }
 0x4d2   : > { %p6879_p1 = pnand %p6878_p11, %p9588_p6 }
 0x4d3   : > { %p6884_p0 = por %p6883_p13, %p6882_p12 }
 0x4d4   : > { %p6880_p8 = pneg %p6879_p1 }
 0x4d5   : > { %p6886_p10 = por %p6885_p2, %p6884_p0 }
 0x4d7   : > { %p6887_p3 = pnand %p6886_p10, %p6880_p8 }
 0x4d9   : > { %6890 = shalt.err (!%p6887_p3)
}
 0x4da   : > { %s6968_s29 = smov 128   ;;  %s6969_s9 = smov 8  }
 0x4db   : > { %6551 = dma.vmem_to_hbm [thread:$0]  (%p9588_p6), %s9276_s16, 4096, %s9274_s10, %s5081_s13, %s6968_s29, %s6968_s29, %s6969_s9  }
 0x4dc PF: > { %s5112_s2 = sand.u32 1, %s6937_s21   ;;  %p9589_p4 = scmp.ne.s32.totalorder %s9433_s30, 0 }
 0x4dd   : > { %p9590_p9 = scmp.ge.s32.totalorder %s6957_s26, 2  ;;  %s5113_s17 = scalar_lea.sflag [#allocation8], %s5112_s2 }
 0x4df   : > { %p6568_p5 = pnand %p9590_p9, %p9589_p4 }
 0x4e1   : > { %6932 = dma.done.wait (!%p6568_p5), %s5113_s17, 4096  }
 0x4e2   : > { %6934 = vsyncadd (!%p6568_p5), %s5113_s17, 4294963200  ;;  %s26_s26 = sadd.s32 1, %s6957_s26   ;;  %s9591_s11 = sld [smem:[#allocation20_spill]] }
 0x4e3   : > { %p23_p7 = scmp.ge.s32.totalorder %s26_s26, 4   ;;  %s9592_s23 = sld [smem:[#allocation22_spill]] }
 0x4e4   : > { %s9593_s15 = sld [smem:[#allocation21_spill]]  ;;  %s9594_s21 = smov %s6941_s22 }
 0x4e5   : > { %s9596_s24 = smov %s6953_s25  ;;  %25 = sbr.rel (!%p23_p7) target bundleno = 13 (0xd), region = 126 }
 0x4e8   : > { %s9595_s22 = smov %s9591_s11 }
 0x4ea   : > { %s9597_s25 = smov %s9593_s15 }
 0x4ec   :  { %5118 = vsyncpa [#allocation7], 1 }
 0x4ed   :  { %5120 = vsyncpa [#allocation7 + $0x1], 1 }
 0x4ee   :  { %5121 = vsyncpa [#allocation10], 1 }
 0x4ef   :  { %5123 = vsyncpa [#allocation10 + $0x1], 1 }
 0x4f0   :  { %5124 = vsyncpa [#allocation13], 1 }
 0x4f1   :  { %5125 = vsyncpa [#allocation8], 1 }
 0x4f2   :  { %5127 = vsyncpa [#allocation8 + $0x1], 1 }

</bundles_post_ra>
